<compile_context>
chip_gen: v6e
topology: v6e:2x2x1
jax: 0.10.0
libtpu: 0.0.40
codegen_flags: <defaults>
</compile_context>

<pallas_src>
import functools

import jax
import jax.numpy as jnp
from jax.experimental import pallas as pl
from jax.experimental.pallas import tpu as pltpu

_EPS = 1e-5


def _const_spec(a):
    """Full-array block, replicated across the rank-1 grid."""
    return pl.BlockSpec(a.shape, lambda g: (0,) * a.ndim)


def _iota2(shape):
    r = jax.lax.broadcasted_iota(jnp.int32, shape, 0)
    c = jax.lax.broadcasted_iota(jnp.int32, shape, 1)
    return r, c


# ---------------------------------------------------------------------------
# Single fused forward kernel (built per static config inside the wrapper).
# ---------------------------------------------------------------------------
def densenet1d_forward(params, x_ncl, *, growth_rate, num_classes):
    gr = growth_rate
    x = jnp.transpose(x_ncl, (0, 2, 1)).astype(jnp.float32)       # NCL -> NLC
    B, L, C = x.shape
    assert L % 4 == 0, "stem assumes length divisible by 4"
    l0 = L // 2                      # conv0 output length (stride 2, pad 3)
    l_pool = l0 // 2                 # maxpool output length (k3 s2 p1)

    # --- cheap XLA layout glue: im2col for conv0, flattened over batch -----
    xp = jnp.pad(x, ((0, 0), (3, 3), (0, 0)))                     # (B, L+6, C)
    taps = [xp[:, k:k + 2 * l0:2, :] for k in range(7)]           # xpad[2i+k]
    patches = jnp.concatenate(taps, axis=-1).reshape(B * l0, 7 * C)

    F0 = params['conv0_w'].shape[1]
    blocks = params['blocks']
    transitions = params['transitions']
    n_blocks = len(blocks)
    with_cls = num_classes != 0
    ncls = params['fc_w'].shape[1]

    # --- static per-block structure ----------------------------------------
    block_meta = []
    Lb, cin = l_pool, F0
    for bi, layers in enumerate(blocks):
        nl = len(layers)
        ctot = cin + nl * gr
        has_trans = bi != n_blocks - 1
        block_meta.append(dict(L=Lb, cin0=cin, nl=nl, ctot=ctot,
                               has_trans=has_trans))
        if has_trans:
            assert Lb % 2 == 0, "AvgPool1d(2) assumes even length"
            cin, Lb = ctot // 2, Lb // 2
        else:
            cin = ctot
    Lf, nf = Lb, cin                 # final length / feature count

    # --- flat argument list (kernel walks it in the same order) ------------
    args = [patches, params['conv0_w'], params['bn0_s'], params['bn0_b']]
    for bi, layers in enumerate(blocks):
        for lyr in layers:
            args += [lyr['s1'], lyr['b1'], lyr['w1'],
                     lyr['s2'], lyr['b2'], lyr['w2']]
        if block_meta[bi]['has_trans']:
            t = transitions[bi]
            args += [t['s'], t['b'], t['w']]
    args += [params['bn5_s'], params['bn5_b']]
    if with_cls:
        args += [params['fc_w'], params['fc_b']]
    n_in = len(args)

    out_dim = ncls if with_cls else nf
    out_shape = jax.ShapeDtypeStruct((B, out_dim), jnp.float32)
    scratch_shapes = [pltpu.VMEM((B * m['L'], m['ctot']), jnp.float32)
                      for m in block_meta]

    def boundary_masks(n, per_len):
        """(n,1) bool masks: row is NOT first / NOT last inside its batch item."""
        r = jax.lax.broadcasted_iota(jnp.int32, (n, 1), 0)
        not_start = r >= 0
        not_end = r >= 0
        for b in range(B):
            not_start = not_start & (r != b * per_len)
            not_end = not_end & (r != b * per_len + per_len - 1)
        return not_start, not_end

    def kernel(*refs):
        in_refs = refs[:n_in]
        o_ref = refs[n_in]
        bufs = refs[n_in + 1:]
        it = iter(in_refs)

        # ---------------- stem: conv0 + BN0 + ReLU + MaxPool(k3 s2 p1) -----
        patches_ref, w0_ref, s0_ref, b0_ref = next(it), next(it), next(it), next(it)
        n0 = B * l0
        h = jnp.dot(patches_ref[...].astype(jnp.bfloat16), w0_ref[...],
                    preferred_element_type=jnp.float32)            # (n0, F0)
        h = jnp.maximum(h * s0_ref[...] + b0_ref[...], 0.0)        # BN0 + ReLU
        row, col = _iota2((n0, n0))
        sd = (col == row - 1).astype(jnp.float32)                  # y[i-1]
        su = (col == row + 1).astype(jnp.float32)                  # y[i+1]
        ns0, ne0 = boundary_masks(n0, l0)
        h_dn = jnp.where(ns0, jnp.dot(sd, h, preferred_element_type=jnp.float32), 0.0)
        h_up = jnp.where(ne0, jnp.dot(su, h, preferred_element_type=jnp.float32), 0.0)
        m = jnp.maximum(jnp.maximum(h_dn, h), h_up)                # h>=0 so 0 == -inf pad
        n1 = B * l_pool
        erow, ecol = _iota2((n1, n0))
        esel = (ecol == 2 * erow).astype(jnp.float32)              # stride-2 select
        x_cur = jnp.dot(esel, m, preferred_element_type=jnp.float32)

        # ---------------- dense blocks (+ fused transitions) ---------------
        for bi, meta in enumerate(block_meta):
            Lb_ = meta['L']
            n = B * Lb_
            cin0 = meta['cin0']
            buf = bufs[bi]                                         # VMEM (n, ctot)
            buf[:, :cin0] = x_cur
            nsb, neb = boundary_masks(n, Lb_)
            brow, bcol = _iota2((n, n))
            bsd = (bcol == brow - 1).astype(jnp.float32)
            bsu = (bcol == brow + 1).astype(jnp.float32)
            cin_ = cin0
            for _ in range(meta['nl']):
                s1, b1, w1 = next(it)[...], next(it)[...], next(it)[...]
                s2, b2, w2 = next(it)[...], next(it)[...], next(it)[...]
                xc = buf[:, :cin_]                                 # (n, cin)
                h1 = jnp.maximum(xc * s1 + b1, 0.0)                # BN1 + ReLU
                h2 = jnp.dot(h1.astype(jnp.bfloat16), w1,          # conv1 (1x1)
                             preferred_element_type=jnp.float32)
                h3 = jnp.maximum(h2 * s2 + b2, 0.0)                # BN2 + ReLU
                y = jnp.dot(h3.astype(jnp.bfloat16), w2,           # conv2: 3 taps fused
                            preferred_element_type=jnp.float32)    # (n, 3*gr)
                y0, y1, y2 = y[:, :gr], y[:, gr:2 * gr], y[:, 2 * gr:3 * gr]
                new = (jnp.where(nsb, jnp.dot(bsd, y0, preferred_element_type=jnp.float32), 0.0)
                       + y1
                       + jnp.where(neb, jnp.dot(bsu, y2, preferred_element_type=jnp.float32), 0.0))
                buf[:, cin_:cin_ + gr] = new                       # in-VMEM "concat"
                cin_ += gr
            x_full = buf[...]
            if meta['has_trans']:
                ts, tb, tw = next(it)[...], next(it)[...], next(it)[...]
                hT = jnp.maximum(x_full * ts + tb, 0.0)            # BN + ReLU
                hT = jnp.dot(hT.astype(jnp.bfloat16), tw,          # 1x1 conv
                             preferred_element_type=jnp.float32)
                nn = n // 2
                prow, pcol = _iota2((nn, n))                       # AvgPool(2) matmul
                pool = jnp.where((pcol == 2 * prow) | (pcol == 2 * prow + 1),
                                 0.5, 0.0).astype(jnp.float32)
                x_cur = jnp.dot(pool, hT, preferred_element_type=jnp.float32)
            else:
                x_cur = x_full

        # ---------------- head: BN5 + ReLU + GAP + Linear + sigmoid --------
        s5, b5 = next(it)[...], next(it)[...]
        nF = B * Lf
        hH = jnp.maximum(x_cur * s5 + b5, 0.0)
        grow, gcol = _iota2((B, nF))
        gsel = jnp.where((gcol >= grow * Lf) & (gcol < (grow + 1) * Lf),
                         1.0 / Lf, 0.0).astype(jnp.float32)
        feat = jnp.dot(gsel, hH, preferred_element_type=jnp.float32)   # (B, nf)
        if with_cls:
            fw, fb = next(it)[...], next(it)[...]
            yv = jnp.dot(feat.astype(jnp.bfloat16), fw,
                         preferred_element_type=jnp.float32) + fb
            z = jnp.exp(-jnp.abs(yv))                              # stable sigmoid
            o_ref[...] = jnp.where(yv >= 0.0, 1.0 / (1.0 + z), z / (1.0 + z))
        else:
            o_ref[...] = feat

    return pl.pallas_call(
        kernel,
        out_shape=out_shape,
        grid=(1,),
        in_specs=[_const_spec(a) for a in args],
        out_specs=pl.BlockSpec(out_shape.shape, lambda g: (0, 0)),
        scratch_shapes=scratch_shapes,
        compiler_params=pltpu.CompilerParams(dimension_semantics=("arbitrary",)),
    )(*args)


# ----------------------------- parameter init -------------------------------
def _bn_fold(key, c):
    k1, k2, k3, k4 = jax.random.split(key, 4)
    gamma = 1.0 + 0.1 * jax.random.normal(k1, (c,), jnp.float32)
    beta = 0.1 * jax.random.normal(k2, (c,), jnp.float32)
    mean = 0.1 * jax.random.normal(k3, (c,), jnp.float32)
    var = jax.random.uniform(k4, (c,), jnp.float32, minval=0.5, maxval=1.5)
    scale = gamma / jnp.sqrt(var + _EPS)
    shift = beta - mean * scale
    return scale[None, :], shift[None, :]


def _conv_w(key, out_c, in_c, k):
    std = 1.0 / (in_c * k) ** 0.5
    return std * jax.random.normal(key, (out_c, in_c, k), jnp.float32)  # PyTorch layout


def init_params(key, *, growth_rate, block_config, num_init_features, bn_size,
                num_classes, channel):
    keys = iter(jax.random.split(key, 256))
    p = {}
    w0 = _conv_w(next(keys), num_init_features, channel, 7)             # (F0, C, 7)
    p['conv0_w'] = jnp.transpose(w0, (2, 1, 0)).reshape(
        7 * channel, num_init_features).astype(jnp.bfloat16)            # (7*C, F0), k-major
    p['bn0_s'], p['bn0_b'] = _bn_fold(next(keys), num_init_features)
    nf = num_init_features
    p['blocks'], p['transitions'] = [], []
    for bi, num_layers in enumerate(block_config):
        layers = []
        for li in range(num_layers):
            cin = nf + li * growth_rate
            c1 = bn_size * growth_rate
            s1, b1 = _bn_fold(next(keys), cin)
            w1 = jnp.transpose(_conv_w(next(keys), c1, cin, 1)[:, :, 0],
                               (1, 0)).astype(jnp.bfloat16)             # (cin, c1)
            s2, b2 = _bn_fold(next(keys), c1)
            w2_pt = _conv_w(next(keys), growth_rate, c1, 3)             # (gr, c1, 3)
            w2 = jnp.transpose(w2_pt, (1, 2, 0)).reshape(
                c1, 3 * growth_rate).astype(jnp.bfloat16)               # (c1, 3*gr), k-major
            layers.append(dict(s1=s1, b1=b1, w1=w1, s2=s2, b2=b2, w2=w2))
        p['blocks'].append(layers)
        nf = nf + num_layers * growth_rate
        if bi != len(block_config) - 1:
            s, b = _bn_fold(next(keys), nf)
            w = jnp.transpose(_conv_w(next(keys), nf // 2, nf, 1)[:, :, 0],
                              (1, 0)).astype(jnp.bfloat16)              # (nf, nf//2)
            p['transitions'].append(dict(s=s, b=b, w=w))
            nf = nf // 2
        else:
            p['transitions'].append(None)
    p['bn5_s'], p['bn5_b'] = _bn_fold(next(keys), nf)
    std = 1.0 / nf ** 0.5
    nc = max(num_classes, 1)
    p['fc_w'] = (std * jax.random.normal(next(keys), (nf, nc),
                                         jnp.float32)).astype(jnp.bfloat16)
    p['fc_b'] = std * jax.random.normal(next(keys), (1, nc), jnp.float32)
    return p


if __name__ == "__main__":
    key = jax.random.PRNGKey(0)
    cfg = dict(growth_rate=8, block_config=(2, 2, 2), num_init_features=16,
               bn_size=2, num_classes=5, channel=3)
    kp, kx = jax.random.split(key)
    params = init_params(kp, **cfg)
    # input in PyTorch NCL layout: (batch, channel, length)
    x = jax.random.normal(kx, (2, cfg['channel'], 64), jnp.float32)
    fwd = jax.jit(functools.partial(densenet1d_forward,
                                    growth_rate=cfg['growth_rate'],
                                    num_classes=cfg['num_classes']))
    out = jax.block_until_ready(fwd(params, x))
    assert out.shape == (2, cfg['num_classes']), out.shape
    assert bool(jnp.all(jnp.isfinite(out)))
    assert bool(jnp.all((out >= 0.0) & (out <= 1.0)))   # sigmoid output
    print("KERNEL_OK")
</pallas_src>

<mosaic_0001>
module attributes {stable_mosaic.version = 11 : i64} {
  func.func @kernel(%arg0: i32, %arg1: memref<64x21xf32, #tpu.memory_space<vmem>>, %arg2: memref<21x16xbf16, #tpu.memory_space<vmem>>, %arg3: memref<1x16xf32, #tpu.memory_space<vmem>>, %arg4: memref<1x16xf32, #tpu.memory_space<vmem>>, %arg5: memref<1x16xf32, #tpu.memory_space<vmem>>, %arg6: memref<1x16xf32, #tpu.memory_space<vmem>>, %arg7: memref<16x16xbf16, #tpu.memory_space<vmem>>, %arg8: memref<1x16xf32, #tpu.memory_space<vmem>>, %arg9: memref<1x16xf32, #tpu.memory_space<vmem>>, %arg10: memref<16x24xbf16, #tpu.memory_space<vmem>>, %arg11: memref<1x24xf32, #tpu.memory_space<vmem>>, %arg12: memref<1x24xf32, #tpu.memory_space<vmem>>, %arg13: memref<24x16xbf16, #tpu.memory_space<vmem>>, %arg14: memref<1x16xf32, #tpu.memory_space<vmem>>, %arg15: memref<1x16xf32, #tpu.memory_space<vmem>>, %arg16: memref<16x24xbf16, #tpu.memory_space<vmem>>, %arg17: memref<1x32xf32, #tpu.memory_space<vmem>>, %arg18: memref<1x32xf32, #tpu.memory_space<vmem>>, %arg19: memref<32x16xbf16, #tpu.memory_space<vmem>>, %arg20: memref<1x16xf32, #tpu.memory_space<vmem>>, %arg21: memref<1x16xf32, #tpu.memory_space<vmem>>, %arg22: memref<16x16xbf16, #tpu.memory_space<vmem>>, %arg23: memref<1x16xf32, #tpu.memory_space<vmem>>, %arg24: memref<1x16xf32, #tpu.memory_space<vmem>>, %arg25: memref<16x24xbf16, #tpu.memory_space<vmem>>, %arg26: memref<1x24xf32, #tpu.memory_space<vmem>>, %arg27: memref<1x24xf32, #tpu.memory_space<vmem>>, %arg28: memref<24x16xbf16, #tpu.memory_space<vmem>>, %arg29: memref<1x16xf32, #tpu.memory_space<vmem>>, %arg30: memref<1x16xf32, #tpu.memory_space<vmem>>, %arg31: memref<16x24xbf16, #tpu.memory_space<vmem>>, %arg32: memref<1x32xf32, #tpu.memory_space<vmem>>, %arg33: memref<1x32xf32, #tpu.memory_space<vmem>>, %arg34: memref<32x16xbf16, #tpu.memory_space<vmem>>, %arg35: memref<1x16xf32, #tpu.memory_space<vmem>>, %arg36: memref<1x16xf32, #tpu.memory_space<vmem>>, %arg37: memref<16x16xbf16, #tpu.memory_space<vmem>>, %arg38: memref<1x16xf32, #tpu.memory_space<vmem>>, %arg39: memref<1x16xf32, #tpu.memory_space<vmem>>, %arg40: memref<16x24xbf16, #tpu.memory_space<vmem>>, %arg41: memref<1x24xf32, #tpu.memory_space<vmem>>, %arg42: memref<1x24xf32, #tpu.memory_space<vmem>>, %arg43: memref<24x16xbf16, #tpu.memory_space<vmem>>, %arg44: memref<1x16xf32, #tpu.memory_space<vmem>>, %arg45: memref<1x16xf32, #tpu.memory_space<vmem>>, %arg46: memref<16x24xbf16, #tpu.memory_space<vmem>>, %arg47: memref<1x32xf32, #tpu.memory_space<vmem>>, %arg48: memref<1x32xf32, #tpu.memory_space<vmem>>, %arg49: memref<32x5xbf16, #tpu.memory_space<vmem>>, %arg50: memref<1x5xf32, #tpu.memory_space<vmem>>, %arg51: memref<2x5xf32, #tpu.memory_space<vmem>>, %arg52: memref<32x32xf32, #tpu.memory_space<vmem>>, %arg53: memref<16x32xf32, #tpu.memory_space<vmem>>, %arg54: memref<8x32xf32, #tpu.memory_space<vmem>>) attributes {dimension_semantics = [#tpu.dimension_semantics<arbitrary>], iteration_bounds = array<i64: 1>, scalar_prefetch = 0 : i64, scratch_operands = 3 : i64, tpu.core_type = #tpu.core_type<tc>, window_params = [{pipeline_mode = #tpu.pipeline_mode<synchronous>, transform_indices = @transform_0, window_bounds = array<i64: 64, 21>}, {pipeline_mode = #tpu.pipeline_mode<synchronous>, transform_indices = @transform_1, window_bounds = array<i64: 21, 16>}, {pipeline_mode = #tpu.pipeline_mode<synchronous>, transform_indices = @transform_2, window_bounds = array<i64: 1, 16>}, {pipeline_mode = #tpu.pipeline_mode<synchronous>, transform_indices = @transform_3, window_bounds = array<i64: 1, 16>}, {pipeline_mode = #tpu.pipeline_mode<synchronous>, transform_indices = @transform_4, window_bounds = array<i64: 1, 16>}, {pipeline_mode = #tpu.pipeline_mode<synchronous>, transform_indices = @transform_5, window_bounds = array<i64: 1, 16>}, {pipeline_mode = #tpu.pipeline_mode<synchronous>, transform_indices = @transform_6, window_bounds = array<i64: 16, 16>}, {pipeline_mode = #tpu.pipeline_mode<synchronous>, transform_indices = @transform_7, window_bounds = array<i64: 1, 16>}, {pipeline_mode = #tpu.pipeline_mode<synchronous>, transform_indices = @transform_8, window_bounds = array<i64: 1, 16>}, {pipeline_mode = #tpu.pipeline_mode<synchronous>, transform_indices = @transform_9, window_bounds = array<i64: 16, 24>}, {pipeline_mode = #tpu.pipeline_mode<synchronous>, transform_indices = @transform_10, window_bounds = array<i64: 1, 24>}, {pipeline_mode = #tpu.pipeline_mode<synchronous>, transform_indices = @transform_11, window_bounds = array<i64: 1, 24>}, {pipeline_mode = #tpu.pipeline_mode<synchronous>, transform_indices = @transform_12, window_bounds = array<i64: 24, 16>}, {pipeline_mode = #tpu.pipeline_mode<synchronous>, transform_indices = @transform_13, window_bounds = array<i64: 1, 16>}, {pipeline_mode = #tpu.pipeline_mode<synchronous>, transform_indices = @transform_14, window_bounds = array<i64: 1, 16>}, {pipeline_mode = #tpu.pipeline_mode<synchronous>, transform_indices = @transform_15, window_bounds = array<i64: 16, 24>}, {pipeline_mode = #tpu.pipeline_mode<synchronous>, transform_indices = @transform_16, window_bounds = array<i64: 1, 32>}, {pipeline_mode = #tpu.pipeline_mode<synchronous>, transform_indices = @transform_17, window_bounds = array<i64: 1, 32>}, {pipeline_mode = #tpu.pipeline_mode<synchronous>, transform_indices = @transform_18, window_bounds = array<i64: 32, 16>}, {pipeline_mode = #tpu.pipeline_mode<synchronous>, transform_indices = @transform_19, window_bounds = array<i64: 1, 16>}, {pipeline_mode = #tpu.pipeline_mode<synchronous>, transform_indices = @transform_20, window_bounds = array<i64: 1, 16>}, {pipeline_mode = #tpu.pipeline_mode<synchronous>, transform_indices = @transform_21, window_bounds = array<i64: 16, 16>}, {pipeline_mode = #tpu.pipeline_mode<synchronous>, transform_indices = @transform_22, window_bounds = array<i64: 1, 16>}, {pipeline_mode = #tpu.pipeline_mode<synchronous>, transform_indices = @transform_23, window_bounds = array<i64: 1, 16>}, {pipeline_mode = #tpu.pipeline_mode<synchronous>, transform_indices = @transform_24, window_bounds = array<i64: 16, 24>}, {pipeline_mode = #tpu.pipeline_mode<synchronous>, transform_indices = @transform_25, window_bounds = array<i64: 1, 24>}, {pipeline_mode = #tpu.pipeline_mode<synchronous>, transform_indices = @transform_26, window_bounds = array<i64: 1, 24>}, {pipeline_mode = #tpu.pipeline_mode<synchronous>, transform_indices = @transform_27, window_bounds = array<i64: 24, 16>}, {pipeline_mode = #tpu.pipeline_mode<synchronous>, transform_indices = @transform_28, window_bounds = array<i64: 1, 16>}, {pipeline_mode = #tpu.pipeline_mode<synchronous>, transform_indices = @transform_29, window_bounds = array<i64: 1, 16>}, {pipeline_mode = #tpu.pipeline_mode<synchronous>, transform_indices = @transform_30, window_bounds = array<i64: 16, 24>}, {pipeline_mode = #tpu.pipeline_mode<synchronous>, transform_indices = @transform_31, window_bounds = array<i64: 1, 32>}, {pipeline_mode = #tpu.pipeline_mode<synchronous>, transform_indices = @transform_32, window_bounds = array<i64: 1, 32>}, {pipeline_mode = #tpu.pipeline_mode<synchronous>, transform_indices = @transform_33, window_bounds = array<i64: 32, 16>}, {pipeline_mode = #tpu.pipeline_mode<synchronous>, transform_indices = @transform_34, window_bounds = array<i64: 1, 16>}, {pipeline_mode = #tpu.pipeline_mode<synchronous>, transform_indices = @transform_35, window_bounds = array<i64: 1, 16>}, {pipeline_mode = #tpu.pipeline_mode<synchronous>, transform_indices = @transform_36, window_bounds = array<i64: 16, 16>}, {pipeline_mode = #tpu.pipeline_mode<synchronous>, transform_indices = @transform_37, window_bounds = array<i64: 1, 16>}, {pipeline_mode = #tpu.pipeline_mode<synchronous>, transform_indices = @transform_38, window_bounds = array<i64: 1, 16>}, {pipeline_mode = #tpu.pipeline_mode<synchronous>, transform_indices = @transform_39, window_bounds = array<i64: 16, 24>}, {pipeline_mode = #tpu.pipeline_mode<synchronous>, transform_indices = @transform_40, window_bounds = array<i64: 1, 24>}, {pipeline_mode = #tpu.pipeline_mode<synchronous>, transform_indices = @transform_41, window_bounds = array<i64: 1, 24>}, {pipeline_mode = #tpu.pipeline_mode<synchronous>, transform_indices = @transform_42, window_bounds = array<i64: 24, 16>}, {pipeline_mode = #tpu.pipeline_mode<synchronous>, transform_indices = @transform_43, window_bounds = array<i64: 1, 16>}, {pipeline_mode = #tpu.pipeline_mode<synchronous>, transform_indices = @transform_44, window_bounds = array<i64: 1, 16>}, {pipeline_mode = #tpu.pipeline_mode<synchronous>, transform_indices = @transform_45, window_bounds = array<i64: 16, 24>}, {pipeline_mode = #tpu.pipeline_mode<synchronous>, transform_indices = @transform_46, window_bounds = array<i64: 1, 32>}, {pipeline_mode = #tpu.pipeline_mode<synchronous>, transform_indices = @transform_47, window_bounds = array<i64: 1, 32>}, {pipeline_mode = #tpu.pipeline_mode<synchronous>, transform_indices = @transform_48, window_bounds = array<i64: 32, 5>}, {pipeline_mode = #tpu.pipeline_mode<synchronous>, transform_indices = @transform_49, window_bounds = array<i64: 1, 5>}, {pipeline_mode = #tpu.pipeline_mode<synchronous>, transform_indices = @transform_50, window_bounds = array<i64: 2, 5>}]} {
    %c0 = arith.constant 0 : index
    %c0_0 = arith.constant 0 : index
    %0 = vector.load %arg1[%c0, %c0_0] : memref<64x21xf32, #tpu.memory_space<vmem>>, vector<64x21xf32>
    %1 = arith.truncf %0 : vector<64x21xf32> to vector<64x21xbf16>
    %c0_1 = arith.constant 0 : index
    %c0_2 = arith.constant 0 : index
    %2 = vector.load %arg2[%c0_1, %c0_2] : memref<21x16xbf16, #tpu.memory_space<vmem>>, vector<21x16xbf16>
    %cst = arith.constant dense<0.000000e+00> : vector<64x16xf32>
    %3 = tpu.matmul %1, %2, %cst {dimension_numbers = #tpu.dot_dimension_numbers<[1], [0], [0], [1], [0, 0, 1, 1], [], []>} : vector<64x21xbf16>, vector<21x16xbf16>, vector<64x16xf32> -> vector<64x16xf32>
    %c0_3 = arith.constant 0 : index
    %c0_4 = arith.constant 0 : index
    %4 = vector.load %arg3[%c0_3, %c0_4] : memref<1x16xf32, #tpu.memory_space<vmem>>, vector<1x16xf32>
    %5 = vector.broadcast %4 : vector<1x16xf32> to vector<64x16xf32>
    %6 = arith.mulf %3, %5 : vector<64x16xf32>
    %c0_5 = arith.constant 0 : index
    %c0_6 = arith.constant 0 : index
    %7 = vector.load %arg4[%c0_5, %c0_6] : memref<1x16xf32, #tpu.memory_space<vmem>>, vector<1x16xf32>
    %8 = vector.broadcast %7 : vector<1x16xf32> to vector<64x16xf32>
    %9 = arith.addf %6, %8 : vector<64x16xf32>
    %cst_7 = arith.constant 0.000000e+00 : f32
    %10 = vector.broadcast %cst_7 : f32 to vector<64x16xf32>
    %11 = arith.maximumf %9, %10 : vector<64x16xf32>
    %12 = tpu.iota {dimensions = array<i32: 0>} : vector<64x64xi32>
    %13 = tpu.iota {dimensions = array<i32: 1>} : vector<64x64xi32>
    %c1_i32 = arith.constant 1 : i32
    %14 = vector.broadcast %c1_i32 : i32 to vector<64x64xi32>
    %15 = arith.subi %12, %14 : vector<64x64xi32>
    %16 = arith.cmpi eq, %13, %15 : vector<64x64xi32>
    %17 = arith.extui %16 : vector<64x64xi1> to vector<64x64xi32>
    %18 = arith.sitofp %17 : vector<64x64xi32> to vector<64x64xf32>
    %c1_i32_8 = arith.constant 1 : i32
    %19 = vector.broadcast %c1_i32_8 : i32 to vector<64x64xi32>
    %20 = arith.addi %12, %19 : vector<64x64xi32>
    %21 = arith.cmpi eq, %13, %20 : vector<64x64xi32>
    %22 = arith.extui %21 : vector<64x64xi1> to vector<64x64xi32>
    %23 = arith.sitofp %22 : vector<64x64xi32> to vector<64x64xf32>
    %24 = tpu.iota {dimensions = array<i32: 0>} : vector<64x1xi32>
    %c0_i32 = arith.constant 0 : i32
    %25 = vector.broadcast %c0_i32 : i32 to vector<64x1xi32>
    %26 = arith.cmpi sge, %24, %25 : vector<64x1xi32>
    %c0_i32_9 = arith.constant 0 : i32
    %27 = vector.broadcast %c0_i32_9 : i32 to vector<64x1xi32>
    %28 = arith.cmpi sge, %24, %27 : vector<64x1xi32>
    %c0_i32_10 = arith.constant 0 : i32
    %29 = vector.broadcast %c0_i32_10 : i32 to vector<64x1xi32>
    %30 = arith.cmpi ne, %24, %29 : vector<64x1xi32>
    %31 = arith.andi %26, %30 : vector<64x1xi1>
    %c31_i32 = arith.constant 31 : i32
    %32 = vector.broadcast %c31_i32 : i32 to vector<64x1xi32>
    %33 = arith.cmpi ne, %24, %32 : vector<64x1xi32>
    %34 = arith.andi %28, %33 : vector<64x1xi1>
    %c32_i32 = arith.constant 32 : i32
    %35 = vector.broadcast %c32_i32 : i32 to vector<64x1xi32>
    %36 = arith.cmpi ne, %24, %35 : vector<64x1xi32>
    %37 = arith.andi %31, %36 : vector<64x1xi1>
    %c63_i32 = arith.constant 63 : i32
    %38 = vector.broadcast %c63_i32 : i32 to vector<64x1xi32>
    %39 = arith.cmpi ne, %24, %38 : vector<64x1xi32>
    %40 = arith.andi %34, %39 : vector<64x1xi1>
    %cst_11 = arith.constant dense<0.000000e+00> : vector<64x16xf32>
    %41 = tpu.matmul %18, %11, %cst_11 {dimension_numbers = #tpu.dot_dimension_numbers<[1], [0], [0], [1], [0, 0, 1, 1], [], []>} : vector<64x64xf32>, vector<64x16xf32>, vector<64x16xf32> -> vector<64x16xf32>
    %cst_12 = arith.constant 0.000000e+00 : f32
    %42 = vector.shape_cast %37 : vector<64x1xi1> to vector<64x1xi1>
    %43 = vector.broadcast %42 : vector<64x1xi1> to vector<64x16xi1>
    %44 = vector.broadcast %cst_12 : f32 to vector<64x16xf32>
    %45 = arith.select %43, %41, %44 : vector<64x16xi1>, vector<64x16xf32>
    %cst_13 = arith.constant dense<0.000000e+00> : vector<64x16xf32>
    %46 = tpu.matmul %23, %11, %cst_13 {dimension_numbers = #tpu.dot_dimension_numbers<[1], [0], [0], [1], [0, 0, 1, 1], [], []>} : vector<64x64xf32>, vector<64x16xf32>, vector<64x16xf32> -> vector<64x16xf32>
    %cst_14 = arith.constant 0.000000e+00 : f32
    %47 = vector.shape_cast %40 : vector<64x1xi1> to vector<64x1xi1>
    %48 = vector.broadcast %47 : vector<64x1xi1> to vector<64x16xi1>
    %49 = vector.broadcast %cst_14 : f32 to vector<64x16xf32>
    %50 = arith.select %48, %46, %49 : vector<64x16xi1>, vector<64x16xf32>
    %51 = arith.maximumf %45, %11 : vector<64x16xf32>
    %52 = arith.maximumf %51, %50 : vector<64x16xf32>
    %53 = tpu.iota {dimensions = array<i32: 0>} : vector<32x64xi32>
    %54 = tpu.iota {dimensions = array<i32: 1>} : vector<32x64xi32>
    %c2_i32 = arith.constant 2 : i32
    %55 = vector.broadcast %c2_i32 : i32 to vector<32x64xi32>
    %56 = arith.muli %55, %53 : vector<32x64xi32>
    %57 = arith.cmpi eq, %54, %56 : vector<32x64xi32>
    %58 = arith.extui %57 : vector<32x64xi1> to vector<32x64xi32>
    %59 = arith.sitofp %58 : vector<32x64xi32> to vector<32x64xf32>
    %cst_15 = arith.constant dense<0.000000e+00> : vector<32x16xf32>
    %60 = tpu.matmul %59, %52, %cst_15 {dimension_numbers = #tpu.dot_dimension_numbers<[1], [0], [0], [1], [0, 0, 1, 1], [], []>} : vector<32x64xf32>, vector<64x16xf32>, vector<32x16xf32> -> vector<32x16xf32>
    %c0_16 = arith.constant 0 : index
    %c0_17 = arith.constant 0 : index
    %61 = vector.load %arg52[%c0_16, %c0_17] : memref<32x32xf32, #tpu.memory_space<vmem>>, vector<32x16xf32>
    tpu.vector_store %arg52[%c0_16, %c0_17], %60 {strides = array<i32>} : memref<32x32xf32, #tpu.memory_space<vmem>>, vector<32x16xf32>,
    %62 = tpu.iota {dimensions = array<i32: 0>} : vector<32x1xi32>
    %c0_i32_18 = arith.constant 0 : i32
    %63 = vector.broadcast %c0_i32_18 : i32 to vector<32x1xi32>
    %64 = arith.cmpi sge, %62, %63 : vector<32x1xi32>
    %c0_i32_19 = arith.constant 0 : i32
    %65 = vector.broadcast %c0_i32_19 : i32 to vector<32x1xi32>
    %66 = arith.cmpi sge, %62, %65 : vector<32x1xi32>
    %c0_i32_20 = arith.constant 0 : i32
    %67 = vector.broadcast %c0_i32_20 : i32 to vector<32x1xi32>
    %68 = arith.cmpi ne, %62, %67 : vector<32x1xi32>
    %69 = arith.andi %64, %68 : vector<32x1xi1>
    %c15_i32 = arith.constant 15 : i32
    %70 = vector.broadcast %c15_i32 : i32 to vector<32x1xi32>
    %71 = arith.cmpi ne, %62, %70 : vector<32x1xi32>
    %72 = arith.andi %66, %71 : vector<32x1xi1>
    %c16_i32 = arith.constant 16 : i32
    %73 = vector.broadcast %c16_i32 : i32 to vector<32x1xi32>
    %74 = arith.cmpi ne, %62, %73 : vector<32x1xi32>
    %75 = arith.andi %69, %74 : vector<32x1xi1>
    %c31_i32_21 = arith.constant 31 : i32
    %76 = vector.broadcast %c31_i32_21 : i32 to vector<32x1xi32>
    %77 = arith.cmpi ne, %62, %76 : vector<32x1xi32>
    %78 = arith.andi %72, %77 : vector<32x1xi1>
    %79 = tpu.iota {dimensions = array<i32: 0>} : vector<32x32xi32>
    %80 = tpu.iota {dimensions = array<i32: 1>} : vector<32x32xi32>
    %c1_i32_22 = arith.constant 1 : i32
    %81 = vector.broadcast %c1_i32_22 : i32 to vector<32x32xi32>
    %82 = arith.subi %79, %81 : vector<32x32xi32>
    %83 = arith.cmpi eq, %80, %82 : vector<32x32xi32>
    %84 = arith.extui %83 : vector<32x32xi1> to vector<32x32xi32>
    %85 = arith.sitofp %84 : vector<32x32xi32> to vector<32x32xf32>
    %c1_i32_23 = arith.constant 1 : i32
    %86 = vector.broadcast %c1_i32_23 : i32 to vector<32x32xi32>
    %87 = arith.addi %79, %86 : vector<32x32xi32>
    %88 = arith.cmpi eq, %80, %87 : vector<32x32xi32>
    %89 = arith.extui %88 : vector<32x32xi1> to vector<32x32xi32>
    %90 = arith.sitofp %89 : vector<32x32xi32> to vector<32x32xf32>
    %c0_24 = arith.constant 0 : index
    %c0_25 = arith.constant 0 : index
    %91 = vector.load %arg5[%c0_24, %c0_25] : memref<1x16xf32, #tpu.memory_space<vmem>>, vector<1x16xf32>
    %c0_26 = arith.constant 0 : index
    %c0_27 = arith.constant 0 : index
    %92 = vector.load %arg6[%c0_26, %c0_27] : memref<1x16xf32, #tpu.memory_space<vmem>>, vector<1x16xf32>
    %c0_28 = arith.constant 0 : index
    %c0_29 = arith.constant 0 : index
    %93 = vector.load %arg7[%c0_28, %c0_29] : memref<16x16xbf16, #tpu.memory_space<vmem>>, vector<16x16xbf16>
    %c0_30 = arith.constant 0 : index
    %c0_31 = arith.constant 0 : index
    %94 = vector.load %arg8[%c0_30, %c0_31] : memref<1x16xf32, #tpu.memory_space<vmem>>, vector<1x16xf32>
    %c0_32 = arith.constant 0 : index
    %c0_33 = arith.constant 0 : index
    %95 = vector.load %arg9[%c0_32, %c0_33] : memref<1x16xf32, #tpu.memory_space<vmem>>, vector<1x16xf32>
    %c0_34 = arith.constant 0 : index
    %c0_35 = arith.constant 0 : index
    %96 = vector.load %arg10[%c0_34, %c0_35] : memref<16x24xbf16, #tpu.memory_space<vmem>>, vector<16x24xbf16>
    %c0_36 = arith.constant 0 : index
    %c0_37 = arith.constant 0 : index
    %97 = vector.load %arg52[%c0_36, %c0_37] : memref<32x32xf32, #tpu.memory_space<vmem>>, vector<32x16xf32>
    %98 = vector.broadcast %91 : vector<1x16xf32> to vector<32x16xf32>
    %99 = arith.mulf %97, %98 : vector<32x16xf32>
    %100 = vector.broadcast %92 : vector<1x16xf32> to vector<32x16xf32>
    %101 = arith.addf %99, %100 : vector<32x16xf32>
    %cst_38 = arith.constant 0.000000e+00 : f32
    %102 = vector.broadcast %cst_38 : f32 to vector<32x16xf32>
    %103 = arith.maximumf %101, %102 : vector<32x16xf32>
    %104 = arith.truncf %103 : vector<32x16xf32> to vector<32x16xbf16>
    %cst_39 = arith.constant dense<0.000000e+00> : vector<32x16xf32>
    %105 = tpu.matmul %104, %93, %cst_39 {dimension_numbers = #tpu.dot_dimension_numbers<[1], [0], [0], [1], [0, 0, 1, 1], [], []>} : vector<32x16xbf16>, vector<16x16xbf16>, vector<32x16xf32> -> vector<32x16xf32>
    %106 = vector.broadcast %94 : vector<1x16xf32> to vector<32x16xf32>
    %107 = arith.mulf %105, %106 : vector<32x16xf32>
    %108 = vector.broadcast %95 : vector<1x16xf32> to vector<32x16xf32>
    %109 = arith.addf %107, %108 : vector<32x16xf32>
    %cst_40 = arith.constant 0.000000e+00 : f32
    %110 = vector.broadcast %cst_40 : f32 to vector<32x16xf32>
    %111 = arith.maximumf %109, %110 : vector<32x16xf32>
    %112 = arith.truncf %111 : vector<32x16xf32> to vector<32x16xbf16>
    %cst_41 = arith.constant dense<0.000000e+00> : vector<32x24xf32>
    %113 = tpu.matmul %112, %96, %cst_41 {dimension_numbers = #tpu.dot_dimension_numbers<[1], [0], [0], [1], [0, 0, 1, 1], [], []>} : vector<32x16xbf16>, vector<16x24xbf16>, vector<32x24xf32> -> vector<32x24xf32>
    %114 = vector.extract_strided_slice %113 {offsets = [0, 0], sizes = [32, 8], strides = [1, 1]} : vector<32x24xf32> to vector<32x8xf32>
    %115 = vector.extract_strided_slice %113 {offsets = [0, 8], sizes = [32, 8], strides = [1, 1]} : vector<32x24xf32> to vector<32x8xf32>
    %116 = vector.extract_strided_slice %113 {offsets = [0, 16], sizes = [32, 8], strides = [1, 1]} : vector<32x24xf32> to vector<32x8xf32>
    %cst_42 = arith.constant dense<0.000000e+00> : vector<32x8xf32>
    %117 = tpu.matmul %85, %114, %cst_42 {dimension_numbers = #tpu.dot_dimension_numbers<[1], [0], [0], [1], [0, 0, 1, 1], [], []>} : vector<32x32xf32>, vector<32x8xf32>, vector<32x8xf32> -> vector<32x8xf32>
    %cst_43 = arith.constant 0.000000e+00 : f32
    %118 = vector.shape_cast %75 : vector<32x1xi1> to vector<32x1xi1>
    %119 = vector.broadcast %118 : vector<32x1xi1> to vector<32x8xi1>
    %120 = vector.broadcast %cst_43 : f32 to vector<32x8xf32>
    %121 = arith.select %119, %117, %120 : vector<32x8xi1>, vector<32x8xf32>
    %122 = arith.addf %121, %115 : vector<32x8xf32>
    %cst_44 = arith.constant dense<0.000000e+00> : vector<32x8xf32>
    %123 = tpu.matmul %90, %116, %cst_44 {dimension_numbers = #tpu.dot_dimension_numbers<[1], [0], [0], [1], [0, 0, 1, 1], [], []>} : vector<32x32xf32>, vector<32x8xf32>, vector<32x8xf32> -> vector<32x8xf32>
    %cst_45 = arith.constant 0.000000e+00 : f32
    %124 = vector.shape_cast %78 : vector<32x1xi1> to vector<32x1xi1>
    %125 = vector.broadcast %124 : vector<32x1xi1> to vector<32x8xi1>
    %126 = vector.broadcast %cst_45 : f32 to vector<32x8xf32>
    %127 = arith.select %125, %123, %126 : vector<32x8xi1>, vector<32x8xf32>
    %128 = arith.addf %122, %127 : vector<32x8xf32>
    %c0_46 = arith.constant 0 : index
    %c16 = arith.constant 16 : index
    %129 = vector.load %arg52[%c0_46, %c16] : memref<32x32xf32, #tpu.memory_space<vmem>>, vector<32x8xf32>
    tpu.vector_store %arg52[%c0_46, %c16], %128 {strides = array<i32>} : memref<32x32xf32, #tpu.memory_space<vmem>>, vector<32x8xf32>,
    %c0_47 = arith.constant 0 : index
    %c0_48 = arith.constant 0 : index
    %130 = vector.load %arg11[%c0_47, %c0_48] : memref<1x24xf32, #tpu.memory_space<vmem>>, vector<1x24xf32>
    %c0_49 = arith.constant 0 : index
    %c0_50 = arith.constant 0 : index
    %131 = vector.load %arg12[%c0_49, %c0_50] : memref<1x24xf32, #tpu.memory_space<vmem>>, vector<1x24xf32>
    %c0_51 = arith.constant 0 : index
    %c0_52 = arith.constant 0 : index
    %132 = vector.load %arg13[%c0_51, %c0_52] : memref<24x16xbf16, #tpu.memory_space<vmem>>, vector<24x16xbf16>
    %c0_53 = arith.constant 0 : index
    %c0_54 = arith.constant 0 : index
    %133 = vector.load %arg14[%c0_53, %c0_54] : memref<1x16xf32, #tpu.memory_space<vmem>>, vector<1x16xf32>
    %c0_55 = arith.constant 0 : index
    %c0_56 = arith.constant 0 : index
    %134 = vector.load %arg15[%c0_55, %c0_56] : memref<1x16xf32, #tpu.memory_space<vmem>>, vector<1x16xf32>
    %c0_57 = arith.constant 0 : index
    %c0_58 = arith.constant 0 : index
    %135 = vector.load %arg16[%c0_57, %c0_58] : memref<16x24xbf16, #tpu.memory_space<vmem>>, vector<16x24xbf16>
    %c0_59 = arith.constant 0 : index
    %c0_60 = arith.constant 0 : index
    %136 = vector.load %arg52[%c0_59, %c0_60] : memref<32x32xf32, #tpu.memory_space<vmem>>, vector<32x24xf32>
    %137 = vector.broadcast %130 : vector<1x24xf32> to vector<32x24xf32>
    %138 = arith.mulf %136, %137 : vector<32x24xf32>
    %139 = vector.broadcast %131 : vector<1x24xf32> to vector<32x24xf32>
    %140 = arith.addf %138, %139 : vector<32x24xf32>
    %cst_61 = arith.constant 0.000000e+00 : f32
    %141 = vector.broadcast %cst_61 : f32 to vector<32x24xf32>
    %142 = arith.maximumf %140, %141 : vector<32x24xf32>
    %143 = arith.truncf %142 : vector<32x24xf32> to vector<32x24xbf16>
    %cst_62 = arith.constant dense<0.000000e+00> : vector<32x16xf32>
    %144 = tpu.matmul %143, %132, %cst_62 {dimension_numbers = #tpu.dot_dimension_numbers<[1], [0], [0], [1], [0, 0, 1, 1], [], []>} : vector<32x24xbf16>, vector<24x16xbf16>, vector<32x16xf32> -> vector<32x16xf32>
    %145 = vector.broadcast %133 : vector<1x16xf32> to vector<32x16xf32>
    %146 = arith.mulf %144, %145 : vector<32x16xf32>
    %147 = vector.broadcast %134 : vector<1x16xf32> to vector<32x16xf32>
    %148 = arith.addf %146, %147 : vector<32x16xf32>
    %cst_63 = arith.constant 0.000000e+00 : f32
    %149 = vector.broadcast %cst_63 : f32 to vector<32x16xf32>
    %150 = arith.maximumf %148, %149 : vector<32x16xf32>
    %151 = arith.truncf %150 : vector<32x16xf32> to vector<32x16xbf16>
    %cst_64 = arith.constant dense<0.000000e+00> : vector<32x24xf32>
    %152 = tpu.matmul %151, %135, %cst_64 {dimension_numbers = #tpu.dot_dimension_numbers<[1], [0], [0], [1], [0, 0, 1, 1], [], []>} : vector<32x16xbf16>, vector<16x24xbf16>, vector<32x24xf32> -> vector<32x24xf32>
    %153 = vector.extract_strided_slice %152 {offsets = [0, 0], sizes = [32, 8], strides = [1, 1]} : vector<32x24xf32> to vector<32x8xf32>
    %154 = vector.extract_strided_slice %152 {offsets = [0, 8], sizes = [32, 8], strides = [1, 1]} : vector<32x24xf32> to vector<32x8xf32>
    %155 = vector.extract_strided_slice %152 {offsets = [0, 16], sizes = [32, 8], strides = [1, 1]} : vector<32x24xf32> to vector<32x8xf32>
    %cst_65 = arith.constant dense<0.000000e+00> : vector<32x8xf32>
    %156 = tpu.matmul %85, %153, %cst_65 {dimension_numbers = #tpu.dot_dimension_numbers<[1], [0], [0], [1], [0, 0, 1, 1], [], []>} : vector<32x32xf32>, vector<32x8xf32>, vector<32x8xf32> -> vector<32x8xf32>
    %cst_66 = arith.constant 0.000000e+00 : f32
    %157 = vector.shape_cast %75 : vector<32x1xi1> to vector<32x1xi1>
    %158 = vector.broadcast %157 : vector<32x1xi1> to vector<32x8xi1>
    %159 = vector.broadcast %cst_66 : f32 to vector<32x8xf32>
    %160 = arith.select %158, %156, %159 : vector<32x8xi1>, vector<32x8xf32>
    %161 = arith.addf %160, %154 : vector<32x8xf32>
    %cst_67 = arith.constant dense<0.000000e+00> : vector<32x8xf32>
    %162 = tpu.matmul %90, %155, %cst_67 {dimension_numbers = #tpu.dot_dimension_numbers<[1], [0], [0], [1], [0, 0, 1, 1], [], []>} : vector<32x32xf32>, vector<32x8xf32>, vector<32x8xf32> -> vector<32x8xf32>
    %cst_68 = arith.constant 0.000000e+00 : f32
    %163 = vector.shape_cast %78 : vector<32x1xi1> to vector<32x1xi1>
    %164 = vector.broadcast %163 : vector<32x1xi1> to vector<32x8xi1>
    %165 = vector.broadcast %cst_68 : f32 to vector<32x8xf32>
    %166 = arith.select %164, %162, %165 : vector<32x8xi1>, vector<32x8xf32>
    %167 = arith.addf %161, %166 : vector<32x8xf32>
    %c0_69 = arith.constant 0 : index
    %c24 = arith.constant 24 : index
    %168 = vector.load %arg52[%c0_69, %c24] : memref<32x32xf32, #tpu.memory_space<vmem>>, vector<32x8xf32>
    tpu.vector_store %arg52[%c0_69, %c24], %167 {strides = array<i32>} : memref<32x32xf32, #tpu.memory_space<vmem>>, vector<32x8xf32>,
    %c0_70 = arith.constant 0 : index
    %c0_71 = arith.constant 0 : index
    %169 = vector.load %arg52[%c0_70, %c0_71] : memref<32x32xf32, #tpu.memory_space<vmem>>, vector<32x32xf32>
    %c0_72 = arith.constant 0 : index
    %c0_73 = arith.constant 0 : index
    %170 = vector.load %arg17[%c0_72, %c0_73] : memref<1x32xf32, #tpu.memory_space<vmem>>, vector<1x32xf32>
    %c0_74 = arith.constant 0 : index
    %c0_75 = arith.constant 0 : index
    %171 = vector.load %arg18[%c0_74, %c0_75] : memref<1x32xf32, #tpu.memory_space<vmem>>, vector<1x32xf32>
    %c0_76 = arith.constant 0 : index
    %c0_77 = arith.constant 0 : index
    %172 = vector.load %arg19[%c0_76, %c0_77] : memref<32x16xbf16, #tpu.memory_space<vmem>>, vector<32x16xbf16>
    %173 = vector.broadcast %170 : vector<1x32xf32> to vector<32x32xf32>
    %174 = arith.mulf %169, %173 : vector<32x32xf32>
    %175 = vector.broadcast %171 : vector<1x32xf32> to vector<32x32xf32>
    %176 = arith.addf %174, %175 : vector<32x32xf32>
    %cst_78 = arith.constant 0.000000e+00 : f32
    %177 = vector.broadcast %cst_78 : f32 to vector<32x32xf32>
    %178 = arith.maximumf %176, %177 : vector<32x32xf32>
    %179 = arith.truncf %178 : vector<32x32xf32> to vector<32x32xbf16>
    %cst_79 = arith.constant dense<0.000000e+00> : vector<32x16xf32>
    %180 = tpu.matmul %179, %172, %cst_79 {dimension_numbers = #tpu.dot_dimension_numbers<[1], [0], [0], [1], [0, 0, 1, 1], [], []>} : vector<32x32xbf16>, vector<32x16xbf16>, vector<32x16xf32> -> vector<32x16xf32>
    %181 = tpu.iota {dimensions = array<i32: 0>} : vector<16x32xi32>
    %182 = tpu.iota {dimensions = array<i32: 1>} : vector<16x32xi32>
    %c2_i32_80 = arith.constant 2 : i32
    %183 = vector.broadcast %c2_i32_80 : i32 to vector<16x32xi32>
    %184 = arith.muli %183, %181 : vector<16x32xi32>
    %185 = arith.cmpi eq, %182, %184 : vector<16x32xi32>
    %c2_i32_81 = arith.constant 2 : i32
    %186 = vector.broadcast %c2_i32_81 : i32 to vector<16x32xi32>
    %187 = arith.muli %186, %181 : vector<16x32xi32>
    %c1_i32_82 = arith.constant 1 : i32
    %188 = vector.broadcast %c1_i32_82 : i32 to vector<16x32xi32>
    %189 = arith.addi %187, %188 : vector<16x32xi32>
    %190 = arith.cmpi eq, %182, %189 : vector<16x32xi32>
    %191 = arith.ori %185, %190 : vector<16x32xi1>
    %cst_83 = arith.constant 5.000000e-01 : f32
    %cst_84 = arith.constant 0.000000e+00 : f32
    %192 = vector.broadcast %cst_83 : f32 to vector<16x32xf32>
    %193 = vector.broadcast %cst_84 : f32 to vector<16x32xf32>
    %194 = arith.select %191, %192, %193 : vector<16x32xi1>, vector<16x32xf32>
    %cst_85 = arith.constant dense<0.000000e+00> : vector<16x16xf32>
    %195 = tpu.matmul %194, %180, %cst_85 {dimension_numbers = #tpu.dot_dimension_numbers<[1], [0], [0], [1], [0, 0, 1, 1], [], []>} : vector<16x32xf32>, vector<32x16xf32>, vector<16x16xf32> -> vector<16x16xf32>
    %c0_86 = arith.constant 0 : index
    %c0_87 = arith.constant 0 : index
    %196 = vector.load %arg53[%c0_86, %c0_87] : memref<16x32xf32, #tpu.memory_space<vmem>>, vector<16x16xf32>
    tpu.vector_store %arg53[%c0_86, %c0_87], %195 {strides = array<i32>} : memref<16x32xf32, #tpu.memory_space<vmem>>, vector<16x16xf32>,
    %197 = tpu.iota {dimensions = array<i32: 0>} : vector<16x1xi32>
    %c0_i32_88 = arith.constant 0 : i32
    %198 = vector.broadcast %c0_i32_88 : i32 to vector<16x1xi32>
    %199 = arith.cmpi sge, %197, %198 : vector<16x1xi32>
    %c0_i32_89 = arith.constant 0 : i32
    %200 = vector.broadcast %c0_i32_89 : i32 to vector<16x1xi32>
    %201 = arith.cmpi sge, %197, %200 : vector<16x1xi32>
    %c0_i32_90 = arith.constant 0 : i32
    %202 = vector.broadcast %c0_i32_90 : i32 to vector<16x1xi32>
    %203 = arith.cmpi ne, %197, %202 : vector<16x1xi32>
    %204 = arith.andi %199, %203 : vector<16x1xi1>
    %c7_i32 = arith.constant 7 : i32
    %205 = vector.broadcast %c7_i32 : i32 to vector<16x1xi32>
    %206 = arith.cmpi ne, %197, %205 : vector<16x1xi32>
    %207 = arith.andi %201, %206 : vector<16x1xi1>
    %c8_i32 = arith.constant 8 : i32
    %208 = vector.broadcast %c8_i32 : i32 to vector<16x1xi32>
    %209 = arith.cmpi ne, %197, %208 : vector<16x1xi32>
    %210 = arith.andi %204, %209 : vector<16x1xi1>
    %c15_i32_91 = arith.constant 15 : i32
    %211 = vector.broadcast %c15_i32_91 : i32 to vector<16x1xi32>
    %212 = arith.cmpi ne, %197, %211 : vector<16x1xi32>
    %213 = arith.andi %207, %212 : vector<16x1xi1>
    %214 = tpu.iota {dimensions = array<i32: 0>} : vector<16x16xi32>
    %215 = tpu.iota {dimensions = array<i32: 1>} : vector<16x16xi32>
    %c1_i32_92 = arith.constant 1 : i32
    %216 = vector.broadcast %c1_i32_92 : i32 to vector<16x16xi32>
    %217 = arith.subi %214, %216 : vector<16x16xi32>
    %218 = arith.cmpi eq, %215, %217 : vector<16x16xi32>
    %219 = arith.extui %218 : vector<16x16xi1> to vector<16x16xi32>
    %220 = arith.sitofp %219 : vector<16x16xi32> to vector<16x16xf32>
    %c1_i32_93 = arith.constant 1 : i32
    %221 = vector.broadcast %c1_i32_93 : i32 to vector<16x16xi32>
    %222 = arith.addi %214, %221 : vector<16x16xi32>
    %223 = arith.cmpi eq, %215, %222 : vector<16x16xi32>
    %224 = arith.extui %223 : vector<16x16xi1> to vector<16x16xi32>
    %225 = arith.sitofp %224 : vector<16x16xi32> to vector<16x16xf32>
    %c0_94 = arith.constant 0 : index
    %c0_95 = arith.constant 0 : index
    %226 = vector.load %arg20[%c0_94, %c0_95] : memref<1x16xf32, #tpu.memory_space<vmem>>, vector<1x16xf32>
    %c0_96 = arith.constant 0 : index
    %c0_97 = arith.constant 0 : index
    %227 = vector.load %arg21[%c0_96, %c0_97] : memref<1x16xf32, #tpu.memory_space<vmem>>, vector<1x16xf32>
    %c0_98 = arith.constant 0 : index
    %c0_99 = arith.constant 0 : index
    %228 = vector.load %arg22[%c0_98, %c0_99] : memref<16x16xbf16, #tpu.memory_space<vmem>>, vector<16x16xbf16>
    %c0_100 = arith.constant 0 : index
    %c0_101 = arith.constant 0 : index
    %229 = vector.load %arg23[%c0_100, %c0_101] : memref<1x16xf32, #tpu.memory_space<vmem>>, vector<1x16xf32>
    %c0_102 = arith.constant 0 : index
    %c0_103 = arith.constant 0 : index
    %230 = vector.load %arg24[%c0_102, %c0_103] : memref<1x16xf32, #tpu.memory_space<vmem>>, vector<1x16xf32>
    %c0_104 = arith.constant 0 : index
    %c0_105 = arith.constant 0 : index
    %231 = vector.load %arg25[%c0_104, %c0_105] : memref<16x24xbf16, #tpu.memory_space<vmem>>, vector<16x24xbf16>
    %c0_106 = arith.constant 0 : index
    %c0_107 = arith.constant 0 : index
    %232 = vector.load %arg53[%c0_106, %c0_107] : memref<16x32xf32, #tpu.memory_space<vmem>>, vector<16x16xf32>
    %233 = vector.broadcast %226 : vector<1x16xf32> to vector<16x16xf32>
    %234 = arith.mulf %232, %233 : vector<16x16xf32>
    %235 = vector.broadcast %227 : vector<1x16xf32> to vector<16x16xf32>
    %236 = arith.addf %234, %235 : vector<16x16xf32>
    %cst_108 = arith.constant 0.000000e+00 : f32
    %237 = vector.broadcast %cst_108 : f32 to vector<16x16xf32>
    %238 = arith.maximumf %236, %237 : vector<16x16xf32>
    %239 = arith.truncf %238 : vector<16x16xf32> to vector<16x16xbf16>
    %cst_109 = arith.constant dense<0.000000e+00> : vector<16x16xf32>
    %240 = tpu.matmul %239, %228, %cst_109 {dimension_numbers = #tpu.dot_dimension_numbers<[1], [0], [0], [1], [0, 0, 1, 1], [], []>} : vector<16x16xbf16>, vector<16x16xbf16>, vector<16x16xf32> -> vector<16x16xf32>
    %241 = vector.broadcast %229 : vector<1x16xf32> to vector<16x16xf32>
    %242 = arith.mulf %240, %241 : vector<16x16xf32>
    %243 = vector.broadcast %230 : vector<1x16xf32> to vector<16x16xf32>
    %244 = arith.addf %242, %243 : vector<16x16xf32>
    %cst_110 = arith.constant 0.000000e+00 : f32
    %245 = vector.broadcast %cst_110 : f32 to vector<16x16xf32>
    %246 = arith.maximumf %244, %245 : vector<16x16xf32>
    %247 = arith.truncf %246 : vector<16x16xf32> to vector<16x16xbf16>
    %cst_111 = arith.constant dense<0.000000e+00> : vector<16x24xf32>
    %248 = tpu.matmul %247, %231, %cst_111 {dimension_numbers = #tpu.dot_dimension_numbers<[1], [0], [0], [1], [0, 0, 1, 1], [], []>} : vector<16x16xbf16>, vector<16x24xbf16>, vector<16x24xf32> -> vector<16x24xf32>
    %249 = vector.extract_strided_slice %248 {offsets = [0, 0], sizes = [16, 8], strides = [1, 1]} : vector<16x24xf32> to vector<16x8xf32>
    %250 = vector.extract_strided_slice %248 {offsets = [0, 8], sizes = [16, 8], strides = [1, 1]} : vector<16x24xf32> to vector<16x8xf32>
    %251 = vector.extract_strided_slice %248 {offsets = [0, 16], sizes = [16, 8], strides = [1, 1]} : vector<16x24xf32> to vector<16x8xf32>
    %cst_112 = arith.constant dense<0.000000e+00> : vector<16x8xf32>
    %252 = tpu.matmul %220, %249, %cst_112 {dimension_numbers = #tpu.dot_dimension_numbers<[1], [0], [0], [1], [0, 0, 1, 1], [], []>} : vector<16x16xf32>, vector<16x8xf32>, vector<16x8xf32> -> vector<16x8xf32>
    %cst_113 = arith.constant 0.000000e+00 : f32
    %253 = vector.shape_cast %210 : vector<16x1xi1> to vector<16x1xi1>
    %254 = vector.broadcast %253 : vector<16x1xi1> to vector<16x8xi1>
    %255 = vector.broadcast %cst_113 : f32 to vector<16x8xf32>
    %256 = arith.select %254, %252, %255 : vector<16x8xi1>, vector<16x8xf32>
    %257 = arith.addf %256, %250 : vector<16x8xf32>
    %cst_114 = arith.constant dense<0.000000e+00> : vector<16x8xf32>
    %258 = tpu.matmul %225, %251, %cst_114 {dimension_numbers = #tpu.dot_dimension_numbers<[1], [0], [0], [1], [0, 0, 1, 1], [], []>} : vector<16x16xf32>, vector<16x8xf32>, vector<16x8xf32> -> vector<16x8xf32>
    %cst_115 = arith.constant 0.000000e+00 : f32
    %259 = vector.shape_cast %213 : vector<16x1xi1> to vector<16x1xi1>
    %260 = vector.broadcast %259 : vector<16x1xi1> to vector<16x8xi1>
    %261 = vector.broadcast %cst_115 : f32 to vector<16x8xf32>
    %262 = arith.select %260, %258, %261 : vector<16x8xi1>, vector<16x8xf32>
    %263 = arith.addf %257, %262 : vector<16x8xf32>
    %c0_116 = arith.constant 0 : index
    %c16_117 = arith.constant 16 : index
    %264 = vector.load %arg53[%c0_116, %c16_117] : memref<16x32xf32, #tpu.memory_space<vmem>>, vector<16x8xf32>
    tpu.vector_store %arg53[%c0_116, %c16_117], %263 {strides = array<i32>} : memref<16x32xf32, #tpu.memory_space<vmem>>, vector<16x8xf32>,
    %c0_118 = arith.constant 0 : index
    %c0_119 = arith.constant 0 : index
    %265 = vector.load %arg26[%c0_118, %c0_119] : memref<1x24xf32, #tpu.memory_space<vmem>>, vector<1x24xf32>
    %c0_120 = arith.constant 0 : index
    %c0_121 = arith.constant 0 : index
    %266 = vector.load %arg27[%c0_120, %c0_121] : memref<1x24xf32, #tpu.memory_space<vmem>>, vector<1x24xf32>
    %c0_122 = arith.constant 0 : index
    %c0_123 = arith.constant 0 : index
    %267 = vector.load %arg28[%c0_122, %c0_123] : memref<24x16xbf16, #tpu.memory_space<vmem>>, vector<24x16xbf16>
    %c0_124 = arith.constant 0 : index
    %c0_125 = arith.constant 0 : index
    %268 = vector.load %arg29[%c0_124, %c0_125] : memref<1x16xf32, #tpu.memory_space<vmem>>, vector<1x16xf32>
    %c0_126 = arith.constant 0 : index
    %c0_127 = arith.constant 0 : index
    %269 = vector.load %arg30[%c0_126, %c0_127] : memref<1x16xf32, #tpu.memory_space<vmem>>, vector<1x16xf32>
    %c0_128 = arith.constant 0 : index
    %c0_129 = arith.constant 0 : index
    %270 = vector.load %arg31[%c0_128, %c0_129] : memref<16x24xbf16, #tpu.memory_space<vmem>>, vector<16x24xbf16>
    %c0_130 = arith.constant 0 : index
    %c0_131 = arith.constant 0 : index
    %271 = vector.load %arg53[%c0_130, %c0_131] : memref<16x32xf32, #tpu.memory_space<vmem>>, vector<16x24xf32>
    %272 = vector.broadcast %265 : vector<1x24xf32> to vector<16x24xf32>
    %273 = arith.mulf %271, %272 : vector<16x24xf32>
    %274 = vector.broadcast %266 : vector<1x24xf32> to vector<16x24xf32>
    %275 = arith.addf %273, %274 : vector<16x24xf32>
    %cst_132 = arith.constant 0.000000e+00 : f32
    %276 = vector.broadcast %cst_132 : f32 to vector<16x24xf32>
    %277 = arith.maximumf %275, %276 : vector<16x24xf32>
    %278 = arith.truncf %277 : vector<16x24xf32> to vector<16x24xbf16>
    %cst_133 = arith.constant dense<0.000000e+00> : vector<16x16xf32>
    %279 = tpu.matmul %278, %267, %cst_133 {dimension_numbers = #tpu.dot_dimension_numbers<[1], [0], [0], [1], [0, 0, 1, 1], [], []>} : vector<16x24xbf16>, vector<24x16xbf16>, vector<16x16xf32> -> vector<16x16xf32>
    %280 = vector.broadcast %268 : vector<1x16xf32> to vector<16x16xf32>
    %281 = arith.mulf %279, %280 : vector<16x16xf32>
    %282 = vector.broadcast %269 : vector<1x16xf32> to vector<16x16xf32>
    %283 = arith.addf %281, %282 : vector<16x16xf32>
    %cst_134 = arith.constant 0.000000e+00 : f32
    %284 = vector.broadcast %cst_134 : f32 to vector<16x16xf32>
    %285 = arith.maximumf %283, %284 : vector<16x16xf32>
    %286 = arith.truncf %285 : vector<16x16xf32> to vector<16x16xbf16>
    %cst_135 = arith.constant dense<0.000000e+00> : vector<16x24xf32>
    %287 = tpu.matmul %286, %270, %cst_135 {dimension_numbers = #tpu.dot_dimension_numbers<[1], [0], [0], [1], [0, 0, 1, 1], [], []>} : vector<16x16xbf16>, vector<16x24xbf16>, vector<16x24xf32> -> vector<16x24xf32>
    %288 = vector.extract_strided_slice %287 {offsets = [0, 0], sizes = [16, 8], strides = [1, 1]} : vector<16x24xf32> to vector<16x8xf32>
    %289 = vector.extract_strided_slice %287 {offsets = [0, 8], sizes = [16, 8], strides = [1, 1]} : vector<16x24xf32> to vector<16x8xf32>
    %290 = vector.extract_strided_slice %287 {offsets = [0, 16], sizes = [16, 8], strides = [1, 1]} : vector<16x24xf32> to vector<16x8xf32>
    %cst_136 = arith.constant dense<0.000000e+00> : vector<16x8xf32>
    %291 = tpu.matmul %220, %288, %cst_136 {dimension_numbers = #tpu.dot_dimension_numbers<[1], [0], [0], [1], [0, 0, 1, 1], [], []>} : vector<16x16xf32>, vector<16x8xf32>, vector<16x8xf32> -> vector<16x8xf32>
    %cst_137 = arith.constant 0.000000e+00 : f32
    %292 = vector.shape_cast %210 : vector<16x1xi1> to vector<16x1xi1>
    %293 = vector.broadcast %292 : vector<16x1xi1> to vector<16x8xi1>
    %294 = vector.broadcast %cst_137 : f32 to vector<16x8xf32>
    %295 = arith.select %293, %291, %294 : vector<16x8xi1>, vector<16x8xf32>
    %296 = arith.addf %295, %289 : vector<16x8xf32>
    %cst_138 = arith.constant dense<0.000000e+00> : vector<16x8xf32>
    %297 = tpu.matmul %225, %290, %cst_138 {dimension_numbers = #tpu.dot_dimension_numbers<[1], [0], [0], [1], [0, 0, 1, 1], [], []>} : vector<16x16xf32>, vector<16x8xf32>, vector<16x8xf32> -> vector<16x8xf32>
    %cst_139 = arith.constant 0.000000e+00 : f32
    %298 = vector.shape_cast %213 : vector<16x1xi1> to vector<16x1xi1>
    %299 = vector.broadcast %298 : vector<16x1xi1> to vector<16x8xi1>
    %300 = vector.broadcast %cst_139 : f32 to vector<16x8xf32>
    %301 = arith.select %299, %297, %300 : vector<16x8xi1>, vector<16x8xf32>
    %302 = arith.addf %296, %301 : vector<16x8xf32>
    %c0_140 = arith.constant 0 : index
    %c24_141 = arith.constant 24 : index
    %303 = vector.load %arg53[%c0_140, %c24_141] : memref<16x32xf32, #tpu.memory_space<vmem>>, vector<16x8xf32>
    tpu.vector_store %arg53[%c0_140, %c24_141], %302 {strides = array<i32>} : memref<16x32xf32, #tpu.memory_space<vmem>>, vector<16x8xf32>,
    %c0_142 = arith.constant 0 : index
    %c0_143 = arith.constant 0 : index
    %304 = vector.load %arg53[%c0_142, %c0_143] : memref<16x32xf32, #tpu.memory_space<vmem>>, vector<16x32xf32>
    %c0_144 = arith.constant 0 : index
    %c0_145 = arith.constant 0 : index
    %305 = vector.load %arg32[%c0_144, %c0_145] : memref<1x32xf32, #tpu.memory_space<vmem>>, vector<1x32xf32>
    %c0_146 = arith.constant 0 : index
    %c0_147 = arith.constant 0 : index
    %306 = vector.load %arg33[%c0_146, %c0_147] : memref<1x32xf32, #tpu.memory_space<vmem>>, vector<1x32xf32>
    %c0_148 = arith.constant 0 : index
    %c0_149 = arith.constant 0 : index
    %307 = vector.load %arg34[%c0_148, %c0_149] : memref<32x16xbf16, #tpu.memory_space<vmem>>, vector<32x16xbf16>
    %308 = vector.broadcast %305 : vector<1x32xf32> to vector<16x32xf32>
    %309 = arith.mulf %304, %308 : vector<16x32xf32>
    %310 = vector.broadcast %306 : vector<1x32xf32> to vector<16x32xf32>
    %311 = arith.addf %309, %310 : vector<16x32xf32>
    %cst_150 = arith.constant 0.000000e+00 : f32
    %312 = vector.broadcast %cst_150 : f32 to vector<16x32xf32>
    %313 = arith.maximumf %311, %312 : vector<16x32xf32>
    %314 = arith.truncf %313 : vector<16x32xf32> to vector<16x32xbf16>
    %cst_151 = arith.constant dense<0.000000e+00> : vector<16x16xf32>
    %315 = tpu.matmul %314, %307, %cst_151 {dimension_numbers = #tpu.dot_dimension_numbers<[1], [0], [0], [1], [0, 0, 1, 1], [], []>} : vector<16x32xbf16>, vector<32x16xbf16>, vector<16x16xf32> -> vector<16x16xf32>
    %316 = tpu.iota {dimensions = array<i32: 0>} : vector<8x16xi32>
    %317 = tpu.iota {dimensions = array<i32: 1>} : vector<8x16xi32>
    %c2_i32_152 = arith.constant 2 : i32
    %318 = vector.broadcast %c2_i32_152 : i32 to vector<8x16xi32>
    %319 = arith.muli %318, %316 : vector<8x16xi32>
    %320 = arith.cmpi eq, %317, %319 : vector<8x16xi32>
    %c2_i32_153 = arith.constant 2 : i32
    %321 = vector.broadcast %c2_i32_153 : i32 to vector<8x16xi32>
    %322 = arith.muli %321, %316 : vector<8x16xi32>
    %c1_i32_154 = arith.constant 1 : i32
    %323 = vector.broadcast %c1_i32_154 : i32 to vector<8x16xi32>
    %324 = arith.addi %322, %323 : vector<8x16xi32>
    %325 = arith.cmpi eq, %317, %324 : vector<8x16xi32>
    %326 = arith.ori %320, %325 : vector<8x16xi1>
    %cst_155 = arith.constant 5.000000e-01 : f32
    %cst_156 = arith.constant 0.000000e+00 : f32
    %327 = vector.broadcast %cst_155 : f32 to vector<8x16xf32>
    %328 = vector.broadcast %cst_156 : f32 to vector<8x16xf32>
    %329 = arith.select %326, %327, %328 : vector<8x16xi1>, vector<8x16xf32>
    %cst_157 = arith.constant dense<0.000000e+00> : vector<8x16xf32>
    %330 = tpu.matmul %329, %315, %cst_157 {dimension_numbers = #tpu.dot_dimension_numbers<[1], [0], [0], [1], [0, 0, 1, 1], [], []>} : vector<8x16xf32>, vector<16x16xf32>, vector<8x16xf32> -> vector<8x16xf32>
    %c0_158 = arith.constant 0 : index
    %c0_159 = arith.constant 0 : index
    %331 = vector.load %arg54[%c0_158, %c0_159] : memref<8x32xf32, #tpu.memory_space<vmem>>, vector<8x16xf32>
    tpu.vector_store %arg54[%c0_158, %c0_159], %330 {strides = array<i32>} : memref<8x32xf32, #tpu.memory_space<vmem>>, vector<8x16xf32>,
    %332 = tpu.iota {dimensions = array<i32: 0>} : vector<8x1xi32>
    %c0_i32_160 = arith.constant 0 : i32
    %333 = vector.broadcast %c0_i32_160 : i32 to vector<8x1xi32>
    %334 = arith.cmpi sge, %332, %333 : vector<8x1xi32>
    %c0_i32_161 = arith.constant 0 : i32
    %335 = vector.broadcast %c0_i32_161 : i32 to vector<8x1xi32>
    %336 = arith.cmpi sge, %332, %335 : vector<8x1xi32>
    %c0_i32_162 = arith.constant 0 : i32
    %337 = vector.broadcast %c0_i32_162 : i32 to vector<8x1xi32>
    %338 = arith.cmpi ne, %332, %337 : vector<8x1xi32>
    %339 = arith.andi %334, %338 : vector<8x1xi1>
    %c3_i32 = arith.constant 3 : i32
    %340 = vector.broadcast %c3_i32 : i32 to vector<8x1xi32>
    %341 = arith.cmpi ne, %332, %340 : vector<8x1xi32>
    %342 = arith.andi %336, %341 : vector<8x1xi1>
    %c4_i32 = arith.constant 4 : i32
    %343 = vector.broadcast %c4_i32 : i32 to vector<8x1xi32>
    %344 = arith.cmpi ne, %332, %343 : vector<8x1xi32>
    %345 = arith.andi %339, %344 : vector<8x1xi1>
    %c7_i32_163 = arith.constant 7 : i32
    %346 = vector.broadcast %c7_i32_163 : i32 to vector<8x1xi32>
    %347 = arith.cmpi ne, %332, %346 : vector<8x1xi32>
    %348 = arith.andi %342, %347 : vector<8x1xi1>
    %349 = tpu.iota {dimensions = array<i32: 0>} : vector<8x8xi32>
    %350 = tpu.iota {dimensions = array<i32: 1>} : vector<8x8xi32>
    %c1_i32_164 = arith.constant 1 : i32
    %351 = vector.broadcast %c1_i32_164 : i32 to vector<8x8xi32>
    %352 = arith.subi %349, %351 : vector<8x8xi32>
    %353 = arith.cmpi eq, %350, %352 : vector<8x8xi32>
    %354 = arith.extui %353 : vector<8x8xi1> to vector<8x8xi32>
    %355 = arith.sitofp %354 : vector<8x8xi32> to vector<8x8xf32>
    %c1_i32_165 = arith.constant 1 : i32
    %356 = vector.broadcast %c1_i32_165 : i32 to vector<8x8xi32>
    %357 = arith.addi %349, %356 : vector<8x8xi32>
    %358 = arith.cmpi eq, %350, %357 : vector<8x8xi32>
    %359 = arith.extui %358 : vector<8x8xi1> to vector<8x8xi32>
    %360 = arith.sitofp %359 : vector<8x8xi32> to vector<8x8xf32>
    %c0_166 = arith.constant 0 : index
    %c0_167 = arith.constant 0 : index
    %361 = vector.load %arg35[%c0_166, %c0_167] : memref<1x16xf32, #tpu.memory_space<vmem>>, vector<1x16xf32>
    %c0_168 = arith.constant 0 : index
    %c0_169 = arith.constant 0 : index
    %362 = vector.load %arg36[%c0_168, %c0_169] : memref<1x16xf32, #tpu.memory_space<vmem>>, vector<1x16xf32>
    %c0_170 = arith.constant 0 : index
    %c0_171 = arith.constant 0 : index
    %363 = vector.load %arg37[%c0_170, %c0_171] : memref<16x16xbf16, #tpu.memory_space<vmem>>, vector<16x16xbf16>
    %c0_172 = arith.constant 0 : index
    %c0_173 = arith.constant 0 : index
    %364 = vector.load %arg38[%c0_172, %c0_173] : memref<1x16xf32, #tpu.memory_space<vmem>>, vector<1x16xf32>
    %c0_174 = arith.constant 0 : index
    %c0_175 = arith.constant 0 : index
    %365 = vector.load %arg39[%c0_174, %c0_175] : memref<1x16xf32, #tpu.memory_space<vmem>>, vector<1x16xf32>
    %c0_176 = arith.constant 0 : index
    %c0_177 = arith.constant 0 : index
    %366 = vector.load %arg40[%c0_176, %c0_177] : memref<16x24xbf16, #tpu.memory_space<vmem>>, vector<16x24xbf16>
    %c0_178 = arith.constant 0 : index
    %c0_179 = arith.constant 0 : index
    %367 = vector.load %arg54[%c0_178, %c0_179] : memref<8x32xf32, #tpu.memory_space<vmem>>, vector<8x16xf32>
    %368 = vector.broadcast %361 : vector<1x16xf32> to vector<8x16xf32>
    %369 = arith.mulf %367, %368 : vector<8x16xf32>
    %370 = vector.broadcast %362 : vector<1x16xf32> to vector<8x16xf32>
    %371 = arith.addf %369, %370 : vector<8x16xf32>
    %cst_180 = arith.constant 0.000000e+00 : f32
    %372 = vector.broadcast %cst_180 : f32 to vector<8x16xf32>
    %373 = arith.maximumf %371, %372 : vector<8x16xf32>
    %374 = arith.truncf %373 : vector<8x16xf32> to vector<8x16xbf16>
    %cst_181 = arith.constant dense<0.000000e+00> : vector<8x16xf32>
    %375 = tpu.matmul %374, %363, %cst_181 {dimension_numbers = #tpu.dot_dimension_numbers<[1], [0], [0], [1], [0, 0, 1, 1], [], []>} : vector<8x16xbf16>, vector<16x16xbf16>, vector<8x16xf32> -> vector<8x16xf32>
    %376 = vector.broadcast %364 : vector<1x16xf32> to vector<8x16xf32>
    %377 = arith.mulf %375, %376 : vector<8x16xf32>
    %378 = vector.broadcast %365 : vector<1x16xf32> to vector<8x16xf32>
    %379 = arith.addf %377, %378 : vector<8x16xf32>
    %cst_182 = arith.constant 0.000000e+00 : f32
    %380 = vector.broadcast %cst_182 : f32 to vector<8x16xf32>
    %381 = arith.maximumf %379, %380 : vector<8x16xf32>
    %382 = arith.truncf %381 : vector<8x16xf32> to vector<8x16xbf16>
    %cst_183 = arith.constant dense<0.000000e+00> : vector<8x24xf32>
    %383 = tpu.matmul %382, %366, %cst_183 {dimension_numbers = #tpu.dot_dimension_numbers<[1], [0], [0], [1], [0, 0, 1, 1], [], []>} : vector<8x16xbf16>, vector<16x24xbf16>, vector<8x24xf32> -> vector<8x24xf32>
    %384 = vector.extract_strided_slice %383 {offsets = [0, 0], sizes = [8, 8], strides = [1, 1]} : vector<8x24xf32> to vector<8x8xf32>
    %385 = vector.extract_strided_slice %383 {offsets = [0, 8], sizes = [8, 8], strides = [1, 1]} : vector<8x24xf32> to vector<8x8xf32>
    %386 = vector.extract_strided_slice %383 {offsets = [0, 16], sizes = [8, 8], strides = [1, 1]} : vector<8x24xf32> to vector<8x8xf32>
    %cst_184 = arith.constant dense<0.000000e+00> : vector<8x8xf32>
    %387 = tpu.matmul %355, %384, %cst_184 {dimension_numbers = #tpu.dot_dimension_numbers<[1], [0], [0], [1], [0, 0, 1, 1], [], []>} : vector<8x8xf32>, vector<8x8xf32>, vector<8x8xf32> -> vector<8x8xf32>
    %cst_185 = arith.constant 0.000000e+00 : f32
    %388 = vector.shape_cast %345 : vector<8x1xi1> to vector<8x1xi1>
    %389 = vector.broadcast %388 : vector<8x1xi1> to vector<8x8xi1>
    %390 = vector.broadcast %cst_185 : f32 to vector<8x8xf32>
    %391 = arith.select %389, %387, %390 : vector<8x8xi1>, vector<8x8xf32>
    %392 = arith.addf %391, %385 : vector<8x8xf32>
    %cst_186 = arith.constant dense<0.000000e+00> : vector<8x8xf32>
    %393 = tpu.matmul %360, %386, %cst_186 {dimension_numbers = #tpu.dot_dimension_numbers<[1], [0], [0], [1], [0, 0, 1, 1], [], []>} : vector<8x8xf32>, vector<8x8xf32>, vector<8x8xf32> -> vector<8x8xf32>
    %cst_187 = arith.constant 0.000000e+00 : f32
    %394 = vector.shape_cast %348 : vector<8x1xi1> to vector<8x1xi1>
    %395 = vector.broadcast %394 : vector<8x1xi1> to vector<8x8xi1>
    %396 = vector.broadcast %cst_187 : f32 to vector<8x8xf32>
    %397 = arith.select %395, %393, %396 : vector<8x8xi1>, vector<8x8xf32>
    %398 = arith.addf %392, %397 : vector<8x8xf32>
    %c0_188 = arith.constant 0 : index
    %c16_189 = arith.constant 16 : index
    %399 = vector.load %arg54[%c0_188, %c16_189] : memref<8x32xf32, #tpu.memory_space<vmem>>, vector<8x8xf32>
    tpu.vector_store %arg54[%c0_188, %c16_189], %398 {strides = array<i32>} : memref<8x32xf32, #tpu.memory_space<vmem>>, vector<8x8xf32>,
    %c0_190 = arith.constant 0 : index
    %c0_191 = arith.constant 0 : index
    %400 = vector.load %arg41[%c0_190, %c0_191] : memref<1x24xf32, #tpu.memory_space<vmem>>, vector<1x24xf32>
    %c0_192 = arith.constant 0 : index
    %c0_193 = arith.constant 0 : index
    %401 = vector.load %arg42[%c0_192, %c0_193] : memref<1x24xf32, #tpu.memory_space<vmem>>, vector<1x24xf32>
    %c0_194 = arith.constant 0 : index
    %c0_195 = arith.constant 0 : index
    %402 = vector.load %arg43[%c0_194, %c0_195] : memref<24x16xbf16, #tpu.memory_space<vmem>>, vector<24x16xbf16>
    %c0_196 = arith.constant 0 : index
    %c0_197 = arith.constant 0 : index
    %403 = vector.load %arg44[%c0_196, %c0_197] : memref<1x16xf32, #tpu.memory_space<vmem>>, vector<1x16xf32>
    %c0_198 = arith.constant 0 : index
    %c0_199 = arith.constant 0 : index
    %404 = vector.load %arg45[%c0_198, %c0_199] : memref<1x16xf32, #tpu.memory_space<vmem>>, vector<1x16xf32>
    %c0_200 = arith.constant 0 : index
    %c0_201 = arith.constant 0 : index
    %405 = vector.load %arg46[%c0_200, %c0_201] : memref<16x24xbf16, #tpu.memory_space<vmem>>, vector<16x24xbf16>
    %c0_202 = arith.constant 0 : index
    %c0_203 = arith.constant 0 : index
    %406 = vector.load %arg54[%c0_202, %c0_203] : memref<8x32xf32, #tpu.memory_space<vmem>>, vector<8x24xf32>
    %407 = vector.broadcast %400 : vector<1x24xf32> to vector<8x24xf32>
    %408 = arith.mulf %406, %407 : vector<8x24xf32>
    %409 = vector.broadcast %401 : vector<1x24xf32> to vector<8x24xf32>
    %410 = arith.addf %408, %409 : vector<8x24xf32>
    %cst_204 = arith.constant 0.000000e+00 : f32
    %411 = vector.broadcast %cst_204 : f32 to vector<8x24xf32>
    %412 = arith.maximumf %410, %411 : vector<8x24xf32>
    %413 = arith.truncf %412 : vector<8x24xf32> to vector<8x24xbf16>
    %cst_205 = arith.constant dense<0.000000e+00> : vector<8x16xf32>
    %414 = tpu.matmul %413, %402, %cst_205 {dimension_numbers = #tpu.dot_dimension_numbers<[1], [0], [0], [1], [0, 0, 1, 1], [], []>} : vector<8x24xbf16>, vector<24x16xbf16>, vector<8x16xf32> -> vector<8x16xf32>
    %415 = vector.broadcast %403 : vector<1x16xf32> to vector<8x16xf32>
    %416 = arith.mulf %414, %415 : vector<8x16xf32>
    %417 = vector.broadcast %404 : vector<1x16xf32> to vector<8x16xf32>
    %418 = arith.addf %416, %417 : vector<8x16xf32>
    %cst_206 = arith.constant 0.000000e+00 : f32
    %419 = vector.broadcast %cst_206 : f32 to vector<8x16xf32>
    %420 = arith.maximumf %418, %419 : vector<8x16xf32>
    %421 = arith.truncf %420 : vector<8x16xf32> to vector<8x16xbf16>
    %cst_207 = arith.constant dense<0.000000e+00> : vector<8x24xf32>
    %422 = tpu.matmul %421, %405, %cst_207 {dimension_numbers = #tpu.dot_dimension_numbers<[1], [0], [0], [1], [0, 0, 1, 1], [], []>} : vector<8x16xbf16>, vector<16x24xbf16>, vector<8x24xf32> -> vector<8x24xf32>
    %423 = vector.extract_strided_slice %422 {offsets = [0, 0], sizes = [8, 8], strides = [1, 1]} : vector<8x24xf32> to vector<8x8xf32>
    %424 = vector.extract_strided_slice %422 {offsets = [0, 8], sizes = [8, 8], strides = [1, 1]} : vector<8x24xf32> to vector<8x8xf32>
    %425 = vector.extract_strided_slice %422 {offsets = [0, 16], sizes = [8, 8], strides = [1, 1]} : vector<8x24xf32> to vector<8x8xf32>
    %cst_208 = arith.constant dense<0.000000e+00> : vector<8x8xf32>
    %426 = tpu.matmul %355, %423, %cst_208 {dimension_numbers = #tpu.dot_dimension_numbers<[1], [0], [0], [1], [0, 0, 1, 1], [], []>} : vector<8x8xf32>, vector<8x8xf32>, vector<8x8xf32> -> vector<8x8xf32>
    %cst_209 = arith.constant 0.000000e+00 : f32
    %427 = vector.shape_cast %345 : vector<8x1xi1> to vector<8x1xi1>
    %428 = vector.broadcast %427 : vector<8x1xi1> to vector<8x8xi1>
    %429 = vector.broadcast %cst_209 : f32 to vector<8x8xf32>
    %430 = arith.select %428, %426, %429 : vector<8x8xi1>, vector<8x8xf32>
    %431 = arith.addf %430, %424 : vector<8x8xf32>
    %cst_210 = arith.constant dense<0.000000e+00> : vector<8x8xf32>
    %432 = tpu.matmul %360, %425, %cst_210 {dimension_numbers = #tpu.dot_dimension_numbers<[1], [0], [0], [1], [0, 0, 1, 1], [], []>} : vector<8x8xf32>, vector<8x8xf32>, vector<8x8xf32> -> vector<8x8xf32>
    %cst_211 = arith.constant 0.000000e+00 : f32
    %433 = vector.shape_cast %348 : vector<8x1xi1> to vector<8x1xi1>
    %434 = vector.broadcast %433 : vector<8x1xi1> to vector<8x8xi1>
    %435 = vector.broadcast %cst_211 : f32 to vector<8x8xf32>
    %436 = arith.select %434, %432, %435 : vector<8x8xi1>, vector<8x8xf32>
    %437 = arith.addf %431, %436 : vector<8x8xf32>
    %c0_212 = arith.constant 0 : index
    %c24_213 = arith.constant 24 : index
    %438 = vector.load %arg54[%c0_212, %c24_213] : memref<8x32xf32, #tpu.memory_space<vmem>>, vector<8x8xf32>
    tpu.vector_store %arg54[%c0_212, %c24_213], %437 {strides = array<i32>} : memref<8x32xf32, #tpu.memory_space<vmem>>, vector<8x8xf32>,
    %c0_214 = arith.constant 0 : index
    %c0_215 = arith.constant 0 : index
    %439 = vector.load %arg54[%c0_214, %c0_215] : memref<8x32xf32, #tpu.memory_space<vmem>>, vector<8x32xf32>
    %c0_216 = arith.constant 0 : index
    %c0_217 = arith.constant 0 : index
    %440 = vector.load %arg47[%c0_216, %c0_217] : memref<1x32xf32, #tpu.memory_space<vmem>>, vector<1x32xf32>
    %c0_218 = arith.constant 0 : index
    %c0_219 = arith.constant 0 : index
    %441 = vector.load %arg48[%c0_218, %c0_219] : memref<1x32xf32, #tpu.memory_space<vmem>>, vector<1x32xf32>
    %442 = vector.broadcast %440 : vector<1x32xf32> to vector<8x32xf32>
    %443 = arith.mulf %439, %442 : vector<8x32xf32>
    %444 = vector.broadcast %441 : vector<1x32xf32> to vector<8x32xf32>
    %445 = arith.addf %443, %444 : vector<8x32xf32>
    %cst_220 = arith.constant 0.000000e+00 : f32
    %446 = vector.broadcast %cst_220 : f32 to vector<8x32xf32>
    %447 = arith.maximumf %445, %446 : vector<8x32xf32>
    %448 = tpu.iota {dimensions = array<i32: 0>} : vector<2x8xi32>
    %449 = tpu.iota {dimensions = array<i32: 1>} : vector<2x8xi32>
    %c4_i32_221 = arith.constant 4 : i32
    %450 = vector.broadcast %c4_i32_221 : i32 to vector<2x8xi32>
    %451 = arith.muli %448, %450 : vector<2x8xi32>
    %452 = arith.cmpi sge, %449, %451 : vector<2x8xi32>
    %c1_i32_222 = arith.constant 1 : i32
    %453 = vector.broadcast %c1_i32_222 : i32 to vector<2x8xi32>
    %454 = arith.addi %448, %453 : vector<2x8xi32>
    %c4_i32_223 = arith.constant 4 : i32
    %455 = vector.broadcast %c4_i32_223 : i32 to vector<2x8xi32>
    %456 = arith.muli %454, %455 : vector<2x8xi32>
    %457 = arith.cmpi slt, %449, %456 : vector<2x8xi32>
    %458 = arith.andi %452, %457 : vector<2x8xi1>
    %cst_224 = arith.constant 2.500000e-01 : f32
    %cst_225 = arith.constant 0.000000e+00 : f32
    %459 = vector.broadcast %cst_224 : f32 to vector<2x8xf32>
    %460 = vector.broadcast %cst_225 : f32 to vector<2x8xf32>
    %461 = arith.select %458, %459, %460 : vector<2x8xi1>, vector<2x8xf32>
    %cst_226 = arith.constant dense<0.000000e+00> : vector<2x32xf32>
    %462 = tpu.matmul %461, %447, %cst_226 {dimension_numbers = #tpu.dot_dimension_numbers<[1], [0], [0], [1], [0, 0, 1, 1], [], []>} : vector<2x8xf32>, vector<8x32xf32>, vector<2x32xf32> -> vector<2x32xf32>
    %c0_227 = arith.constant 0 : index
    %c0_228 = arith.constant 0 : index
    %463 = vector.load %arg49[%c0_227, %c0_228] : memref<32x5xbf16, #tpu.memory_space<vmem>>, vector<32x5xbf16>
    %c0_229 = arith.constant 0 : index
    %c0_230 = arith.constant 0 : index
    %464 = vector.load %arg50[%c0_229, %c0_230] : memref<1x5xf32, #tpu.memory_space<vmem>>, vector<1x5xf32>
    %465 = arith.truncf %462 : vector<2x32xf32> to vector<2x32xbf16>
    %cst_231 = arith.constant dense<0.000000e+00> : vector<2x5xf32>
    %466 = tpu.matmul %465, %463, %cst_231 {dimension_numbers = #tpu.dot_dimension_numbers<[1], [0], [0], [1], [0, 0, 1, 1], [], []>} : vector<2x32xbf16>, vector<32x5xbf16>, vector<2x5xf32> -> vector<2x5xf32>
    %467 = vector.broadcast %464 : vector<1x5xf32> to vector<2x5xf32>
    %468 = arith.addf %466, %467 : vector<2x5xf32>
    %469 = math.absf %468 : vector<2x5xf32>
    %cst_232 = arith.constant 0.000000e+00 : f32
    %470 = vector.broadcast %cst_232 : f32 to vector<2x5xf32>
    %471 = arith.subf %470, %469 : vector<2x5xf32>
    %472 = math.exp %471 : vector<2x5xf32>
    %cst_233 = arith.constant 0.000000e+00 : f32
    %473 = vector.broadcast %cst_233 : f32 to vector<2x5xf32>
    %474 = arith.cmpf oge, %468, %473 : vector<2x5xf32>
    %cst_234 = arith.constant 1.000000e+00 : f32
    %475 = vector.broadcast %cst_234 : f32 to vector<2x5xf32>
    %476 = arith.addf %475, %472 : vector<2x5xf32>
    %cst_235 = arith.constant 1.000000e+00 : f32
    %477 = vector.broadcast %cst_235 : f32 to vector<2x5xf32>
    %478 = arith.divf %477, %476 : vector<2x5xf32>
    %cst_236 = arith.constant 1.000000e+00 : f32
    %479 = vector.broadcast %cst_236 : f32 to vector<2x5xf32>
    %480 = arith.addf %479, %472 : vector<2x5xf32>
    %481 = arith.divf %472, %480 : vector<2x5xf32>
    %482 = arith.select %474, %478, %481 : vector<2x5xi1>, vector<2x5xf32>
    %c0_237 = arith.constant 0 : index
    %c0_238 = arith.constant 0 : index
    %483 = vector.load %arg51[%c0_237, %c0_238] : memref<2x5xf32, #tpu.memory_space<vmem>>, vector<2x5xf32>
    tpu.vector_store %arg51[%c0_237, %c0_238], %482 {strides = array<i32>} : memref<2x5xf32, #tpu.memory_space<vmem>>, vector<2x5xf32>,
    return
  }
  func.func @transform_0(%arg0: i32) -> (i32, i32) {
    %c0_i32 = arith.constant 0 : i32
    %c0_i32_0 = arith.constant 0 : i32
    %c0_i32_1 = arith.constant 0 : i32
    return %c0_i32, %c0_i32_0 : i32, i32
  }
  func.func @transform_1(%arg0: i32) -> (i32, i32) {
    %c0_i32 = arith.constant 0 : i32
    %c0_i32_0 = arith.constant 0 : i32
    %c0_i32_1 = arith.constant 0 : i32
    return %c0_i32, %c0_i32_0 : i32, i32
  }
  func.func @transform_2(%arg0: i32) -> (i32, i32) {
    %c0_i32 = arith.constant 0 : i32
    %c0_i32_0 = arith.constant 0 : i32
    %c0_i32_1 = arith.constant 0 : i32
    return %c0_i32, %c0_i32_0 : i32, i32
  }
  func.func @transform_3(%arg0: i32) -> (i32, i32) {
    %c0_i32 = arith.constant 0 : i32
    %c0_i32_0 = arith.constant 0 : i32
    %c0_i32_1 = arith.constant 0 : i32
    return %c0_i32, %c0_i32_0 : i32, i32
  }
  func.func @transform_4(%arg0: i32) -> (i32, i32) {
    %c0_i32 = arith.constant 0 : i32
    %c0_i32_0 = arith.constant 0 : i32
    %c0_i32_1 = arith.constant 0 : i32
    return %c0_i32, %c0_i32_0 : i32, i32
  }
  func.func @transform_5(%arg0: i32) -> (i32, i32) {
    %c0_i32 = arith.constant 0 : i32
    %c0_i32_0 = arith.constant 0 : i32
    %c0_i32_1 = arith.constant 0 : i32
    return %c0_i32, %c0_i32_0 : i32, i32
  }
  func.func @transform_6(%arg0: i32) -> (i32, i32) {
    %c0_i32 = arith.constant 0 : i32
    %c0_i32_0 = arith.constant 0 : i32
    %c0_i32_1 = arith.constant 0 : i32
    return %c0_i32, %c0_i32_0 : i32, i32
  }
  func.func @transform_7(%arg0: i32) -> (i32, i32) {
    %c0_i32 = arith.constant 0 : i32
    %c0_i32_0 = arith.constant 0 : i32
    %c0_i32_1 = arith.constant 0 : i32
    return %c0_i32, %c0_i32_0 : i32, i32
  }
  func.func @transform_8(%arg0: i32) -> (i32, i32) {
    %c0_i32 = arith.constant 0 : i32
    %c0_i32_0 = arith.constant 0 : i32
    %c0_i32_1 = arith.constant 0 : i32
    return %c0_i32, %c0_i32_0 : i32, i32
  }
  func.func @transform_9(%arg0: i32) -> (i32, i32) {
    %c0_i32 = arith.constant 0 : i32
    %c0_i32_0 = arith.constant 0 : i32
    %c0_i32_1 = arith.constant 0 : i32
    return %c0_i32, %c0_i32_0 : i32, i32
  }
  func.func @transform_10(%arg0: i32) -> (i32, i32) {
    %c0_i32 = arith.constant 0 : i32
    %c0_i32_0 = arith.constant 0 : i32
    %c0_i32_1 = arith.constant 0 : i32
    return %c0_i32, %c0_i32_0 : i32, i32
  }
  func.func @transform_11(%arg0: i32) -> (i32, i32) {
    %c0_i32 = arith.constant 0 : i32
    %c0_i32_0 = arith.constant 0 : i32
    %c0_i32_1 = arith.constant 0 : i32
    return %c0_i32, %c0_i32_0 : i32, i32
  }
  func.func @transform_12(%arg0: i32) -> (i32, i32) {
    %c0_i32 = arith.constant 0 : i32
    %c0_i32_0 = arith.constant 0 : i32
    %c0_i32_1 = arith.constant 0 : i32
    return %c0_i32, %c0_i32_0 : i32, i32
  }
  func.func @transform_13(%arg0: i32) -> (i32, i32) {
    %c0_i32 = arith.constant 0 : i32
    %c0_i32_0 = arith.constant 0 : i32
    %c0_i32_1 = arith.constant 0 : i32
    return %c0_i32, %c0_i32_0 : i32, i32
  }
  func.func @transform_14(%arg0: i32) -> (i32, i32) {
    %c0_i32 = arith.constant 0 : i32
    %c0_i32_0 = arith.constant 0 : i32
    %c0_i32_1 = arith.constant 0 : i32
    return %c0_i32, %c0_i32_0 : i32, i32
  }
  func.func @transform_15(%arg0: i32) -> (i32, i32) {
    %c0_i32 = arith.constant 0 : i32
    %c0_i32_0 = arith.constant 0 : i32
    %c0_i32_1 = arith.constant 0 : i32
    return %c0_i32, %c0_i32_0 : i32, i32
  }
  func.func @transform_16(%arg0: i32) -> (i32, i32) {
    %c0_i32 = arith.constant 0 : i32
    %c0_i32_0 = arith.constant 0 : i32
    %c0_i32_1 = arith.constant 0 : i32
    return %c0_i32, %c0_i32_0 : i32, i32
  }
  func.func @transform_17(%arg0: i32) -> (i32, i32) {
    %c0_i32 = arith.constant 0 : i32
    %c0_i32_0 = arith.constant 0 : i32
    %c0_i32_1 = arith.constant 0 : i32
    return %c0_i32, %c0_i32_0 : i32, i32
  }
  func.func @transform_18(%arg0: i32) -> (i32, i32) {
    %c0_i32 = arith.constant 0 : i32
    %c0_i32_0 = arith.constant 0 : i32
    %c0_i32_1 = arith.constant 0 : i32
    return %c0_i32, %c0_i32_0 : i32, i32
  }
  func.func @transform_19(%arg0: i32) -> (i32, i32) {
    %c0_i32 = arith.constant 0 : i32
    %c0_i32_0 = arith.constant 0 : i32
    %c0_i32_1 = arith.constant 0 : i32
    return %c0_i32, %c0_i32_0 : i32, i32
  }
  func.func @transform_20(%arg0: i32) -> (i32, i32) {
    %c0_i32 = arith.constant 0 : i32
    %c0_i32_0 = arith.constant 0 : i32
    %c0_i32_1 = arith.constant 0 : i32
    return %c0_i32, %c0_i32_0 : i32, i32
  }
  func.func @transform_21(%arg0: i32) -> (i32, i32) {
    %c0_i32 = arith.constant 0 : i32
    %c0_i32_0 = arith.constant 0 : i32
    %c0_i32_1 = arith.constant 0 : i32
    return %c0_i32, %c0_i32_0 : i32, i32
  }
  func.func @transform_22(%arg0: i32) -> (i32, i32) {
    %c0_i32 = arith.constant 0 : i32
    %c0_i32_0 = arith.constant 0 : i32
    %c0_i32_1 = arith.constant 0 : i32
    return %c0_i32, %c0_i32_0 : i32, i32
  }
  func.func @transform_23(%arg0: i32) -> (i32, i32) {
    %c0_i32 = arith.constant 0 : i32
    %c0_i32_0 = arith.constant 0 : i32
    %c0_i32_1 = arith.constant 0 : i32
    return %c0_i32, %c0_i32_0 : i32, i32
  }
  func.func @transform_24(%arg0: i32) -> (i32, i32) {
    %c0_i32 = arith.constant 0 : i32
    %c0_i32_0 = arith.constant 0 : i32
    %c0_i32_1 = arith.constant 0 : i32
    return %c0_i32, %c0_i32_0 : i32, i32
  }
  func.func @transform_25(%arg0: i32) -> (i32, i32) {
    %c0_i32 = arith.constant 0 : i32
    %c0_i32_0 = arith.constant 0 : i32
    %c0_i32_1 = arith.constant 0 : i32
    return %c0_i32, %c0_i32_0 : i32, i32
  }
  func.func @transform_26(%arg0: i32) -> (i32, i32) {
    %c0_i32 = arith.constant 0 : i32
    %c0_i32_0 = arith.constant 0 : i32
    %c0_i32_1 = arith.constant 0 : i32
    return %c0_i32, %c0_i32_0 : i32, i32
  }
  func.func @transform_27(%arg0: i32) -> (i32, i32) {
    %c0_i32 = arith.constant 0 : i32
    %c0_i32_0 = arith.constant 0 : i32
    %c0_i32_1 = arith.constant 0 : i32
    return %c0_i32, %c0_i32_0 : i32, i32
  }
  func.func @transform_28(%arg0: i32) -> (i32, i32) {
    %c0_i32 = arith.constant 0 : i32
    %c0_i32_0 = arith.constant 0 : i32
    %c0_i32_1 = arith.constant 0 : i32
    return %c0_i32, %c0_i32_0 : i32, i32
  }
  func.func @transform_29(%arg0: i32) -> (i32, i32) {
    %c0_i32 = arith.constant 0 : i32
    %c0_i32_0 = arith.constant 0 : i32
    %c0_i32_1 = arith.constant 0 : i32
    return %c0_i32, %c0_i32_0 : i32, i32
  }
  func.func @transform_30(%arg0: i32) -> (i32, i32) {
    %c0_i32 = arith.constant 0 : i32
    %c0_i32_0 = arith.constant 0 : i32
    %c0_i32_1 = arith.constant 0 : i32
    return %c0_i32, %c0_i32_0 : i32, i32
  }
  func.func @transform_31(%arg0: i32) -> (i32, i32) {
    %c0_i32 = arith.constant 0 : i32
    %c0_i32_0 = arith.constant 0 : i32
    %c0_i32_1 = arith.constant 0 : i32
    return %c0_i32, %c0_i32_0 : i32, i32
  }
  func.func @transform_32(%arg0: i32) -> (i32, i32) {
    %c0_i32 = arith.constant 0 : i32
    %c0_i32_0 = arith.constant 0 : i32
    %c0_i32_1 = arith.constant 0 : i32
    return %c0_i32, %c0_i32_0 : i32, i32
  }
  func.func @transform_33(%arg0: i32) -> (i32, i32) {
    %c0_i32 = arith.constant 0 : i32
    %c0_i32_0 = arith.constant 0 : i32
    %c0_i32_1 = arith.constant 0 : i32
    return %c0_i32, %c0_i32_0 : i32, i32
  }
  func.func @transform_34(%arg0: i32) -> (i32, i32) {
    %c0_i32 = arith.constant 0 : i32
    %c0_i32_0 = arith.constant 0 : i32
    %c0_i32_1 = arith.constant 0 : i32
    return %c0_i32, %c0_i32_0 : i32, i32
  }
  func.func @transform_35(%arg0: i32) -> (i32, i32) {
    %c0_i32 = arith.constant 0 : i32
    %c0_i32_0 = arith.constant 0 : i32
    %c0_i32_1 = arith.constant 0 : i32
    return %c0_i32, %c0_i32_0 : i32, i32
  }
  func.func @transform_36(%arg0: i32) -> (i32, i32) {
    %c0_i32 = arith.constant 0 : i32
    %c0_i32_0 = arith.constant 0 : i32
    %c0_i32_1 = arith.constant 0 : i32
    return %c0_i32, %c0_i32_0 : i32, i32
  }
  func.func @transform_37(%arg0: i32) -> (i32, i32) {
    %c0_i32 = arith.constant 0 : i32
    %c0_i32_0 = arith.constant 0 : i32
    %c0_i32_1 = arith.constant 0 : i32
    return %c0_i32, %c0_i32_0 : i32, i32
  }
  func.func @transform_38(%arg0: i32) -> (i32, i32) {
    %c0_i32 = arith.constant 0 : i32
    %c0_i32_0 = arith.constant 0 : i32
    %c0_i32_1 = arith.constant 0 : i32
    return %c0_i32, %c0_i32_0 : i32, i32
  }
  func.func @transform_39(%arg0: i32) -> (i32, i32) {
    %c0_i32 = arith.constant 0 : i32
    %c0_i32_0 = arith.constant 0 : i32
    %c0_i32_1 = arith.constant 0 : i32
    return %c0_i32, %c0_i32_0 : i32, i32
  }
  func.func @transform_40(%arg0: i32) -> (i32, i32) {
    %c0_i32 = arith.constant 0 : i32
    %c0_i32_0 = arith.constant 0 : i32
    %c0_i32_1 = arith.constant 0 : i32
    return %c0_i32, %c0_i32_0 : i32, i32
  }
  func.func @transform_41(%arg0: i32) -> (i32, i32) {
    %c0_i32 = arith.constant 0 : i32
    %c0_i32_0 = arith.constant 0 : i32
    %c0_i32_1 = arith.constant 0 : i32
    return %c0_i32, %c0_i32_0 : i32, i32
  }
  func.func @transform_42(%arg0: i32) -> (i32, i32) {
    %c0_i32 = arith.constant 0 : i32
    %c0_i32_0 = arith.constant 0 : i32
    %c0_i32_1 = arith.constant 0 : i32
    return %c0_i32, %c0_i32_0 : i32, i32
  }
  func.func @transform_43(%arg0: i32) -> (i32, i32) {
    %c0_i32 = arith.constant 0 : i32
    %c0_i32_0 = arith.constant 0 : i32
    %c0_i32_1 = arith.constant 0 : i32
    return %c0_i32, %c0_i32_0 : i32, i32
  }
  func.func @transform_44(%arg0: i32) -> (i32, i32) {
    %c0_i32 = arith.constant 0 : i32
    %c0_i32_0 = arith.constant 0 : i32
    %c0_i32_1 = arith.constant 0 : i32
    return %c0_i32, %c0_i32_0 : i32, i32
  }
  func.func @transform_45(%arg0: i32) -> (i32, i32) {
    %c0_i32 = arith.constant 0 : i32
    %c0_i32_0 = arith.constant 0 : i32
    %c0_i32_1 = arith.constant 0 : i32
    return %c0_i32, %c0_i32_0 : i32, i32
  }
  func.func @transform_46(%arg0: i32) -> (i32, i32) {
    %c0_i32 = arith.constant 0 : i32
    %c0_i32_0 = arith.constant 0 : i32
    %c0_i32_1 = arith.constant 0 : i32
    return %c0_i32, %c0_i32_0 : i32, i32
  }
  func.func @transform_47(%arg0: i32) -> (i32, i32) {
    %c0_i32 = arith.constant 0 : i32
    %c0_i32_0 = arith.constant 0 : i32
    %c0_i32_1 = arith.constant 0 : i32
    return %c0_i32, %c0_i32_0 : i32, i32
  }
  func.func @transform_48(%arg0: i32) -> (i32, i32) {
    %c0_i32 = arith.constant 0 : i32
    %c0_i32_0 = arith.constant 0 : i32
    %c0_i32_1 = arith.constant 0 : i32
    return %c0_i32, %c0_i32_0 : i32, i32
  }
  func.func @transform_49(%arg0: i32) -> (i32, i32) {
    %c0_i32 = arith.constant 0 : i32
    %c0_i32_0 = arith.constant 0 : i32
    %c0_i32_1 = arith.constant 0 : i32
    return %c0_i32, %c0_i32_0 : i32, i32
  }
  func.func @transform_50(%arg0: i32) -> (i32, i32) {
    %c0_i32 = arith.constant 0 : i32
    %c0_i32_0 = arith.constant 0 : i32
    %c0_i32_1 = arith.constant 0 : i32
    return %c0_i32, %c0_i32_0 : i32, i32
  }
}

</mosaic_0001>

<bundles_post_ra>
// kernel: densenet1d_forward.1
= control target key start
LH: loop header
LB: loop body
LE: loop exit
PB: predicated region body
PF: predicated region fallthrough
CT: control target
= control target key end

     0   :  { %s4810_s6 = smov 1   ;;  %s4811_s10 = smov 2   ;;  %s5704_s0 = inlined_call_operand.smem [shape: u32[51], index: -1, kind: input, shape index: {}] }
   0x1   :  { %s4885_s5 = sld [smem:[%s5704_s0]]   ;;  %s4812_s14 = smov 3  }
   0x2   :  { %s4890_s9 = sld [smem:[%s5704_s0 + %s4810_s6]]   ;;  %s4813_s18 = smov 4  }
   0x3   :  { %s4895_s13 = sld [smem:[%s5704_s0 + %s4811_s10]]   ;;  %s4814_s22 = smov 5  }
   0x4   :  { %s4900_s17 = sld [smem:[%s5704_s0 + %s4812_s14]]   ;;  %s4815_s26 = smov 6  }
   0x5   :  { %s4905_s21 = sld [smem:[%s5704_s0 + %s4813_s18]]   ;;  %s4816_s30 = smov 7  }
   0x6   :  { %s4910_s25 = sld [smem:[%s5704_s0 + %s4814_s22]]   ;;  %s4817_s4 = smov 8  }
   0x7   :  { %s4915_s29 = sld [smem:[%s5704_s0 + %s4815_s26]]   ;;  %s4818_s10 = smov 9  }
   0x8   :  { %s4920_s3 = sld [smem:[%s5704_s0 + %s4816_s30]]   ;;  %s4819_s15 = smov 10  }
   0x9   :  { %s4925_s8 = sld [smem:[%s5704_s0 + %s4817_s4]]   ;;  %s4820_s20 = smov 11  }
   0xa   :  { %s4930_s14 = sld [smem:[%s5704_s0 + %s4818_s10]]   ;;  %s4821_s26 = smov 12  }
   0xb   :  { %s4935_s19 = sld [smem:[%s5704_s0 + %s4819_s15]]   ;;  %s4822_s1 = smov 13  }
   0xc   :  { %s4940_s24 = sld [smem:[%s5704_s0 + %s4820_s20]]   ;;  %s4823_s7 = smov 14  }
   0xd   :  { %s4945_s30 = sld [smem:[%s5704_s0 + %s4821_s26]]   ;;  %s4824_s15 = smov 15  }
   0xe   :  { %5710 = sst [smem:[#allocation27_spill]] %s4920_s3  ;;  %s4825_s22 = smov 16  }
   0xf   :  { %5711 = sst [smem:[#allocation28_spill]] %s4925_s8  ;;  %s4826_s28 = smov 17  }
  0x10   :  { %5712 = sst [smem:[#allocation29_spill]] %s4930_s14 }
  0x11   :  { %5713 = sst [smem:[#allocation30_spill]] %s4935_s19 }
  0x12   :  { %5714 = sst [smem:[#allocation31_spill]] %s4940_s24 }
  0x13   :  { %5715 = sst [smem:[#allocation32_spill]] %s4945_s30 }
  0x14   :  { %s4950_s6 = sld [smem:[%s5704_s0 + %s4822_s1]]  }
  0x15   :  { %s4955_s12 = sld [smem:[%s5704_s0 + %s4823_s7]]   ;;  %s4827_s7 = smov 18  }
  0x16   :  { %s4960_s20 = sld [smem:[%s5704_s0 + %s4824_s15]]   ;;  %s4828_s15 = smov 19  }
  0x17   :  { %s4965_s27 = sld [smem:[%s5704_s0 + %s4825_s22]]   ;;  %s4829_s22 = smov 20  }
  0x18   :  { %s4970_s4 = sld [smem:[%s5704_s0 + %s4826_s28]]   ;;  %s4830_s28 = smov 21  }
  0x1a   :  { %5716 = sst [smem:[#allocation33_spill]] %s4950_s6 }
  0x1b   :  { %5717 = sst [smem:[#allocation34_spill]] %s4955_s12 }
  0x1c   :  { %5718 = sst [smem:[#allocation35_spill]] %s4960_s20 }
  0x1d   :  { %5719 = sst [smem:[#allocation36_spill]] %s4965_s27 }
  0x1e   :  { %5720 = sst [smem:[#allocation37_spill]] %s4970_s4 }
  0x1f   :  { %s4975_s12 = sld [smem:[%s5704_s0 + %s4827_s7]]   ;;  %s4831_s7 = smov 22  }
  0x20   :  { %s4980_s6 = sld [smem:[%s5704_s0 + %s4828_s15]]   ;;  %s4832_s15 = smov 23  }
  0x21   :  { %s4985_s27 = sld [smem:[%s5704_s0 + %s4829_s22]]   ;;  %s4833_s22 = smov 24  }
  0x22   :  { %s4990_s4 = sld [smem:[%s5704_s0 + %s4830_s28]]   ;;  %s4834_s28 = smov 25  }
  0x25   :  { %5721 = sst [smem:[#allocation38_spill]] %s4975_s12 }
  0x26   :  { %5722 = sst [smem:[#allocation39_spill]] %s4980_s6 }
  0x27   :  { %5723 = sst [smem:[#allocation40_spill]] %s4985_s27 }
  0x28   :  { %5724 = sst [smem:[#allocation41_spill]] %s4990_s4 }
  0x29   :  { %s4995_s12 = sld [smem:[%s5704_s0 + %s4831_s7]]   ;;  %s4835_s7 = smov 26  }
  0x2a   :  { %s5000_s6 = sld [smem:[%s5704_s0 + %s4832_s15]]   ;;  %s4836_s15 = smov 27  }
  0x2b   :  { %s5005_s27 = sld [smem:[%s5704_s0 + %s4833_s22]]   ;;  %s4837_s22 = smov 28  }
  0x2c   :  { %s5010_s4 = sld [smem:[%s5704_s0 + %s4834_s28]]   ;;  %s4838_s28 = smov 29  }
  0x2f   :  { %5725 = sst [smem:[#allocation42_spill]] %s4995_s12 }
  0x30   :  { %5726 = sst [smem:[#allocation43_spill]] %s5000_s6 }
  0x31   :  { %5727 = sst [smem:[#allocation44_spill]] %s5005_s27 }
  0x32   :  { %5728 = sst [smem:[#allocation45_spill]] %s5010_s4 }
  0x33   :  { %s5015_s12 = sld [smem:[%s5704_s0 + %s4835_s7]]   ;;  %s4839_s7 = smov 30  }
  0x34   :  { %s5020_s6 = sld [smem:[%s5704_s0 + %s4836_s15]]   ;;  %s4840_s15 = smov 31  }
  0x35   :  { %s5025_s27 = sld [smem:[%s5704_s0 + %s4837_s22]]   ;;  %s4841_s22 = smov 32  }
  0x36   :  { %s5030_s4 = sld [smem:[%s5704_s0 + %s4838_s28]]   ;;  %s4842_s28 = smov 33  }
  0x39   :  { %5729 = sst [smem:[#allocation46_spill]] %s5015_s12 }
  0x3a   :  { %5730 = sst [smem:[#allocation47_spill]] %s5020_s6 }
  0x3b   :  { %5731 = sst [smem:[#allocation48_spill]] %s5025_s27 }
  0x3c   :  { %5732 = sst [smem:[#allocation49_spill]] %s5030_s4 }
  0x3d   :  { %s5035_s12 = sld [smem:[%s5704_s0 + %s4839_s7]]   ;;  %s4843_s7 = smov 34  }
  0x3e   :  { %s5040_s6 = sld [smem:[%s5704_s0 + %s4840_s15]]   ;;  %s4844_s15 = smov 35  }
  0x3f   :  { %s5045_s27 = sld [smem:[%s5704_s0 + %s4841_s22]]   ;;  %s4845_s22 = smov 36  }
  0x40   :  { %s5050_s4 = sld [smem:[%s5704_s0 + %s4842_s28]]   ;;  %s4846_s28 = smov 37  }
  0x43   :  { %5733 = sst [smem:[#allocation50_spill]] %s5035_s12 }
  0x44   :  { %5734 = sst [smem:[#allocation51_spill]] %s5040_s6 }
  0x45   :  { %5735 = sst [smem:[#allocation52_spill]] %s5045_s27 }
  0x46   :  { %5736 = sst [smem:[#allocation53_spill]] %s5050_s4 }
  0x47   :  { %s5055_s12 = sld [smem:[%s5704_s0 + %s4843_s7]]   ;;  %s4847_s7 = smov 38  }
  0x48   :  { %s5060_s6 = sld [smem:[%s5704_s0 + %s4844_s15]]   ;;  %s4848_s15 = smov 39  }
  0x49   :  { %s5065_s27 = sld [smem:[%s5704_s0 + %s4845_s22]]   ;;  %s4849_s22 = smov 40  }
  0x4a   :  { %s5070_s4 = sld [smem:[%s5704_s0 + %s4846_s28]]   ;;  %s4850_s28 = smov 41  }
  0x4b   :  { %s5090_s20 = sld [smem:[%s5704_s0 + %s4850_s28]]   ;;  %s4854_s28 = smov 45  }
  0x4c   :  { %s5110_s30 = sld [smem:[%s5704_s0 + %s4854_s28]]   ;;  %s4858_s28 = smov 49  }
  0x4d   :  { %5737 = sst [smem:[#allocation54_spill]] %s5055_s12 }
  0x4e   :  { %5738 = sst [smem:[#allocation55_spill]] %s5060_s6 }
  0x4f   :  { %5739 = sst [smem:[#allocation56_spill]] %s5065_s27 }
  0x50   :  { %s5075_s12 = sld [smem:[%s5704_s0 + %s4847_s7]]   ;;  %s4851_s7 = smov 42  }
  0x51   :  { %s5080_s6 = sld [smem:[%s5704_s0 + %s4848_s15]]   ;;  %s4852_s15 = smov 43  }
  0x52   :  { %s5085_s27 = sld [smem:[%s5704_s0 + %s4849_s22]]   ;;  %s4853_s22 = smov 44  }
  0x53   :  { %s5095_s24 = sld [smem:[%s5704_s0 + %s4851_s7]]   ;;  %s4855_s7 = smov 46  }
  0x54   :  { %s5105_s19 = sld [smem:[%s5704_s0 + %s4853_s22]]   ;;  %s4857_s22 = smov 48  }
  0x55   :  { %5742 = sst [smem:[#allocation59_spill]] %s5110_s30 }
  0x56   :  { %s5125_s3 = sld [smem:[%s5704_s0 + %s4857_s22]]  }
  0x57   :  { %5740 = sst [smem:[#allocation57_spill]] %s5080_s6 }
  0x58   :  { %s5100_s6 = sld [smem:[%s5704_s0 + %s4852_s15]]   ;;  %s4856_s15 = smov 47  }
  0x59   :  { %5741 = sst [smem:[#allocation58_spill]] %s5095_s24 }
  0x5a   :  { %s5115_s24 = sld [smem:[%s5704_s0 + %s4855_s7]]   ;;  %s4859_s7 = smov 50  }
  0x5b   :  { %s5120_s8 = sld [smem:[%s5704_s0 + %s4856_s15]]  }
  0x5c   :  { %s5130_s30 = sld [smem:[%s5704_s0 + %s4858_s28]]  }
  0x5d   :  { %s5135_s14 = sld [smem:[%s5704_s0 + %s4859_s7]]  }
  0x5e   :  { %106 = vsyncpa [#allocation6], 0 }
  0x5f   :  { %107 = vsyncpa [#allocation9], 0 }
  0x60   :  { %108 = vsyncpa [#allocation12], 0 }
  0x61   :  { %109 = vsyncpa [#allocation15], 0 }
  0x62   :  { %110 = vsyncpa [#allocation18], 0 }
  0x63   :  { %111 = vsyncpa [#allocation7], 0  ;;  %s4860_s15 = smov [#allocation8]   ;;  %s4861_s18 = smov [#allocation11]  }
  0x64   :  { %s202_s16 = sshll.u32 %s4860_s15, 4  ;;  %s224_s22 = sshll.u32 %s4861_s18, 4  ;;  %s203_s16 = int_to_ptr.vmem [resolvable:$true] %s202_s16  ;;  %s225_s22 = int_to_ptr.vmem [resolvable:$true] %s224_s22 }
  0x65   :  { %s4606_s23 = scalar_lea.vmem %s203_s16, 16  ;;  %s4610_s26 = scalar_lea.vmem %s203_s16, 32 }
  0x66   :  { %p4607_p0 = scmp.ne.s32.totalorder %s203_s16, %s4606_s23  ;;  %p4611_p1 = scmp.lt.s32.totalorder %s203_s16, %s203_s16 }
  0x67   :  { %p4612_p2 = scmp.lt.s32.totalorder %s4610_s26, %s4606_s23 }
  0x69   :  { %p4613_p3 = por %p4612_p2, %p4611_p1 }
  0x6b   :  { %p4614_p4 = pnand %p4613_p3, %p4607_p0 }
  0x6d   :  { %4617 = shalt.err (!%p4614_p4)
}
  0x6e   :  { %205 = dma.hbm_to_vmem [thread:$0]  %s5075_s12, 16, %s203_s16, [#allocation9]  }
  0x6f   :  { %s4626_s0 = scalar_lea.vmem %s225_s22, 16  ;;  %s4630_s28 = scalar_lea.vmem %s225_s22, 32 }
  0x70   :  { %p4627_p5 = scmp.ne.s32.totalorder %s225_s22, %s4626_s0  ;;  %p4631_p6 = scmp.lt.s32.totalorder %s225_s22, %s225_s22 }
  0x71   :  { %p4632_p7 = scmp.lt.s32.totalorder %s4630_s28, %s4626_s0 }
  0x73   :  { %p4633_p8 = por %p4632_p7, %p4631_p6 }
  0x75   :  { %p4634_p9 = pnand %p4633_p8, %p4627_p5 }
  0x77   :  { %4637 = shalt.err (!%p4634_p9)
}
  0x78   :  { %227 = dma.hbm_to_vmem [thread:$0]  %s5090_s20, 16, %s225_s22, [#allocation12]  }
  0x79   :  { %s4862_s1 = smov [#allocation14]   ;;  %s4863_s7 = smov [#allocation17]  }
  0x7a   :  { %s246_s2 = sshll.u32 %s4862_s1, 4  ;;  %s268_s10 = sshll.u32 %s4863_s7, 4  ;;  %s247_s2 = int_to_ptr.vmem [resolvable:$true] %s246_s2  ;;  %s269_s10 = int_to_ptr.vmem [resolvable:$true] %s268_s10 }
  0x7b   :  { %s4646_s11 = scalar_lea.vmem %s247_s2, 16  ;;  %s4650_s15 = scalar_lea.vmem %s247_s2, 32 }
  0x7c   :  { %p4647_p10 = scmp.ne.s32.totalorder %s247_s2, %s4646_s11  ;;  %p4651_p11 = scmp.lt.s32.totalorder %s247_s2, %s247_s2 }
  0x7d   :  { %p4652_p12 = scmp.lt.s32.totalorder %s4650_s15, %s4646_s11 }
  0x7f   :  { %p4653_p13 = por %p4652_p12, %p4651_p11 }
  0x81   :  { %p4654_p0 = pnand %p4653_p13, %p4647_p10 }
  0x83   :  { %4657 = shalt.err (!%p4654_p0)
}
  0x84   :  { %249 = dma.hbm_to_vmem [thread:$0]  %s5105_s19, 16, %s247_s2, [#allocation15]  }
  0x85   :  { %s4666_s12 = scalar_lea.vmem %s269_s10, 16  ;;  %s4670_s16 = scalar_lea.vmem %s269_s10, 32 }
  0x86   :  { %p4667_p1 = scmp.ne.s32.totalorder %s269_s10, %s4666_s12  ;;  %p4671_p2 = scmp.lt.s32.totalorder %s269_s10, %s269_s10 }
  0x87   :  { %p4672_p3 = scmp.lt.s32.totalorder %s4670_s16, %s4666_s12 }
  0x89   :  { %p4673_p4 = por %p4672_p3, %p4671_p2 }
  0x8b   :  { %p4674_p5 = pnand %p4673_p4, %p4667_p1 }
  0x8d   :  { %4677 = shalt.err (!%p4674_p5)
}
  0x8e   :  { %271 = dma.hbm_to_vmem [thread:$0]  %s5120_s8, 16, %s269_s10, [#allocation18]  }
  0x8f   :  { %s4864_s20 = smov [#allocation5]   ;;  %s4865_s22 = smov [#allocation10]  }
  0x90   :  { %s192_s18 = sshll.u32 %s4864_s20, 4  ;;  %s214_s23 = sshll.u32 %s4865_s22, 4  ;;  %s193_s18 = int_to_ptr.vmem [resolvable:$true] %s192_s18  ;;  %s215_s23 = int_to_ptr.vmem [resolvable:$true] %s214_s23 }
  0x91   :  { %s4686_s26 = scalar_lea.vmem %s193_s18, 16  ;;  %s4690_s0 = scalar_lea.vmem %s193_s18, 32 }
  0x92   :  { %p4687_p6 = scmp.ne.s32.totalorder %s193_s18, %s4686_s26  ;;  %p4691_p7 = scmp.lt.s32.totalorder %s193_s18, %s193_s18 }
  0x93   :  { %p4692_p8 = scmp.lt.s32.totalorder %s4690_s0, %s4686_s26 }
  0x95   :  { %p4693_p9 = por %p4692_p8, %p4691_p7 }
  0x97   :  { %p4694_p10 = pnand %p4693_p9, %p4687_p6 }
  0x99   :  { %4697 = shalt.err (!%p4694_p10)
}
  0x9a   :  { %195 = dma.hbm_to_vmem [thread:$0]  %s5070_s4, 16, %s193_s18, [#allocation6]  }
  0x9b   :  { %s4706_s19 = scalar_lea.vmem %s215_s23, 16  ;;  %s4710_s28 = scalar_lea.vmem %s215_s23, 32 }
  0x9c   :  { %p4707_p11 = scmp.ne.s32.totalorder %s215_s23, %s4706_s19  ;;  %p4711_p12 = scmp.lt.s32.totalorder %s215_s23, %s215_s23 }
  0x9d   :  { %p4712_p13 = scmp.lt.s32.totalorder %s4710_s28, %s4706_s19 }
  0x9f   :  { %p4713_p0 = por %p4712_p13, %p4711_p12 }
  0xa1   :  { %p4714_p1 = pnand %p4713_p0, %p4707_p11 }
  0xa3   :  { %4717 = shalt.err (!%p4714_p1)
}
  0xa4   :  { %217 = dma.hbm_to_vmem [thread:$0]  %s5085_s27, 16, %s215_s23, [#allocation9]  }
  0xa5   :  { %s4866_s8 = smov [#allocation13]   ;;  %s4867_s2 = smov [#allocation16]  }
  0xa6   :  { %s236_s1 = sshll.u32 %s4866_s8, 4  ;;  %s258_s7 = sshll.u32 %s4867_s2, 4  ;;  %s237_s1 = int_to_ptr.vmem [resolvable:$true] %s236_s1  ;;  %s259_s7 = int_to_ptr.vmem [resolvable:$true] %s258_s7 }
  0xa7   :  { %s4726_s10 = scalar_lea.vmem %s237_s1, 16  ;;  %s4730_s11 = scalar_lea.vmem %s237_s1, 32 }
  0xa8   :  { %p4727_p2 = scmp.ne.s32.totalorder %s237_s1, %s4726_s10  ;;  %p4731_p3 = scmp.lt.s32.totalorder %s237_s1, %s237_s1 }
  0xa9   :  { %p4732_p4 = scmp.lt.s32.totalorder %s4730_s11, %s4726_s10 }
  0xab   :  { %p4733_p5 = por %p4732_p4, %p4731_p3 }
  0xad   :  { %p4734_p6 = pnand %p4733_p5, %p4727_p2 }
  0xaf   :  { %4737 = shalt.err (!%p4734_p6)
}
  0xb0   :  { %239 = dma.hbm_to_vmem [thread:$0]  %s5100_s6, 16, %s237_s1, [#allocation12]  }
  0xb1   :  { %s4746_s4 = scalar_lea.vmem %s259_s7, 16  ;;  %s4750_s15 = scalar_lea.vmem %s259_s7, 32 }
  0xb2   :  { %p4747_p7 = scmp.ne.s32.totalorder %s259_s7, %s4746_s4  ;;  %p4751_p8 = scmp.lt.s32.totalorder %s259_s7, %s259_s7 }
  0xb3   :  { %p4752_p9 = scmp.lt.s32.totalorder %s4750_s15, %s4746_s4 }
  0xb5   :  { %p4753_p10 = por %p4752_p9, %p4751_p8 }
  0xb7   :  { %p4754_p11 = pnand %p4753_p10, %p4747_p7 }
  0xb9   :  { %4757 = shalt.err (!%p4754_p11)
}
  0xba   :  { %261 = dma.hbm_to_vmem [thread:$0]  %s5115_s24, 16, %s259_s7, [#allocation15]  }
  0xbb   :  { %s4868_s27 = smov [#allocation19]  }
  0xbc   :  { %s280_s12 = sshll.u32 %s4868_s27, 4  ;;  %s281_s12 = int_to_ptr.vmem [resolvable:$true] %s280_s12 }
  0xbd   :  { %s4766_s16 = scalar_lea.vmem %s281_s12, 16  ;;  %s4770_s20 = scalar_lea.vmem %s281_s12, 32 }
  0xbe   :  { %p4767_p12 = scmp.ne.s32.totalorder %s281_s12, %s4766_s16  ;;  %p4771_p13 = scmp.lt.s32.totalorder %s281_s12, %s281_s12 }
  0xbf   :  { %p4772_p0 = scmp.lt.s32.totalorder %s4770_s20, %s4766_s16 }
  0xc1   :  { %p4773_p1 = por %p4772_p0, %p4771_p13 }
  0xc3   :  { %p4774_p2 = pnand %p4773_p1, %p4767_p12 }
  0xc5   :  { %4777 = shalt.err (!%p4774_p2)
}
  0xc6   :  { %283 = dma.hbm_to_vmem [thread:$0]  %s5130_s30, 16, %s281_s12, [#allocation18]  }
  0xc7   :  { %4798 = dma.done.wait [#allocation6], 16  }
  0xc8   :  { %4799 = vsyncadd [#allocation6], 4294967280 }
  0xc9   :  { %4800 = dma.done.wait [#allocation9], 32  }
  0xca   :  { %4801 = vsyncadd [#allocation9], 4294967264 }
  0xcb   :  { %4802 = dma.done.wait [#allocation12], 32  }
  0xcc   :  { %4803 = vsyncadd [#allocation12], 4294967264 }
  0xcd   :  { %4804 = dma.done.wait [#allocation15], 32  }
  0xce   :  { %4805 = vsyncadd [#allocation15], 4294967264 }
  0xcf   :  { %4806 = dma.done.wait [#allocation18], 32  }
  0xd0   :  { %4807 = vsyncadd [#allocation18], 4294967264  ;;  %vm349_vm0 = vcmask 1041408   ;;  %vm350_vm1 = vcmask 1042432   ;;  %v4869_v0 = vmov 65535   ;;  %v312_v4 = vld [vmem:[%s4885_s5] sm:$0xff]  ;;  %v459_v18 = vlaneseq }
  0xd1   :  { %v351_v1 = vsel %vm349_vm0, 4294967295, %v4869_v0  ;;  %v4571_v3 = vld [vmem:[%s4890_s9 + $0x8] ss:$0 sps:$4 sm:$0x77]   ;;  %v4572_v6 = vld [vmem:[%s4890_s9] sm:$0xff]   ;;  %vm336_vm2 = vcmask 171008  }
  0xd2   :  { %v352_v2 = vsel %vm350_vm1, %v351_v1, 0  ;;  %v313_v7 = vld [vmem:[%s4885_s5 + $0x8] sm:$0xff]  ;;  %v314_v9 = vld [vmem:[%s4885_s5 + $0x10] sm:$0xff]  ;;  %v315_v10 = vld [vmem:[%s4885_s5 + $0x18] sm:$0xff]  ;;  %v5160_v19 = vshrl.u32 %v459_v18, 7  ;;  %v5162_v20 = vand.u32 127, %v459_v18 }
  0xd3   :  { %v354_v5 = vand.u32 %v4571_v3, %v352_v2  ;;  %v320_v8 = vpack.c.bf16 %v313_v7, %v312_v4  ;;  %v316_v11 = vld [vmem:[%s4885_s5 + $0x20] sm:$0xff]  ;;  %v317_v12 = vld [vmem:[%s4885_s5 + $0x28] sm:$0xff]  ;;  %v321_v13 = vpack.c.bf16 %v315_v10, %v314_v9  ;;  %v318_v15 = vld [vmem:[%s4885_s5 + $0x30] sm:$0xff]  ;;  %v4870_v23 = vmov 0.0   ;;  %s5748_s9 = sld [smem:[#allocation27_spill]]  ;;  %s4874_s26 = smov 24  }
  0xd4   :  { %v322_v14 = vpack.c.bf16 %v317_v12, %v316_v11  ;;  %v319_v16 = vld [vmem:[%s4885_s5 + $0x38] sm:$0xff]  ;;  %v3858_v21 = vadd.s32 4294967295, %v5160_v19  ;;  %v5166_v22 = vadd.s32 1, %v5160_v19  ;;  %vm606_vm5 = vcmask 523264   ;;  %v3856_v31 = vld [vmem:[%s4895_s13] ss:$0 sm:$0xff] }
  0xd5   :  { %4168 = vmatprep.subr.bf16.mxu0 %v354_v5  ;;  %4172 = vmatprep.mubr.msk.bf16.mxu0 %vm336_vm2, %v320_v8  ;;  %v323_v17 = vpack.c.bf16 %v319_v16, %v318_v15  ;;  %v3857_v36 = vld [vmem:[%s4900_s17] ss:$0 sm:$0xff]  ;;  %v5186_v45 = vadd.s32 8, %v5160_v19  ;;  %v5195_v49 = vadd.s32 16, %v5160_v19  ;;  %v5213_v59 = vadd.s32 24, %v5160_v19  ;;  %s5747_s5 = sld [smem:[#allocation29_spill]] }
  0xd6   :  { %4169 = vmatpush3.bf16.msra.mxu0 %v354_v5  ;;  %vm478_vm3 = vcmp.eq.s32.totalorder %v5162_v20, %v3858_v21  ;;  %vm510_vm4 = vcmp.eq.s32.totalorder %v5162_v20, %v5166_v22  ;;  %v5216_v60 = vadd.s32 32, %v5160_v19  ;;  %v465_v7 = vadd.s32 40, %v5160_v19  ;;  %s5749_s13 = sld [smem:[#allocation28_spill]]  ;;  %s4871_s17 = smov 112  }
  0xd7   :  { %4170 = vmatprep.subr.bf16.mxu0 %v4572_v6  ;;  %v5172_v24 = vsel %vm478_vm3, 1.0, %v4870_v23  ;;  %v5175_v25 = vsel %vm510_vm4, 1.0, %v4870_v23  ;;  %v3859_v53 = vadd.s32 4294967295, %v5186_v45  ;;  %v503_v57 = vadd.s32 1, %v5186_v45  ;;  %s5751_s24 = sld [smem:[#allocation30_spill]] }
  0xd8   :  { %4196 = vmatprep.mubr.msk.f32.mxu1 %vm606_vm5, %v5172_v24  ;;  %v3860_v58 = vadd.s32 4294967295, %v5195_v49  ;;  %v504_v63 = vadd.s32 1, %v5195_v49  ;;  %v3861_v2 = vadd.s32 4294967295, %v5213_v59  ;;  %v505_v3 = vadd.s32 1, %v5213_v59  ;;  %s5752_s30 = sld [smem:[#allocation31_spill]] }
  0xd9   :  { %vm479_vm6 = vcmp.eq.s32.totalorder %v5162_v20, %v3859_v53  ;;  %vm511_vm7 = vcmp.eq.s32.totalorder %v5162_v20, %v503_v57  ;;  %v3862_v4 = vadd.s32 4294967295, %v5216_v60  ;;  %v466_v8 = vadd.s32 48, %v5160_v19  ;;  %s5753_s6 = sld [smem:[#allocation35_spill]] }
  0xda   :  { %4171 = vmatpush3.bf16.msra.mxu0 %v4572_v6  ;;  %vm480_vm8 = vcmp.eq.s32.totalorder %v5162_v20, %v3860_v58  ;;  %vm512_vm9 = vcmp.eq.s32.totalorder %v5162_v20, %v504_v63  ;;  %v506_v6 = vadd.s32 1, %v5216_v60  ;;  %v5254_v10 = vsel %vm479_vm6, 1.0, %v4870_v23  ;;  %s5754_s18 = sld [smem:[#allocation33_spill]] }
  0xdb   :  { %v5259_v11 = vsel %vm511_vm7, 1.0, %v4870_v23  ;;  %v5264_v12 = vsel %vm480_vm8, 1.0, %v4870_v23  ;;  %vm481_vm10 = vcmp.eq.s32.totalorder %v5162_v20, %v3861_v2  ;;  %vm513_vm11 = vcmp.eq.s32.totalorder %v5162_v20, %v505_v3  ;;  %s5755_s22 = sld [smem:[#allocation34_spill]] }
  0xdc   :  { %vm482_vm12 = vcmp.eq.s32.totalorder %v5162_v20, %v3862_v4  ;;  %vm514_vm13 = vcmp.eq.s32.totalorder %v5162_v20, %v506_v6  ;;  %v507_v15 = vadd.s32 1, %v465_v7  ;;  %v5278_v16 = vadd.s32 56, %v5160_v19  ;;  %s5756_s23 = sld [smem:[#allocation38_spill]] }
  0xdd   :  { %4173 = vmatmul.mubr.msk.bf16.vlgmr.msra.gmra.mxu0 %vm336_vm2, %v321_v13  ;;  %v5269_v13 = vsel %vm512_vm9, 1.0, %v4870_v23  ;;  %v508_v18 = vadd.s32 1, %v466_v8  ;;  %v5293_v21 = vsel %vm481_vm10, 1.0, %v4870_v23  ;;  %vm578_vm8 = vcmp.ne.s32.totalorder %v5216_v60, 32  ;;  %s5757_s0 = sld [smem:[#allocation36_spill]] }
  0xde   :  { %4176 = vmatprep.mubr.msk.bf16.mxu0 %vm336_vm2, %v322_v14  ;;  %v3863_v14 = vadd.s32 4294967295, %v465_v7  ;;  %vm515_vm15 = vcmp.eq.s32.totalorder %v5162_v20, %v507_v15  ;;  %vm597_vm7 = vcmp.ne.s32.totalorder %v5278_v16, 63  ;;  %vm561_vm9 = vcmp.ne.s32.totalorder %v5213_v59, 31  ;;  %s5758_s19 = sld [smem:[#allocation37_spill]] }
  0xdf   :  { %vm516_vm1 = vcmp.eq.s32.totalorder %v5162_v20, %v508_v18  ;;  %vm542_vm10 = vcmp.ne.s32.totalorder %v5160_v19, 0  ;;  %s5759_s28 = sld [smem:[#allocation41_spill]] }
  0xe0   :  { %vm483_vm14 = vcmp.eq.s32.totalorder %v5162_v20, %v3863_v14  ;;  %s5760_s8 = sld [smem:[#allocation39_spill]] }
  0xe1   :  { %s5761_s1 = sld [smem:[#allocation40_spill]] }
  0xe2   :  { %s5762_s2 = sld [smem:[#allocation44_spill]] }
  0xe3   :  { %s5763_s7 = sld [smem:[#allocation42_spill]] }
  0xe4   :  { %s5764_s10 = sld [smem:[#allocation43_spill]] }
  0xe5   :  { %4177 = vmatmul.mubr.msk.bf16.gmra.mxu0 %vm336_vm2, %v323_v17  ;;  %v3864_v17 = vadd.s32 4294967295, %v466_v8  ;;  %s5765_s11 = sld [smem:[#allocation47_spill]] }
  0xe6   :  { %4224 = vmatprep.mubr.msk.f32.mxu0 %vm606_vm5, %v5175_v25  ;;  %s5766_s4 = sld [smem:[#allocation45_spill]] }
  0xe7   :  { %vm484_vm0 = vcmp.eq.s32.totalorder %v5162_v20, %v3864_v17  ;;  %s5767_s15 = sld [smem:[#allocation46_spill]] }
  0xe8   :  { %s5768_s27 = sld [smem:[#allocation50_spill]] }
  0xe9   :  { %s5769_s12 = sld [smem:[#allocation48_spill]] }
  0xea   :  { %s5770_s16 = sld [smem:[#allocation49_spill]] }
  0xeb   :  { %s5771_s20 = sld [smem:[#allocation53_spill]] }
 0x19d   :  { %v4174_v26 = vpop.f32.mrf.mxu0 }
 0x19e   :  { %v430_v46 = vmul.f32 %v4174_v26, %v3856_v31  ;;  %v5298_v26 = vsel %vm513_vm11, 1.0, %v4870_v23 }
 0x19f   :  { %v390_v27 = vpop.f32.mrf.mxu0 }
 0x1a0   :  { %v445_v54 = vadd.f32 %v3857_v36, %v430_v46  ;;  %v428_v55 = vmul.f32 %v3856_v31, %v390_v27  ;;  %v3870_v27 = vsel %vm482_vm12, 1.0, %v4870_v23 }
 0x1a1   :  { %v4175_v28 = vpop.f32.mrf.mxu0 }
 0x1a2   :  { %v431_v42 = vmul.f32 %v4175_v28, %v3856_v31  ;;  %v5225_v0 = vmax.f32 %v445_v54, 0.0  ;;  %v443_v1 = vadd.f32 %v3857_v36, %v428_v55  ;;  %v3878_v28 = vsel %vm514_vm13, 1.0, %v4870_v23 }
 0x1a3   :  { %v393_v29 = vpop.f32.mrf.mxu0  ;;  %vm1042_vm13 = vcmask 130048  }
 0x1a4   :  { %v446_v50 = vadd.f32 %v3857_v36, %v431_v42  ;;  %v429_v51 = vmul.f32 %v3856_v31, %v393_v29  ;;  %v5247_v9 = vmax.f32 %v443_v1, 0.0  ;;  %v3865_v29 = vadd.s32 4294967295, %v5278_v16 }
 0x1a5   :  { %v4178_v30 = vpop.f32.mrf.mxu0 }
 0x1a6   :  { %v434_v33 = vmul.f32 %v4178_v30, %v3856_v31  ;;  %v5218_v61 = vmax.f32 %v446_v50, 0.0  ;;  %v444_v62 = vadd.f32 %v3857_v36, %v429_v51  ;;  %v509_v30 = vadd.s32 1, %v5278_v16 }
 0x1a7   :  { %v406_v32 = vpop.f32.mrf.mxu0  ;;  %vm485_vm2 = vcmp.eq.s32.totalorder %v5162_v20, %v3865_v29  ;;  %v932_v29 = vmul.u32 2, %v5213_v59 }
 0x1a8   :  { %v449_v38 = vadd.f32 %v3857_v36, %v434_v33  ;;  %v432_v39 = vmul.f32 %v3856_v31, %v406_v32  ;;  %v5237_v5 = vmax.f32 %v444_v62, 0.0  ;;  %v3879_v32 = vsel %vm515_vm15, 1.0, %v4870_v23 }
 0x1a9   :  { %v4179_v34 = vpop.f32.mrf.mxu0  ;;  %v3872_v33 = vsel %vm484_vm0, 1.0, %v4870_v23  ;;  %vm517_vm3 = vcmp.eq.s32.totalorder %v5162_v20, %v509_v30  ;;  %vm936_vm12 = vcmp.eq.s32.totalorder %v5162_v20, %v932_v29  ;;  %vm1048_vm15 = vcmp.ne.s32.totalorder %v5186_v45, 15 }
 0x1aa   :  { %v435_v35 = vmul.f32 %v4179_v34, %v3856_v31  ;;  %v5188_v47 = vmax.f32 %v449_v38, 0.0  ;;  %v447_v48 = vadd.f32 %v3857_v36, %v432_v39  ;;  %v3880_v34 = vsel %vm516_vm1, 1.0, %v4870_v23 }
 0x1ab   :  { %v409_v37 = vpop.f32.mrf.mxu0  ;;  %v931_v38 = vmul.u32 2, %v5195_v49  ;;  %vm1057_vm0 = vcmp.ne.s32.totalorder %v5195_v49, 16  ;;  %vm1516_vm1 = vcmask 195712  }
 0x1ac   :  { %v450_v40 = vadd.f32 %v3857_v36, %v435_v35  ;;  %v433_v41 = vmul.f32 %v3856_v31, %v409_v37  ;;  %v5204_v56 = vmax.f32 %v447_v48, 0.0  ;;  %v3871_v31 = vsel %vm483_vm14, 1.0, %v4870_v23 }
 0x1ad   :  { %v3873_v35 = vsel %vm485_vm2, 1.0, %v4870_v23  ;;  %v929_v37 = vmul.u32 2, %v5160_v19  ;;  %vm935_vm6 = vcmp.eq.s32.totalorder %v5162_v20, %v931_v38  ;;  %vm1576_vm14 = vcmask 1043456  }
 0x1ae   :  { %v5183_v43 = vmax.f32 %v450_v40, 0.0  ;;  %v448_v44 = vadd.f32 %v3857_v36, %v433_v41  ;;  %v3881_v36 = vsel %vm517_vm3, 1.0, %v4870_v23  ;;  %v3900_v41 = vsel %vm935_vm6, 1.0, %v4870_v23 }
 0x1af   :  { %vm5335_vm4 = vcmp.eq.s32.totalorder %v5162_v20, %v929_v37  ;;  %vm1569_vm2 = vcmask 195584   ;;  %vm1946_vm3 = vcmask 261312  }
 0x1b0   :  { %4180 = vmatprep.subr.mxu1 %v5183_v43  ;;  %4208 = vmatprep.subr.mxu0 %v5183_v43  ;;  %v5197_v52 = vmax.f32 %v448_v44, 0.0  ;;  %v3898_v40 = vsel %vm5335_vm4, 1.0, %v4870_v23 }
 0x1b1   :  { %4181 = vmatpush3.msra.mxu1 %v5183_v43  ;;  %4209 = vmatpush3.msra.mxu0 %v5183_v43 }
 0x1b2   :  { %4182 = vmatprep.subr.mxu1 %v5188_v47  ;;  %4210 = vmatprep.subr.mxu0 %v5188_v47 }
 0x1b3   :  { %4183 = vmatpush3.msra.mxu1 %v5188_v47  ;;  %4211 = vmatpush3.msra.mxu0 %v5188_v47 }
 0x1b4   :  { %4184 = vmatprep.subr.mxu1 %v5197_v52  ;;  %4212 = vmatprep.subr.mxu0 %v5197_v52 }
 0x1b5   :  { %4185 = vmatpush3.msra.mxu1 %v5197_v52  ;;  %4213 = vmatpush3.msra.mxu0 %v5197_v52 }
 0x1b6   :  { %4186 = vmatprep.subr.mxu1 %v5204_v56  ;;  %4214 = vmatprep.subr.mxu0 %v5204_v56 }
 0x1b7   :  { %4187 = vmatpush3.msra.mxu1 %v5204_v56  ;;  %4215 = vmatpush3.msra.mxu0 %v5204_v56 }
 0x1b8   :  { %4188 = vmatprep.subr.mxu1 %v5218_v61  ;;  %4216 = vmatprep.subr.mxu0 %v5218_v61 }
 0x1b9   :  { %4189 = vmatpush3.msra.mxu1 %v5218_v61  ;;  %4217 = vmatpush3.msra.mxu0 %v5218_v61 }
 0x1ba   :  { %4190 = vmatprep.subr.mxu1 %v5225_v0  ;;  %4218 = vmatprep.subr.mxu0 %v5225_v0 }
 0x1bb   :  { %4191 = vmatpush3.msra.mxu1 %v5225_v0  ;;  %4219 = vmatpush3.msra.mxu0 %v5225_v0 }
 0x1bc   :  { %4192 = vmatprep.subr.mxu1 %v5237_v5  ;;  %4220 = vmatprep.subr.mxu0 %v5237_v5 }
 0x1bd   :  { %4193 = vmatpush3.msra.mxu1 %v5237_v5  ;;  %4221 = vmatpush3.msra.mxu0 %v5237_v5 }
 0x1be   :  { %4194 = vmatprep.subr.mxu1 %v5247_v9  ;;  %4222 = vmatprep.subr.mxu0 %v5247_v9 }
 0x1bf   :  { %4195 = vmatpush3.msra.mxu1 %v5247_v9  ;;  %4223 = vmatpush3.msra.mxu0 %v5247_v9 }
 0x1c0   :  { %4197 = vmatmul.mubr.msk.f32.vlgmr.msra.gmra.mxu1 %vm606_vm5, %v5254_v10  ;;  %4225 = vmatmul.mubr.msk.f32.vlgmr.msra.gmra.mxu0 %vm606_vm5, %v5259_v11 }
 0x1c1   :  { %4199 = vmatprep.mubr.msk.f32.mxu1 %vm606_vm5, %v5264_v12  ;;  %4227 = vmatprep.mubr.msk.f32.mxu0 %vm606_vm5, %v5269_v13 }
 0x1c4   :  { %4200 = vmatmul.mubr.msk.f32.gmra.mxu1 %vm606_vm5, %v5293_v21  ;;  %4228 = vmatmul.mubr.msk.f32.gmra.mxu0 %vm606_vm5, %v5298_v26 }
 0x1c5   :  { %4202 = vmatprep.mubr.msk.f32.mxu1 %vm606_vm5, %v3870_v27  ;;  %4230 = vmatprep.mubr.msk.f32.mxu0 %vm606_vm5, %v3878_v28  ;;  %v930_v28 = vmul.u32 2, %v5186_v45 }
 0x1c7   :  { %vm5369_vm11 = vcmp.eq.s32.totalorder %v5162_v20, %v930_v28 }
 0x1c8   :  { %4203 = vmatmul.mubr.msk.f32.gmra.mxu1 %vm606_vm5, %v3871_v31  ;;  %4231 = vmatmul.mubr.msk.f32.gmra.mxu0 %vm606_vm5, %v3879_v32  ;;  %v3899_v32 = vsel %vm5369_vm11, 1.0, %v4870_v23 }
 0x1c9   :  { %4205 = vmatprep.mubr.msk.f32.mxu1 %vm606_vm5, %v3872_v33  ;;  %4233 = vmatprep.mubr.msk.f32.mxu0 %vm606_vm5, %v3880_v34  ;;  %v3901_v33 = vsel %vm936_vm12, 1.0, %v4870_v23  ;;  %v4573_v34 = vld [vmem:[%s4915_s29] sm:$0xff]   ;;  %s4873_s29 = smov 16   ;;  %vm2145_vm12 = vcmp.ne.s32.totalorder %v5160_v19, 7 }
 0x1cc   :  { %4206 = vmatmul.mubr.msk.f32.gmra.mxu1 %vm606_vm5, %v3873_v35  ;;  %4234 = vmatmul.mubr.msk.f32.gmra.mxu0 %vm606_vm5, %v3881_v36 }
 0x1cd   :  { %4252 = vmatprep.mubr.msk.f32.mxu0 %vm606_vm5, %v3898_v40  ;;  %4255 = vmatprep.mubr.msk.f32.mxu1 %vm606_vm5, %v3900_v41  ;;  %v3906_v41 = vld [vmem:[%s4905_s21] ss:$0 sm:$0xff]  ;;  %s4872_s21 = smov 120  }
 0x280   :  { %v4198_v42 = vpop.f32.mrf.mxu1  ;;  %v4226_v44 = vpop.f32.mrf.mxu0 }
 0x282   :  { %v697_v46 = vpop.f32.mrf.mxu1  ;;  %v5346_v48 = vpop.f32.mrf.mxu0 }
 0x283   :  { %v752_v18 = vsel %vm542_vm10, %v697_v46, 0.0 }
 0x284   :  { %v4201_v50 = vpop.f32.mrf.mxu1  ;;  %v4229_v51 = vpop.f32.mrf.mxu0 }
 0x286   :  { %v707_v53 = vpop.f32.mrf.mxu1  ;;  %v860_v54 = vpop.f32.mrf.mxu0 }
 0x288   :  { %v4204_v55 = vpop.f32.mrf.mxu1  ;;  %v4232_v57 = vpop.f32.mrf.mxu0 }
 0x289   :  { %v918_v7 = vmax.f32 %v4204_v55, %v5197_v52  ;;  %v915_v52 = vmax.f32 %v707_v53, %v5225_v0  ;;  %v913_v0 = vmax.f32 %v752_v18, %v5247_v9 }
 0x28a   :  { %v717_v58 = vpop.f32.mrf.mxu1  ;;  %v870_v62 = vpop.f32.mrf.mxu0 }
 0x28b   :  { %v756_v4 = vsel %vm578_vm8, %v717_v58, 0.0  ;;  %v926_v60 = vmax.f32 %v918_v7, %v4232_v57  ;;  %v923_v30 = vmax.f32 %v915_v52, %v860_v54  ;;  %v921_v9 = vmax.f32 %v913_v0, %v5346_v48 }
 0x28c   :  { %v4207_v63 = vpop.f32.mrf.mxu1  ;;  %v4235_v1 = vpop.f32.mrf.mxu0  ;;  %v917_v17 = vmax.f32 %v756_v4, %v5204_v56 }
 0x28d   :  { %v920_v2 = vmax.f32 %v4207_v63, %v5183_v43  ;;  %v912_v3 = vsel %vm597_vm7, %v4235_v1, 0.0  ;;  %v916_v43 = vmax.f32 %v4201_v50, %v5218_v61  ;;  %v914_v61 = vmax.f32 %v4198_v42, %v5237_v5  ;;  %v3907_v42 = vld [vmem:[%s4910_s25] ss:$0 sm:$0xff]  ;;  %s5750_s25 = sld [smem:[#allocation32_spill]] }
 0x28e   :  { %v727_v6 = vpop.f32.mrf.mxu1  ;;  %v880_v15 = vpop.f32.mrf.mxu0  ;;  %v925_v56 = vmax.f32 %v917_v17, %v870_v62 }
 0x28f   :  { %v928_v8 = vmax.f32 %v920_v2, %v912_v3  ;;  %v919_v14 = vmax.f32 %v727_v6, %v5188_v47  ;;  %v908_v47 = vsel %vm561_vm9, %v4229_v51, 0.0  ;;  %v922_v31 = vmax.f32 %v914_v61, %v4226_v44 }
 0x290   :  { %v924_v27 = vmax.f32 %v916_v43, %v908_v47  ;;  %v3912_v47 = vld [vmem:[%s5749_s13] ss:$0 sm:$0xff]  ;;  %s5774_s13 = sld [smem:[#allocation56_spill]] }
 0x291   :  { %v927_v16 = vmax.f32 %v919_v14, %v880_v15  ;;  %4236 = vmatprep.subr.mxu0 %v928_v8  ;;  %4487 = vmatprep.subr.mxu1 %v928_v8  ;;  %v3911_v15 = vld [vmem:[%s5748_s9] ss:$0 sm:$0xff]  ;;  %s5773_s9 = sld [smem:[#allocation52_spill]] }
 0x292   :  { %4237 = vmatpush3.msra.mxu0 %v928_v8  ;;  %4495 = vmatpush3.msra.mxu1 %v928_v8  ;;  %v4574_v8 = vld [vmem:[%s5747_s5] sm:$0xff]   ;;  %s5772_s5 = sld [smem:[#allocation51_spill]] }
 0x293   :  { %4238 = vmatprep.subr.mxu0 %v927_v16  ;;  %4488 = vmatprep.subr.mxu1 %v927_v16 }
 0x294   :  { %4239 = vmatpush3.msra.mxu0 %v927_v16  ;;  %4496 = vmatpush3.msra.mxu1 %v927_v16 }
 0x295   :  { %4240 = vmatprep.subr.mxu0 %v926_v60  ;;  %4489 = vmatprep.subr.mxu1 %v926_v60 }
 0x296   :  { %4241 = vmatpush3.msra.mxu0 %v926_v60  ;;  %4497 = vmatpush3.msra.mxu1 %v926_v60 }
 0x297   :  { %4242 = vmatprep.subr.mxu0 %v925_v56  ;;  %4490 = vmatprep.subr.mxu1 %v925_v56 }
 0x298   :  { %4243 = vmatpush3.msra.mxu0 %v925_v56  ;;  %4498 = vmatpush3.msra.mxu1 %v925_v56 }
 0x299   :  { %4244 = vmatprep.subr.mxu0 %v924_v27  ;;  %4491 = vmatprep.subr.mxu1 %v924_v27 }
 0x29a   :  { %4245 = vmatpush3.msra.mxu0 %v924_v27  ;;  %4499 = vmatpush3.msra.mxu1 %v924_v27 }
 0x29b   :  { %4246 = vmatprep.subr.mxu0 %v923_v30  ;;  %4492 = vmatprep.subr.mxu1 %v923_v30 }
 0x29c   :  { %4247 = vmatpush3.msra.mxu0 %v923_v30  ;;  %4500 = vmatpush3.msra.mxu1 %v923_v30 }
 0x29d   :  { %4248 = vmatprep.subr.mxu0 %v922_v31  ;;  %4493 = vmatprep.subr.mxu1 %v922_v31 }
 0x29e   :  { %4249 = vmatpush3.msra.mxu0 %v922_v31  ;;  %4501 = vmatpush3.msra.mxu1 %v922_v31 }
 0x29f   :  { %4250 = vmatprep.subr.mxu0 %v921_v9  ;;  %4494 = vmatprep.subr.mxu1 %v921_v9 }
 0x2a0   :  { %4251 = vmatpush3.msra.mxu0 %v921_v9  ;;  %4502 = vmatpush3.msra.mxu1 %v921_v9 }
 0x2a1   :  { %4253 = vmatmul.mubr.msk.f32.vlgmr.msra.gmra.mxu0 %vm606_vm5, %v3899_v32  ;;  %4256 = vmatmul.mubr.msk.f32.vlgmr.msra.gmra.mxu1 %vm606_vm5, %v3901_v33  ;;  %vm1253_vm5 = vcmask 261120  }
 0x2a2   :  { %4258 = vmatprep.subr.bf16.mxu0 %v4573_v34  ;;  %4264 = vmatprep.subr.bf16.mxu1 %v4574_v8 }
 0x2a3   :  { %4259 = vmatpush3.bf16.msra.mxu0 %v4573_v34  ;;  %4265 = vmatpush3.bf16.msra.mxu1 %v4574_v8 }
 0x361   :  { %v4254_v35 = vpop.f32.mrf.mxu0  ;;  %v4257_v36 = vpop.f32.mrf.mxu1 }
 0x362   :  { %1044 = vst.msk [vmem:[#allocation2 + $0x8] sm:$0xff] %vm1042_vm13, %v4254_v35  ;;  %1046 = vst.msk [vmem:[#allocation2 + $0x18] sm:$0xff] %vm1042_vm13, %v4257_v36 }
 0x363   :  { %v1023_v38 = vpop.f32.mrf.mxu0  ;;  %v1033_v40 = vpop.f32.mrf.mxu1 }
 0x364   :  { %1043 = vst.msk [vmem:[#allocation2] sm:$0xff] %vm1042_vm13, %v1023_v38  ;;  %1045 = vst.msk [vmem:[#allocation2 + $0x10] sm:$0xff] %vm1042_vm13, %v1033_v40 }
 0x369   :  { %v1076_v44 = vld [vmem:[#allocation2 + $0x8] sm:$0xff]  ;;  %v1078_v46 = vld [vmem:[#allocation2 + $0x18] sm:$0xff] }
 0x36a   :  { %v1086_v48 = vmul.f32 %v3906_v41, %v1076_v44  ;;  %v1088_v50 = vmul.f32 %v3906_v41, %v1078_v46 }
 0x36b   :  { %v1075_v51 = vld [vmem:[#allocation2] sm:$0xff]  ;;  %v1077_v53 = vld [vmem:[#allocation2 + $0x10] sm:$0xff] }
 0x36c   :  { %v1085_v54 = vmul.f32 %v3906_v41, %v1075_v51  ;;  %v1096_v55 = vadd.f32 %v3907_v42, %v1086_v48  ;;  %v1087_v57 = vmul.f32 %v3906_v41, %v1077_v53  ;;  %v1098_v58 = vadd.f32 %v3907_v42, %v1088_v50  ;;  %v4575_v53 = vld [vmem:[%s5750_s25 + $0x8] ss:$0 sps:$4 sm:$0xff]  }
 0x36e   :  { %v1095_v62 = vadd.f32 %v3907_v42, %v1085_v54  ;;  %v1097_v63 = vadd.f32 %v3907_v42, %v1087_v57  ;;  %v1102_v1 = vmax.f32 %v1098_v58, 0.0  ;;  %v1100_v3 = vmax.f32 %v1096_v55, 0.0  ;;  %v4576_v54 = vld [vmem:[%s5750_s25] sm:$0xff]   ;;  %s5775_s25 = sld [smem:[#allocation54_spill]] }
 0x370   :  { %v1099_v2 = vmax.f32 %v1095_v62, 0.0  ;;  %v1101_v4 = vmax.f32 %v1097_v63, 0.0  ;;  %v1578_v62 = vsel %vm1576_vm14, %v4575_v53, 0 }
 0x372   :  { %v1103_v6 = vpack.c.bf16 %v1100_v3, %v1099_v2  ;;  %v1104_v7 = vpack.c.bf16 %v1102_v1, %v1101_v4 }
 0x374   :  { %4260 = vmatprep.mubr.msk.bf16.mxu0 %vm1042_vm13, %v1103_v6 }
 0x375   :  { %4261 = vmatmul.mubr.msk.bf16.vlgmr.msra.gmra.mxu0 %vm1042_vm13, %v1104_v7 }
 0x376   :  { %4278 = vmatprep.mubr.msk.f32.mxu0 %vm1253_vm5, %v5172_v24 }
 0x435   :  { %v4262_v14 = vpop.f32.mrf.mxu0 }
 0x436   :  { %v1174_v43 = vmul.f32 %v4262_v14, %v3911_v15 }
 0x437   :  { %v1151_v17 = vpop.f32.mrf.mxu0 }
 0x438   :  { %v1172_v16 = vmul.f32 %v3911_v15, %v1151_v17  ;;  %v1184_v29 = vadd.f32 %v3912_v47, %v1174_v43 }
 0x439   :  { %v4263_v60 = vpop.f32.mrf.mxu0 }
 0x43a   :  { %v1175_v52 = vmul.f32 %v4263_v60, %v3911_v15  ;;  %v1182_v18 = vadd.f32 %v3912_v47, %v1172_v16  ;;  %v1188_v32 = vmax.f32 %v1184_v29, 0.0 }
 0x43b   :  { %v1154_v56 = vpop.f32.mrf.mxu0 }
 0x43c   :  { %v1185_v61 = vadd.f32 %v3912_v47, %v1175_v52  ;;  %v1173_v27 = vmul.f32 %v3911_v15, %v1154_v56  ;;  %v1186_v31 = vmax.f32 %v1182_v18, 0.0 }
 0x43e   :  { %v1183_v0 = vadd.f32 %v3912_v47, %v1173_v27  ;;  %v1189_v30 = vmax.f32 %v1185_v61, 0.0 }
 0x440   :  { %v1187_v9 = vmax.f32 %v1183_v0, 0.0  ;;  %v1191_v34 = vpack.c.bf16 %v1189_v30, %v1188_v32  ;;  %v3924_v30 = vld [vmem:[%s5751_s24] ss:$0 sm:$0xff]  ;;  %s5776_s24 = sld [smem:[#allocation55_spill]] }
 0x442   :  { %v1190_v33 = vpack.c.bf16 %v1187_v9, %v1186_v31  ;;  %v3925_v31 = vld [vmem:[%s5752_s30] ss:$0 sm:$0xff]  ;;  %s5777_s30 = sld [smem:[#allocation57_spill]] }
 0x444   :  { %4266 = vmatprep.mubr.msk.bf16.mxu1 %vm1042_vm13, %v1190_v33 }
 0x445   :  { %4267 = vmatmul.mubr.msk.bf16.vlgmr.msra.gmra.mxu1 %vm1042_vm13, %v1191_v34 }
 0x446   :  { %4292 = vmatprep.mubr.msk.f32.mxu1 %vm1253_vm5, %v5175_v25 }
 0x505   :  { %v4268_v35 = vpop.f32.mrf.mxu1 }
 0x507   :  { %v1238_v36 = vpop.f32.mrf.mxu1 }
 0x509   :  { %v4269_v38 = vpop.f32.mrf.mxu1 }
 0x50a   :  { %1385 = vrot.lane.b32.xlu0 %v4269_v38, %s4871_s17  ;;  %4270 = vmatprep.subr.mxu0 %v4269_v38 }
 0x50b   :  { %v1241_v40 = vpop.f32.mrf.mxu1  ;;  %4271 = vmatpush3.msra.mxu0 %v4269_v38 }
 0x50c   :  { %4272 = vmatprep.subr.mxu0 %v4268_v35  ;;  %1381 = vrot.lane.b32.xlu1 %v1241_v40, %s4871_s17 }
 0x50d   :  { %4273 = vmatpush3.msra.mxu0 %v4268_v35 }
 0x50e   :  { %1383 = vrot.lane.b32.xlu0 %v4268_v35, %s4871_s17  ;;  %4274 = vmatprep.subr.mxu0 %v1241_v40 }
 0x50f   :  { %4275 = vmatpush3.msra.mxu0 %v1241_v40 }
 0x510   :  { %1379 = vrot.lane.b32.xlu1 %v1238_v36, %s4871_s17  ;;  %4276 = vmatprep.subr.mxu0 %v1238_v36 }
 0x511   :  { %4277 = vmatpush3.msra.mxu0 %v1238_v36 }
 0x512   :  { %1363 = vrot.lane.b32.xlu0 %v1238_v36, %s4872_s21  ;;  %4279 = vmatmul.mubr.msk.f32.vlgmr.msra.gmra.mxu0 %vm1253_vm5, %v5254_v10 }
 0x513   :  { %4281 = vmatprep.mubr.msk.f32.mxu0 %vm1253_vm5, %v5264_v12  ;;  %4503 = vmatprep.subr.msk.bf16.mxu0 %vm1576_vm14, %v4575_v53 }
 0x514   :  { %1365 = vrot.lane.b32.xlu1 %v1241_v40, %s4872_s21  ;;  %4299 = vmatpush3.bf16.msra.mxu0 %v1578_v62  ;;  %v3930_v62 = vld [vmem:[%s5754_s18] ss:$0 sm:$0xff]  ;;  %s5783_s18 = sld [smem:[#allocation59_spill]] }
 0x515   :  { %4300 = vmatprep.subr.bf16.mxu0 %v4576_v54 }
 0x516   :  { %1367 = vrot.lane.b32.xlu0 %v4268_v35, %s4872_s21  ;;  %4282 = vmatmul.mubr.msk.f32.gmra.mxu0 %vm1253_vm5, %v5293_v21 }
 0x518   :  { %1369 = vrot.lane.b32.xlu1 %v4269_v38, %s4872_s21  ;;  %4301 = vmatpush3.bf16.msra.mxu0 %v4576_v54 }
 0x57c   :  { %v1386_v41 = vpop.permute.xlu0 %1385 }
 0x57d   :  { %4284 = vmatprep.subr.mxu1 %v1386_v41 }
 0x57e   :  { %4285 = vmatpush3.msra.mxu1 %v1386_v41  ;;  %v1382_v42 = vpop.permute.xlu1 %1381 }
 0x580   :  { %v1384_v44 = vpop.permute.xlu0 %1383 }
 0x581   :  { %4286 = vmatprep.subr.mxu1 %v1384_v44 }
 0x582   :  { %4287 = vmatpush3.msra.mxu1 %v1384_v44  ;;  %v1380_v46 = vpop.permute.xlu1 %1379 }
 0x583   :  { %4288 = vmatprep.subr.mxu1 %v1382_v42 }
 0x584   :  { %4289 = vmatpush3.msra.mxu1 %v1382_v42  ;;  %v1364_v57 = vpop.permute.xlu0 %1363 }
 0x585   :  { %4290 = vmatprep.subr.mxu1 %v1380_v46 }
 0x586   :  { %4291 = vmatpush3.msra.mxu1 %v1380_v46  ;;  %v1366_v55 = vpop.permute.xlu1 %1365 }
 0x587   :  { %4293 = vmatmul.mubr.msk.f32.vlgmr.msra.gmra.mxu1 %vm1253_vm5, %v5259_v11 }
 0x588   :  { %4295 = vmatprep.mubr.msk.f32.mxu1 %vm1253_vm5, %v5269_v13  ;;  %v1368_v17 = vpop.permute.xlu0 %1367 }
 0x58a   :  { %v1370_v14 = vpop.permute.xlu1 %1369 }
 0x58b   :  { %4296 = vmatmul.mubr.msk.f32.gmra.mxu1 %vm1253_vm5, %v5298_v26 }
 0x5d2   :  { %v4280_v48 = vpop.f32.mrf.mxu0 }
 0x5d3   :  { %v1376_v1 = vadd.f32 %v4280_v48, %v1366_v55 }
 0x5d4   :  { %v1328_v50 = vpop.f32.mrf.mxu0 }
 0x5d5   :  { %v1355_v58 = vsel %vm542_vm10, %v1328_v50, 0.0 }
 0x5d6   :  { %v4283_v51 = vpop.f32.mrf.mxu0  ;;  %v1375_v3 = vadd.f32 %v1364_v57, %v1355_v58  ;;  %v4577_v57 = vld [vmem:[%s5753_s6] sm:$0xff]   ;;  %s5778_s6 = sld [smem:[#allocation58_spill]] }
 0x5d7   :  { %v1378_v16 = vadd.f32 %v4283_v51, %v1370_v14  ;;  %4306 = vmatprep.subr.bf16.mxu1 %v4577_v57 }
 0x5d8   :  { %v1338_v63 = vpop.f32.mrf.mxu0  ;;  %4307 = vmatpush3.bf16.msra.mxu1 %v4577_v57 }
 0x5d9   :  { %v1357_v6 = vsel %vm1057_vm0, %v1338_v63, 0.0 }
 0x5da   :  { %v1377_v60 = vadd.f32 %v1368_v17, %v1357_v6 }
 0x647   :  { %v4294_v2 = vpop.f32.mrf.mxu1 }
 0x648   :  { %v1493_v4 = vsel %vm1048_vm15, %v4294_v2, 0.0 }
 0x649   :  { %v1497_v7 = vadd.f32 %v1493_v4, %v1376_v1  ;;  %v1465_v8 = vpop.f32.mrf.mxu1  ;;  %v3931_v4 = vld [vmem:[%s5755_s22] ss:$0 sm:$0xff] }
 0x64a   :  { %v1496_v15 = vadd.f32 %v1465_v8, %v1375_v3 }
 0x64b   :  { %v4297_v43 = vpop.f32.mrf.mxu1  ;;  %1506 = vrot.lane.b32.xlu1 %v1497_v7, %s4873_s29 }
 0x64c   :  { %v1495_v47 = vsel %vm561_vm9, %v4297_v43, 0.0  ;;  %1504 = vrot.lane.b32.xlu0 %v1496_v15, %s4873_s29 }
 0x64d   :  { %v1499_v52 = vadd.f32 %v1495_v47, %v1378_v16  ;;  %v1475_v56 = vpop.f32.mrf.mxu1 }
 0x64e   :  { %v1498_v18 = vadd.f32 %v1475_v56, %v1377_v60 }
 0x64f   :  { %1510 = vrot.lane.b32.xlu1 %v1499_v52, %s4873_s29 }
 0x650   :  { %1508 = vrot.lane.b32.xlu0 %v1498_v18, %s4873_s29 }
 0x6bd   :  { %v1507_v61 = vpop.permute.xlu1 %1506 }
 0x6be   :  { %1518 = vst.msk [vmem:[#allocation2 + $0x8] sm:$0xff] %vm1516_vm1, %v1507_v61  ;;  %v1505_v27 = vpop.permute.xlu0 %1504 }
 0x6bf   :  { %1517 = vst.msk [vmem:[#allocation2] sm:$0xff] %vm1516_vm1, %v1505_v27 }
 0x6c1   :  { %v1511_v29 = vpop.permute.xlu1 %1510 }
 0x6c2   :  { %1520 = vst.msk [vmem:[#allocation2 + $0x18] sm:$0xff] %vm1516_vm1, %v1511_v29  ;;  %v1509_v0 = vpop.permute.xlu0 %1508 }
 0x6c3   :  { %1519 = vst.msk [vmem:[#allocation2 + $0x10] sm:$0xff] %vm1516_vm1, %v1509_v0 }
 0x6c5   :  { %v1531_v9 = vld [vmem:[#allocation2 + $0x8] sm:$0xff] }
 0x6c6   :  { %v1530_v32 = vld [vmem:[#allocation2] sm:$0xff]  ;;  %v1541_v33 = vmul.f32 %v3924_v30, %v1531_v9 }
 0x6c7   :  { %v1540_v34 = vmul.f32 %v3924_v30, %v1530_v32 }
 0x6c8   :  { %v1551_v35 = vadd.f32 %v3925_v31, %v1541_v33 }
 0x6c9   :  { %v1533_v36 = vld [vmem:[#allocation2 + $0x18] sm:$0xff]  ;;  %v1550_v38 = vadd.f32 %v3925_v31, %v1540_v34  ;;  %v4578_v34 = vld [vmem:[%s5756_s23 + $0x8] sm:$0xff]  }
 0x6ca   :  { %v1532_v40 = vld [vmem:[#allocation2 + $0x10] sm:$0xff]  ;;  %v1543_v41 = vmul.f32 %v3924_v30, %v1533_v36  ;;  %v1555_v42 = vmax.f32 %v1551_v35, 0.0  ;;  %v4579_v35 = vld [vmem:[%s5756_s23] sm:$0xff]  }
 0x6cb   :  { %v1542_v44 = vmul.f32 %v3924_v30, %v1532_v40  ;;  %v1554_v46 = vmax.f32 %v1550_v38, 0.0 }
 0x6cc   :  { %v1553_v48 = vadd.f32 %v3925_v31, %v1543_v41 }
 0x6cd   :  { %v1552_v50 = vadd.f32 %v3925_v31, %v1542_v44  ;;  %v1558_v51 = vpack.c.bf16 %v1555_v42, %v1554_v46 }
 0x6ce   :  { %v1557_v53 = vmax.f32 %v1553_v48, 0.0 }
 0x6cf   :  { %v1556_v54 = vmax.f32 %v1552_v50, 0.0  ;;  %4302 = vmatprep.mubr.msk.bf16.mxu0 %vm1569_vm2, %v1558_v51 }
 0x6d1   :  { %v1559_v55 = vpack.c.bf16 %v1557_v53, %v1556_v54 }
 0x6d3   :  { %4303 = vmatmul.mubr.msk.bf16.vlgmr.msra.gmra.mxu0 %vm1569_vm2, %v1559_v55 }
 0x6d4   :  { %4320 = vmatprep.mubr.msk.f32.mxu0 %vm1253_vm5, %v5172_v24 }
 0x793   :  { %v4304_v58 = vpop.f32.mrf.mxu0 }
 0x794   :  { %v1637_v2 = vmul.f32 %v4304_v58, %v3930_v62 }
 0x795   :  { %v1614_v63 = vpop.f32.mrf.mxu0 }
 0x796   :  { %v1635_v1 = vmul.f32 %v3930_v62, %v1614_v63  ;;  %v1647_v17 = vadd.f32 %v3931_v4, %v1637_v2 }
 0x797   :  { %v4305_v3 = vpop.f32.mrf.mxu0 }
 0x798   :  { %v1638_v6 = vmul.f32 %v4305_v3, %v3930_v62  ;;  %v1645_v8 = vadd.f32 %v3931_v4, %v1635_v1  ;;  %v1651_v52 = vmax.f32 %v1647_v17, 0.0 }
 0x799   :  { %v1617_v7 = vpop.f32.mrf.mxu0 }
 0x79a   :  { %v1648_v14 = vadd.f32 %v3931_v4, %v1638_v6  ;;  %v1636_v15 = vmul.f32 %v3930_v62, %v1617_v7  ;;  %v1649_v60 = vmax.f32 %v1645_v8, 0.0  ;;  %v3943_v6 = vld [vmem:[%s5757_s0] ss:$0 sm:$0xff] }
 0x79b   :  { %v3944_v8 = vld [vmem:[%s5758_s19] ss:$0 sm:$0xff] }
 0x79c   :  { %v1646_v16 = vadd.f32 %v3931_v4, %v1636_v15  ;;  %v1652_v43 = vmax.f32 %v1648_v14, 0.0 }
 0x79e   :  { %v1650_v47 = vmax.f32 %v1646_v16, 0.0  ;;  %v1654_v18 = vpack.c.bf16 %v1652_v43, %v1651_v52 }
 0x7a0   :  { %v1653_v56 = vpack.c.bf16 %v1650_v47, %v1649_v60 }
 0x7a2   :  { %4308 = vmatprep.mubr.msk.bf16.mxu1 %vm1042_vm13, %v1653_v56 }
 0x7a3   :  { %4309 = vmatmul.mubr.msk.bf16.vlgmr.msra.gmra.mxu1 %vm1042_vm13, %v1654_v18 }
 0x7a4   :  { %4334 = vmatprep.mubr.msk.f32.mxu1 %vm1253_vm5, %v5175_v25 }
 0x863   :  { %v4310_v61 = vpop.f32.mrf.mxu1 }
 0x864   :  { %1829 = vrot.lane.b32.xlu1 %v4310_v61, %s4871_s17 }
 0x865   :  { %v1701_v27 = vpop.f32.mrf.mxu1 }
 0x867   :  { %v4311_v29 = vpop.f32.mrf.mxu1 }
 0x868   :  { %1825 = vrot.lane.b32.xlu1 %v1701_v27, %s4871_s17  ;;  %1831 = vrot.lane.b32.xlu0 %v4311_v29, %s4871_s17 }
 0x869   :  { %4312 = vmatprep.subr.mxu0 %v4311_v29  ;;  %v1704_v0 = vpop.f32.mrf.mxu1 }
 0x86a   :  { %4313 = vmatpush3.msra.mxu0 %v4311_v29 }
 0x86b   :  { %4314 = vmatprep.subr.mxu0 %v4310_v61 }
 0x86c   :  { %4315 = vmatpush3.msra.mxu0 %v4310_v61  ;;  %1811 = vrot.lane.b32.xlu1 %v1704_v0, %s4872_s21 }
 0x86d   :  { %1827 = vrot.lane.b32.xlu0 %v1704_v0, %s4871_s17  ;;  %4316 = vmatprep.subr.mxu0 %v1704_v0 }
 0x86e   :  { %4317 = vmatpush3.msra.mxu0 %v1704_v0 }
 0x86f   :  { %4318 = vmatprep.subr.mxu0 %v1701_v27 }
 0x870   :  { %4319 = vmatpush3.msra.mxu0 %v1701_v27  ;;  %1815 = vrot.lane.b32.xlu1 %v4311_v29, %s4872_s21 }
 0x871   :  { %1809 = vrot.lane.b32.xlu0 %v1701_v27, %s4872_s21  ;;  %4321 = vmatmul.mubr.msk.f32.vlgmr.msra.gmra.mxu0 %vm1253_vm5, %v5254_v10 }
 0x872   :  { %4323 = vmatprep.mubr.msk.f32.mxu0 %vm1253_vm5, %v5264_v12  ;;  %4340 = vmatprep.subr.bf16.mxu0 %v4578_v34 }
 0x873   :  { %4341 = vmatpush3.bf16.msra.mxu0 %v4578_v34 }
 0x874   :  { %4342 = vmatprep.subr.bf16.mxu0 %v4579_v35 }
 0x875   :  { %1813 = vrot.lane.b32.xlu0 %v4310_v61, %s4872_s21  ;;  %4324 = vmatmul.mubr.msk.f32.gmra.mxu0 %vm1253_vm5, %v5293_v21 }
 0x877   :  { %4343 = vmatpush3.bf16.msra.mxu0 %v4579_v35 }
 0x878   :  { %4365 = vmatprep.subr.bf16.mxu0 %v4870_v23 }
 0x8d6   :  { %v1830_v31 = vpop.permute.xlu1 %1829 }
 0x8da   :  { %v1832_v30 = vpop.permute.xlu0 %1831  ;;  %v1826_v32 = vpop.permute.xlu1 %1825 }
 0x8db   :  { %4326 = vmatprep.subr.mxu1 %v1832_v30 }
 0x8dc   :  { %4327 = vmatpush3.msra.mxu1 %v1832_v30 }
 0x8dd   :  { %4328 = vmatprep.subr.mxu1 %v1830_v31 }
 0x8de   :  { %4329 = vmatpush3.msra.mxu1 %v1830_v31  ;;  %v1812_v36 = vpop.permute.xlu1 %1811 }
 0x8df   :  { %v1828_v9 = vpop.permute.xlu0 %1827 }
 0x8e0   :  { %4330 = vmatprep.subr.mxu1 %v1828_v9 }
 0x8e1   :  { %4331 = vmatpush3.msra.mxu1 %v1828_v9 }
 0x8e2   :  { %4332 = vmatprep.subr.mxu1 %v1826_v32  ;;  %v1816_v51 = vpop.permute.xlu1 %1815 }
 0x8e3   :  { %4333 = vmatpush3.msra.mxu1 %v1826_v32  ;;  %v1810_v38 = vpop.permute.xlu0 %1809  ;;  %v2054_v32 = vadd.s32 1, %v929_v37 }
 0x8e4   :  { %4335 = vmatmul.mubr.msk.f32.vlgmr.msra.gmra.mxu1 %vm1253_vm5, %v5259_v11 }
 0x8e5   :  { %4337 = vmatprep.mubr.msk.f32.mxu1 %vm1253_vm5, %v5269_v13  ;;  %vm2056_vm6 = vcmp.eq.s32.totalorder %v5162_v20, %v2054_v32 }
 0x8e6   :  { %vm2058_vm7 = vmor %vm5335_vm4, %vm2056_vm6 }
 0x8e7   :  { %v1814_v54 = vpop.permute.xlu0 %1813 }
 0x8e8   :  { %4338 = vmatmul.mubr.msk.f32.gmra.mxu1 %vm1253_vm5, %v5298_v26 }
 0x931   :  { %v4322_v12 = vpop.f32.mrf.mxu0 }
 0x932   :  { %v1822_v42 = vadd.f32 %v4322_v12, %v1812_v36  ;;  %v5503_v12 = vsel %vm2058_vm7, 0.5, %v4870_v23  ;;  %vm2994_vm7 = vcmp.ne.s32.totalorder %v5160_v19, 3 }
 0x933   :  { %v1782_v21 = vpop.f32.mrf.mxu0  ;;  %4356 = vmatprep.mubr.msk.f32.mxu1 %vm1253_vm5, %v5503_v12 }
 0x934   :  { %v1801_v40 = vsel %vm542_vm10, %v1782_v21, 0.0 }
 0x935   :  { %v4325_v33 = vpop.f32.mrf.mxu0  ;;  %v1821_v13 = vadd.f32 %v1810_v38, %v1801_v40  ;;  %v3951_v38 = vld [vmem:[%s5760_s8] ss:$0 sm:$0xff] }
 0x936   :  { %v1824_v55 = vadd.f32 %v4325_v33, %v1816_v51  ;;  %v2055_v33 = vadd.s32 1, %v930_v28  ;;  %v4580_v28 = vld [vmem:[%s5759_s28] sm:$0xff]  }
 0x937   :  { %v1792_v41 = vpop.f32.mrf.mxu0  ;;  %v3952_v40 = vld [vmem:[%s5761_s1] ss:$0 sm:$0xff] }
 0x938   :  { %v1803_v46 = vsel %vm1057_vm0, %v1792_v41, 0.0  ;;  %vm2057_vm8 = vcmp.eq.s32.totalorder %v5162_v20, %v2055_v33  ;;  %vm2996_vm0 = vcmp.ne.s32.totalorder %v5160_v19, 4 }
 0x939   :  { %v1823_v58 = vadd.f32 %v1814_v54, %v1803_v46  ;;  %vm2059_vm4 = vmor %vm5369_vm11, %vm2057_vm8  ;;  %v3955_v54 = vld [vmem:[%s5763_s7] ss:$0 sm:$0xff]  ;;  %vm2150_vm11 = vcmp.ne.s32.totalorder %v5186_v45, 8 }
 0x93a   :  { %v2061_v39 = vsel %vm2059_vm4, 0.5, %v4870_v23  ;;  %vm5647_vm6 = vmand %vm542_vm10, %vm2996_vm0 }
 0x93b   :  { %vm5658_vm8 = vmand %vm2994_vm7, %vm2145_vm12 }
 0x9a4   :  { %v4336_v44 = vpop.f32.mrf.mxu1 }
 0x9a5   :  { %v1923_v26 = vsel %vm1048_vm15, %v4336_v44, 0.0 }
 0x9a6   :  { %v1927_v48 = vadd.f32 %v1923_v26, %v1822_v42  ;;  %v1903_v50 = vpop.f32.mrf.mxu1 }
 0x9a7   :  { %v1926_v53 = vadd.f32 %v1903_v50, %v1821_v13 }
 0x9a8   :  { %v4339_v57 = vpop.f32.mrf.mxu1  ;;  %1936 = vrot.lane.b32.xlu1 %v1927_v48, %s4874_s26 }
 0x9a9   :  { %v1925_v62 = vsel %vm561_vm9, %v4339_v57, 0.0  ;;  %1934 = vrot.lane.b32.xlu0 %v1926_v53, %s4874_s26  ;;  %vm4875_vm9 = vmmov 0   ;;  %v4581_v53 = vld [vmem:[%s5762_s2] sm:$0xff]  }
 0x9aa   :  { %v1929_v49 = vadd.f32 %v1925_v62, %v1824_v55  ;;  %v1913_v63 = vpop.f32.mrf.mxu1 }
 0x9ab   :  { %v1928_v1 = vadd.f32 %v1913_v63, %v1823_v58  ;;  %v3956_v58 = vld [vmem:[%s5764_s10] ss:$0 sm:$0xff] }
 0x9ac   :  { %1940 = vrot.lane.b32.xlu1 %v1929_v49, %s4874_s26 }
 0x9ad   :  { %1938 = vrot.lane.b32.xlu0 %v1928_v1, %s4874_s26 }
 0xa1a   :  { %v1937_v2 = vpop.permute.xlu1 %1936 }
 0xa1b   :  { %1948 = vst.msk [vmem:[#allocation2 + $0x8] sm:$0xff] %vm1946_vm3, %v1937_v2  ;;  %v1935_v3 = vpop.permute.xlu0 %1934 }
 0xa1c   :  { %1947 = vst.msk [vmem:[#allocation2] sm:$0xff] %vm1946_vm3, %v1935_v3 }
 0xa1e   :  { %v1941_v59 = vpop.permute.xlu1 %1940 }
 0xa1f   :  { %1950 = vst.msk [vmem:[#allocation2 + $0x18] sm:$0xff] %vm1946_vm3, %v1941_v59  ;;  %v1939_v4 = vpop.permute.xlu0 %1938 }
 0xa20   :  { %1949 = vst.msk [vmem:[#allocation2 + $0x10] sm:$0xff] %vm1946_vm3, %v1939_v4 }
 0xa22   :  { %v1952_v7 = vld [vmem:[#allocation2 + $0x8] sm:$0xff] }
 0xa23   :  { %v1951_v14 = vld [vmem:[#allocation2] sm:$0xff]  ;;  %v1968_v15 = vmul.f32 %v3943_v6, %v1952_v7 }
 0xa24   :  { %v1967_v17 = vmul.f32 %v3943_v6, %v1951_v14 }
 0xa25   :  { %v1978_v16 = vadd.f32 %v3944_v8, %v1968_v15 }
 0xa26   :  { %v1954_v43 = vld [vmem:[#allocation2 + $0x18] sm:$0xff]  ;;  %v1977_v60 = vadd.f32 %v3944_v8, %v1967_v17 }
 0xa27   :  { %v1953_v47 = vld [vmem:[#allocation2 + $0x10] sm:$0xff]  ;;  %v1970_v52 = vmul.f32 %v3943_v6, %v1954_v43  ;;  %v1982_v56 = vmax.f32 %v1978_v16, 0.0 }
 0xa28   :  { %v1969_v18 = vmul.f32 %v3943_v6, %v1953_v47  ;;  %v1981_v61 = vmax.f32 %v1977_v60, 0.0  ;;  %v4582_v60 = vld [vmem:[%s5765_s11 + $0x8] ss:$0 sps:$4 sm:$0xff]  }
 0xa29   :  { %v1980_v27 = vadd.f32 %v3944_v8, %v1970_v52  ;;  %v2544_v47 = vsel %vm1576_vm14, %v4582_v60, 0 }
 0xa2a   :  { %v1979_v29 = vadd.f32 %v3944_v8, %v1969_v18  ;;  %v1985_v0 = vpack.c.bf16 %v1982_v56, %v1981_v61  ;;  %v4583_v56 = vld [vmem:[%s5765_s11] sm:$0xff]  }
 0xa2b   :  { %v1984_v30 = vmax.f32 %v1980_v27, 0.0 }
 0xa2c   :  { %v1983_v31 = vmax.f32 %v1979_v29, 0.0  ;;  %4344 = vmatprep.mubr.msk.bf16.mxu0 %vm1253_vm5, %v1985_v0 }
 0xa2e   :  { %v1986_v9 = vpack.c.bf16 %v1984_v30, %v1983_v31 }
 0xa30   :  { %4345 = vmatmul.mubr.msk.bf16.vlgmr.msra.gmra.mxu0 %vm1253_vm5, %v1986_v9 }
 0xa31   :  { %4367 = vmatprep.mubr.msk.bf16.mxu0 %vm4875_vm9, %v4870_v23  ;;  %4366 = vmatpush3.bf16.msra.mxu0 %v4581_v53  ;;  %v3969_v53 = vld [vmem:[%s5770_s16] ss:$0 sm:$0xff] }
 0xaf0   :  { %v4346_v21 = vpop.f32.mrf.mxu0 }
 0xaf2   :  { %v2039_v34 = vpop.f32.mrf.mxu0 }
 0xaf4   :  { %v4347_v35 = vpop.f32.mrf.mxu0 }
 0xaf5   :  { %4348 = vmatprep.subr.mxu1 %v4347_v35 }
 0xaf6   :  { %4349 = vmatpush3.msra.mxu1 %v4347_v35  ;;  %v2042_v37 = vpop.f32.mrf.mxu0 }
 0xaf7   :  { %4350 = vmatprep.subr.mxu1 %v4346_v21 }
 0xaf8   :  { %4351 = vmatpush3.msra.mxu1 %v4346_v21 }
 0xaf9   :  { %4352 = vmatprep.subr.mxu1 %v2042_v37 }
 0xafa   :  { %4353 = vmatpush3.msra.mxu1 %v2042_v37 }
 0xafb   :  { %4354 = vmatprep.subr.mxu1 %v2039_v34 }
 0xafc   :  { %4355 = vmatpush3.msra.mxu1 %v2039_v34 }
 0xafd   :  { %4357 = vmatmul.mubr.msk.f32.vlgmr.msra.gmra.mxu1 %vm1253_vm5, %v2061_v39  ;;  %4359 = vmatprep.subr.bf16.mxu1 %v4870_v23  ;;  %v3963_v39 = vld [vmem:[%s5766_s4] ss:$0 sm:$0xff] }
 0xafe   :  { %4361 = vmatprep.mubr.msk.bf16.mxu1 %vm4875_vm9, %v4870_v23  ;;  %4360 = vmatpush3.bf16.msra.mxu1 %v4580_v28  ;;  %v3964_v28 = vld [vmem:[%s5767_s15] ss:$0 sm:$0xff] }
 0xbbd   :  { %v4358_v5 = vpop.f32.mrf.mxu1 }
 0xbbe   :  { %2144 = vst.msk [vmem:[#allocation3 + $0x8] sm:$0xff] %vm1042_vm13, %v4358_v5 }
 0xbbf   :  { %v2134_v36 = vpop.f32.mrf.mxu1 }
 0xbc0   :  { %2143 = vst.msk [vmem:[#allocation3] sm:$0xff] %vm1042_vm13, %v2134_v36 }
 0xbc5   :  { %v2164_v41 = vld [vmem:[#allocation3 + $0x8] sm:$0xff] }
 0xbc6   :  { %v2172_v42 = vmul.f32 %v3951_v38, %v2164_v41 }
 0xbc7   :  { %v2163_v44 = vld [vmem:[#allocation3] sm:$0xff] }
 0xbc8   :  { %v2171_v13 = vmul.f32 %v3951_v38, %v2163_v44  ;;  %v2180_v26 = vadd.f32 %v3952_v40, %v2172_v42 }
 0xbca   :  { %v2179_v46 = vadd.f32 %v3952_v40, %v2171_v13  ;;  %v2182_v50 = vmax.f32 %v2180_v26, 0.0 }
 0xbcc   :  { %v2181_v48 = vmax.f32 %v2179_v46, 0.0  ;;  %v4584_v46 = vld [vmem:[%s5768_s27] sm:$0xff]  }
 0xbce   :  { %v2183_v51 = vpack.c.bf16 %v2182_v50, %v2181_v48  ;;  %v3968_v48 = vld [vmem:[%s5769_s12] ss:$0 sm:$0xff] }
 0xbd0   :  { %4362 = vmatmul.mubr.msk.bf16.vlgmr.msra.gmra.mxu1 %vm1042_vm13, %v2183_v51 }
 0xbd1   :  { %4375 = vmatprep.mubr.msk.f32.mxu1 %vm1042_vm13, %v5172_v24 }
 0xc90   :  { %v2227_v55 = vpop.f32.mrf.mxu1 }
 0xc91   :  { %v2240_v57 = vmul.f32 %v3955_v54, %v2227_v55 }
 0xc92   :  { %v4363_v62 = vpop.f32.mrf.mxu1 }
 0xc93   :  { %v2248_v63 = vadd.f32 %v3956_v58, %v2240_v57 }
 0xc94   :  { %v2230_v49 = vpop.f32.mrf.mxu1 }
 0xc95   :  { %v2241_v1 = vmul.f32 %v3955_v54, %v2230_v49  ;;  %v2250_v59 = vmax.f32 %v2248_v63, 0.0 }
 0xc96   :  { %v4364_v2 = vpop.f32.mrf.mxu1 }
 0xc97   :  { %v2249_v3 = vadd.f32 %v3956_v58, %v2241_v1 }
 0xc99   :  { %v2251_v4 = vmax.f32 %v2249_v3, 0.0 }
 0xc9b   :  { %v2252_v6 = vpack.c.bf16 %v2251_v4, %v2250_v59 }
 0xc9d   :  { %4368 = vmatmul.mubr.msk.bf16.vlgmr.msra.gmra.mxu0 %vm1042_vm13, %v2252_v6 }
 0xc9e   :  { %4382 = vmatprep.mubr.msk.f32.mxu0 %vm1042_vm13, %v5175_v25 }
 0xd5d   :  { %v2296_v7 = vpop.f32.mrf.mxu0 }
 0xd5e   :  { %2398 = vrot.lane.b32.xlu1 %v2296_v7, %s4871_s17 }
 0xd5f   :  { %v4369_v8 = vpop.f32.mrf.mxu0 }
 0xd61   :  { %v2299_v14 = vpop.f32.mrf.mxu0 }
 0xd62   :  { %2392 = vrot.lane.b32.xlu1 %v2299_v14, %s4872_s21  ;;  %2400 = vrot.lane.b32.xlu0 %v2299_v14, %s4871_s17 }
 0xd63   :  { %4371 = vmatprep.subr.mxu1 %v2299_v14  ;;  %v4370_v15 = vpop.f32.mrf.mxu0 }
 0xd64   :  { %4372 = vmatpush3.msra.mxu1 %v2299_v14  ;;  %v4585_v14 = vld [vmem:[%s5771_s20 + $0x8] sm:$0xff]   ;;  %v4586_v15 = vld [vmem:[%s5771_s20] sm:$0xff]  }
 0xd65   :  { %4373 = vmatprep.subr.mxu1 %v2296_v7 }
 0xd66   :  { %4374 = vmatpush3.msra.mxu1 %v2296_v7  ;;  %2390 = vrot.lane.b32.xlu0 %v2296_v7, %s4872_s21 }
 0xd67   :  { %4376 = vmatmul.mubr.msk.f32.vlgmr.msra.gmra.mxu1 %vm1042_vm13, %v5254_v10  ;;  %4385 = vmatprep.subr.bf16.mxu1 %v4870_v23 }
 0xd68   :  { %4389 = vmatprep.mubr.msk.bf16.mxu1 %vm4875_vm9, %v4870_v23  ;;  %4386 = vmatpush3.bf16.msra.mxu1 %v2544_v47 }
 0xd69   :  { %4387 = vmatprep.subr.bf16.mxu1 %v4870_v23 }
 0xd6c   :  { %4388 = vmatpush3.bf16.msra.mxu1 %v4583_v56 }
 0xdd0   :  { %v2399_v16 = vpop.permute.xlu1 %2398 }
 0xdd4   :  { %v2401_v17 = vpop.permute.xlu0 %2400  ;;  %v2393_v61 = vpop.permute.xlu1 %2392 }
 0xdd5   :  { %4378 = vmatprep.subr.mxu0 %v2401_v17 }
 0xdd6   :  { %4379 = vmatpush3.msra.mxu0 %v2401_v17 }
 0xdd7   :  { %4380 = vmatprep.subr.mxu0 %v2399_v16 }
 0xdd8   :  { %4381 = vmatpush3.msra.mxu0 %v2399_v16  ;;  %v2391_v30 = vpop.permute.xlu0 %2390 }
 0xdd9   :  { %4383 = vmatmul.mubr.msk.f32.vlgmr.msra.gmra.mxu0 %vm1042_vm13, %v5259_v11  ;;  %4393 = vmatprep.subr.bf16.mxu0 %v4870_v23 }
 0xdda   :  { %4395 = vmatprep.mubr.msk.bf16.mxu0 %vm4875_vm9, %v4870_v23  ;;  %4394 = vmatpush3.bf16.msra.mxu0 %v4584_v46  ;;  %v3983_v46 = vld [vmem:[%s5776_s24] ss:$0 sm:$0xff] }
 0xe27   :  { %v4377_v43 = vpop.f32.mrf.mxu1 }
 0xe28   :  { %v2387_v18 = vsel %vm2150_vm11, %v4377_v43, 0.0 }
 0xe29   :  { %v2373_v52 = vpop.f32.mrf.mxu1  ;;  %v2397_v29 = vadd.f32 %v2393_v61, %v2387_v18 }
 0xe2a   :  { %v2386_v27 = vsel %vm542_vm10, %v2373_v52, 0.0 }
 0xe2b   :  { %v2396_v9 = vadd.f32 %v2391_v30, %v2386_v27 }
 0xe99   :  { %v4384_v0 = vpop.f32.mrf.mxu0 }
 0xe9a   :  { %v2488_v31 = vsel %vm1048_vm15, %v4384_v0, 0.0 }
 0xe9b   :  { %v2490_v32 = vadd.f32 %v2488_v31, %v2397_v29  ;;  %v2474_v21 = vpop.f32.mrf.mxu0 }
 0xe9c   :  { %v2487_v33 = vsel %vm2145_vm12, %v2474_v21, 0.0 }
 0xe9d   :  { %v2489_v34 = vadd.f32 %v2487_v33, %v2396_v9  ;;  %2495 = vrot.lane.b32.xlu1 %v2490_v32, %s4873_s29  ;;  %v3976_v9 = vld [vmem:[%s5772_s5] ss:$0 sm:$0xff] }
 0xe9e   :  { %v3977_v32 = vld [vmem:[%s5773_s9] ss:$0 sm:$0xff] }
 0xe9f   :  { %2493 = vrot.lane.b32.xlu0 %v2489_v34, %s4873_s29 }
 0xf0f   :  { %v2496_v35 = vpop.permute.xlu1 %2495 }
 0xf10   :  { %2500 = vst.msk [vmem:[#allocation3 + $0x8] sm:$0xff] %vm1516_vm1, %v2496_v35 }
 0xf11   :  { %v2494_v37 = vpop.permute.xlu0 %2493 }
 0xf12   :  { %2499 = vst.msk [vmem:[#allocation3] sm:$0xff] %vm1516_vm1, %v2494_v37 }
 0xf17   :  { %v2511_v5 = vld [vmem:[#allocation3 + $0x8] sm:$0xff] }
 0xf18   :  { %v2519_v36 = vmul.f32 %v3963_v39, %v2511_v5 }
 0xf19   :  { %v2510_v38 = vld [vmem:[#allocation3] sm:$0xff] }
 0xf1a   :  { %v2518_v40 = vmul.f32 %v3963_v39, %v2510_v38  ;;  %v2527_v41 = vadd.f32 %v3964_v28, %v2519_v36 }
 0xf1c   :  { %v2526_v42 = vadd.f32 %v3964_v28, %v2518_v40  ;;  %v2529_v13 = vmax.f32 %v2527_v41, 0.0 }
 0xf1e   :  { %v2528_v44 = vmax.f32 %v2526_v42, 0.0  ;;  %v4587_v42 = vld [vmem:[%s5774_s13] sm:$0xff]  }
 0xf20   :  { %v2530_v26 = vpack.c.bf16 %v2529_v13, %v2528_v44 }
 0xf22   :  { %4390 = vmatmul.mubr.msk.bf16.vlgmr.msra.gmra.mxu1 %vm1569_vm2, %v2530_v26  ;;  %v3982_v26 = vld [vmem:[%s5775_s25] ss:$0 sm:$0xff] }
 0xf23   :  { %4410 = vmatprep.mubr.msk.f32.mxu1 %vm1042_vm13, %v5175_v25 }
 0xfe2   :  { %v2580_v50 = vpop.f32.mrf.mxu1 }
 0xfe3   :  { %v2593_v51 = vmul.f32 %v3968_v48, %v2580_v50 }
 0xfe4   :  { %v4391_v54 = vpop.f32.mrf.mxu1 }
 0xfe5   :  { %v2601_v57 = vadd.f32 %v3969_v53, %v2593_v51  ;;  %v4588_v54 = vld [vmem:[%s5777_s30] sm:$0xff]  }
 0xfe6   :  { %v2583_v55 = vpop.f32.mrf.mxu1 }
 0xfe7   :  { %v2594_v58 = vmul.f32 %v3968_v48, %v2583_v55  ;;  %v2603_v63 = vmax.f32 %v2601_v57, 0.0  ;;  %v3986_v55 = vld [vmem:[#allocation5] ss:$0 sm:$0xff]  ;;  %v3987_v57 = vld [vmem:[#allocation8] ss:$0 sm:$0xff] }
 0xfe8   :  { %v4392_v62 = vpop.f32.mrf.mxu1 }
 0xfe9   :  { %v2602_v49 = vadd.f32 %v3969_v53, %v2594_v58 }
 0xfeb   :  { %v2604_v1 = vmax.f32 %v2602_v49, 0.0 }
 0xfed   :  { %v2605_v2 = vpack.c.bf16 %v2604_v1, %v2603_v63 }
 0xfef   :  { %4396 = vmatmul.mubr.msk.bf16.vlgmr.msra.gmra.mxu0 %vm1042_vm13, %v2605_v2 }
 0xff0   :  { %4403 = vmatprep.mubr.msk.f32.mxu0 %vm1042_vm13, %v5172_v24 }
0x10af   :  { %v2649_v3 = vpop.f32.mrf.mxu0 }
0x10b0   :  { %2743 = vrot.lane.b32.xlu1 %v2649_v3, %s4871_s17 }
0x10b1   :  { %v4397_v59 = vpop.f32.mrf.mxu0 }
0x10b3   :  { %v2652_v4 = vpop.f32.mrf.mxu0 }
0x10b4   :  { %2737 = vrot.lane.b32.xlu1 %v2652_v4, %s4872_s21  ;;  %2745 = vrot.lane.b32.xlu0 %v2652_v4, %s4871_s17 }
0x10b5   :  { %4399 = vmatprep.subr.mxu0 %v2652_v4  ;;  %v4398_v6 = vpop.f32.mrf.mxu0 }
0x10b6   :  { %4400 = vmatpush3.msra.mxu0 %v2652_v4 }
0x10b7   :  { %4401 = vmatprep.subr.mxu0 %v2649_v3 }
0x10b8   :  { %4402 = vmatpush3.msra.mxu0 %v2649_v3  ;;  %2735 = vrot.lane.b32.xlu0 %v2649_v3, %s4872_s21 }
0x10b9   :  { %4404 = vmatmul.mubr.msk.f32.vlgmr.msra.gmra.mxu0 %vm1042_vm13, %v5254_v10  ;;  %4413 = vmatprep.subr.bf16.mxu0 %v4870_v23 }
0x10ba   :  { %4417 = vmatprep.mubr.msk.bf16.mxu0 %vm4875_vm9, %v4870_v23  ;;  %4414 = vmatpush3.bf16.msra.mxu0 %v4585_v14 }
0x10bb   :  { %4415 = vmatprep.subr.bf16.mxu0 %v4870_v23 }
0x10be   :  { %4416 = vmatpush3.bf16.msra.mxu0 %v4586_v15 }
0x10bf   :  { %4434 = vmatprep.subr.bf16.mxu0 %v4870_v23 }
0x1122   :  { %v2744_v8 = vpop.permute.xlu1 %2743 }
0x1126   :  { %v2746_v7 = vpop.permute.xlu0 %2745  ;;  %v2738_v43 = vpop.permute.xlu1 %2737 }
0x1127   :  { %4406 = vmatprep.subr.mxu1 %v2746_v7 }
0x1128   :  { %4407 = vmatpush3.msra.mxu1 %v2746_v7 }
0x1129   :  { %4408 = vmatprep.subr.mxu1 %v2744_v8 }
0x112a   :  { %4409 = vmatpush3.msra.mxu1 %v2744_v8  ;;  %v2736_v52 = vpop.permute.xlu0 %2735 }
0x112b   :  { %4411 = vmatmul.mubr.msk.f32.vlgmr.msra.gmra.mxu1 %vm1042_vm13, %v5259_v11  ;;  %4421 = vmatprep.subr.mxu1 %v4870_v23 }
0x112c   :  { %4425 = vmatprep.mubr.msk.f32.mxu1 %vm4875_vm9, %v4870_v23 }
0x1179   :  { %v4405_v10 = vpop.f32.mrf.mxu0 }
0x117a   :  { %v2732_v16 = vsel %vm2150_vm11, %v4405_v10, 0.0 }
0x117b   :  { %v2722_v17 = vpop.f32.mrf.mxu0  ;;  %v2742_v11 = vadd.f32 %v2738_v43, %v2732_v16 }
0x117c   :  { %v2731_v60 = vsel %vm542_vm10, %v2722_v17, 0.0  ;;  %v4589_v17 = vld [vmem:[%s5778_s6 + $0x8] ss:$0 sps:$4 sm:$0xff]  }
0x117d   :  { %v2741_v18 = vadd.f32 %v2736_v52, %v2731_v60  ;;  %v3342_v16 = vsel %vm1576_vm14, %v4589_v17, 0  ;;  %v4590_v60 = vld [vmem:[%s5778_s6] sm:$0xff]  }
0x11eb   :  { %v4412_v47 = vpop.f32.mrf.mxu1 }
0x11ec   :  { %v2825_v56 = vsel %vm1048_vm15, %v4412_v47, 0.0  ;;  %vm3138_vm15 = vcmask 64512  }
0x11ed   :  { %v2827_v61 = vadd.f32 %v2825_v56, %v2742_v11  ;;  %v2815_v27 = vpop.f32.mrf.mxu1 }
0x11ee   :  { %v2824_v29 = vsel %vm2145_vm12, %v2815_v27, 0.0 }
0x11ef   :  { %v2826_v0 = vadd.f32 %v2824_v29, %v2741_v18  ;;  %2832 = vrot.lane.b32.xlu1 %v2827_v61, %s4874_s26 }
0x11f1   :  { %2830 = vrot.lane.b32.xlu0 %v2826_v0, %s4874_s26 }
0x1261   :  { %v2833_v30 = vpop.permute.xlu1 %2832 }
0x1262   :  { %2837 = vst.msk [vmem:[#allocation3 + $0x8] sm:$0xff] %vm1946_vm3, %v2833_v30  ;;  %v3992_v30 = vld [vmem:[#allocation10] ss:$0 sm:$0xff] }
0x1263   :  { %v2831_v31 = vpop.permute.xlu0 %2830 }
0x1264   :  { %2836 = vst.msk [vmem:[#allocation3] sm:$0xff] %vm1946_vm3, %v2831_v31  ;;  %v3993_v31 = vld [vmem:[#allocation11] ss:$0 sm:$0xff] }
0x1269   :  { %v2839_v45 = vld [vmem:[#allocation3 + $0x8] sm:$0xff] }
0x126a   :  { %v2853_v21 = vmul.f32 %v3976_v9, %v2839_v45 }
0x126b   :  { %v2838_v33 = vld [vmem:[#allocation3] sm:$0xff] }
0x126c   :  { %v2852_v34 = vmul.f32 %v3976_v9, %v2838_v33  ;;  %v2861_v35 = vadd.f32 %v3977_v32, %v2853_v21 }
0x126e   :  { %v2860_v37 = vadd.f32 %v3977_v32, %v2852_v34  ;;  %v2863_v28 = vmax.f32 %v2861_v35, 0.0  ;;  %v4591_v34 = vld [vmem:[%s5783_s18] sm:$0xff]  }
0x126f   :  { %v3997_v35 = vld [vmem:[#allocation13] ss:$0 sm:$0xff] }
0x1270   :  { %v2862_v39 = vmax.f32 %v2860_v37, 0.0  ;;  %v3998_v37 = vld [vmem:[#allocation14] ss:$0 sm:$0xff] }
0x1272   :  { %v2864_v5 = vpack.c.bf16 %v2863_v28, %v2862_v39 }
0x1274   :  { %4418 = vmatmul.mubr.msk.bf16.vlgmr.msra.gmra.mxu0 %vm1253_vm5, %v2864_v5 }
0x1275   :  { %4436 = vmatprep.mubr.msk.bf16.mxu0 %vm4875_vm9, %v4870_v23  ;;  %4435 = vmatpush3.bf16.msra.mxu0 %v4588_v54 }
0x1276   :  { %4450 = vmatprep.subr.bf16.mxu0 %v4870_v23 }
0x1334   :  { %v2914_v36 = vpop.f32.mrf.mxu0 }
0x1336   :  { %v4419_v38 = vpop.f32.mrf.mxu0 }
0x1338   :  { %v2917_v40 = vpop.f32.mrf.mxu0 }
0x1339   :  { %4422 = vmatpush3.msra.mxu1 %v2917_v40 }
0x133a   :  { %v4420_v41 = vpop.f32.mrf.mxu0  ;;  %4423 = vmatprep.subr.mxu1 %v4870_v23 }
0x133b   :  { %4424 = vmatpush3.msra.mxu1 %v2914_v36 }
0x133c   :  { %4426 = vmatmul.mubr.msk.f32.vlgmr.msra.gmra.mxu1 %vm1042_vm13, %v5503_v12  ;;  %4428 = vmatprep.subr.bf16.mxu1 %v4870_v23 }
0x133d   :  { %4430 = vmatprep.mubr.msk.bf16.mxu1 %vm4875_vm9, %v4870_v23  ;;  %4429 = vmatpush3.bf16.msra.mxu1 %v4587_v42 }
0x133e   :  { %4440 = vmatprep.subr.mxu1 %v4870_v23 }
0x13fc   :  { %v2989_v44 = vpop.f32.mrf.mxu1 }
0x13fd   :  { %2993 = vst.msk [vmem:[#allocation4] sm:$0xff] %vm1042_vm13, %v2989_v44 }
0x13fe   :  { %v4427_v13 = vpop.f32.mrf.mxu1 }
0x1404   :  { %v3007_v48 = vld [vmem:[#allocation4] sm:$0xff] }
0x1405   :  { %v3014_v50 = vmul.f32 %v3982_v26, %v3007_v48 }
0x1407   :  { %v3021_v51 = vadd.f32 %v3983_v46, %v3014_v50 }
0x1409   :  { %v3022_v12 = vmax.f32 %v3021_v51, 0.0 }
0x140b   :  { %v3023_v53 = vpack.c.bf16 %v3022_v12, %v3022_v12 }
0x140d   :  { %4431 = vmatmul.mubr.msk.bf16.vlgmr.msra.gmra.mxu1 %vm1042_vm13, %v3023_v53 }
0x140e   :  { %4442 = vmatprep.mubr.msk.f32.mxu1 %vm4875_vm9, %v4870_v23 }
0x14cd   :  { %v3067_v58 = vpop.f32.mrf.mxu1 }
0x14ce   :  { %v3079_v62 = vmul.f32 %v3986_v55, %v3067_v58 }
0x14cf   :  { %v4432_v49 = vpop.f32.mrf.mxu1 }
0x14d0   :  { %v3086_v63 = vadd.f32 %v3987_v57, %v3079_v62  ;;  %v3623_v49 = vmul.u32 4, %v5160_v19 }
0x14d1   :  { %v3070_v1 = vpop.f32.mrf.mxu1 }
0x14d2   :  { %v3087_v2 = vmax.f32 %v3086_v63, 0.0  ;;  %v3625_v63 = vmul.u32 4, %v5166_v22  ;;  %v4003_v1 = vld [vmem:[#allocation16] ss:$0 sm:$0xff]  ;;  %vm3624_vm10 = vcmp.ge.s32.totalorder %v5162_v20, %v3623_v49 }
0x14d3   :  { %v4433_v3 = vpop.f32.mrf.mxu1 }
0x14d4   :  { %v3088_v59 = vpack.c.bf16 %v3087_v2, %v3087_v2  ;;  %v4004_v3 = vld [vmem:[#allocation17] ss:$0 sm:$0xff] }
0x14d6   :  { %4437 = vmatmul.mubr.msk.bf16.vlgmr.msra.gmra.mxu0 %vm1042_vm13, %v3088_v59 }
0x14d7   :  { %4454 = vmatprep.mubr.msk.bf16.mxu0 %vm4875_vm9, %v4870_v23  ;;  %4451 = vmatpush3.bf16.msra.mxu0 %v3342_v16 }
0x14d8   :  { %4452 = vmatprep.subr.bf16.mxu0 %v4870_v23 }
0x14db   :  { %4453 = vmatpush3.bf16.msra.mxu0 %v4590_v60 }
0x14dc   :  { %4464 = vmatprep.subr.mxu0 %v4870_v23 }
0x1596   :  { %v3132_v4 = vpop.f32.mrf.mxu0 }
0x1597   :  { %3215 = vrot.lane.b32.xlu1 %v3132_v4, %s4872_s21  ;;  %3219 = vrot.lane.b32.xlu0 %v3132_v4, %s4871_s17 }
0x1598   :  { %4441 = vmatpush3.msra.mxu1 %v3132_v4  ;;  %v4438_v6 = vpop.f32.mrf.mxu0 }
0x1599   :  { %4443 = vmatmul.mubr.msk.f32.vlgmr.msra.gmra.mxu1 %vm3138_vm15, %v5172_v24  ;;  %4445 = vmatprep.subr.mxu1 %v4870_v23 }
0x159a   :  { %v3135_v7 = vpop.f32.mrf.mxu0  ;;  %4447 = vmatprep.mubr.msk.f32.mxu1 %vm4875_vm9, %v4870_v23 }
0x159c   :  { %v4439_v8 = vpop.f32.mrf.mxu0 }
0x159d   :  { %v4593_v8 = vld [vmem:[%s5125_s3] sm:$0xff]  }
0x1609   :  { %v3220_v10 = vpop.permute.xlu0 %3219  ;;  %v3216_v52 = vpop.permute.xlu1 %3215 }
0x160a   :  { %4446 = vmatpush3.msra.mxu1 %v3220_v10 }
0x160b   :  { %4448 = vmatmul.mubr.msk.f32.vlgmr.msra.gmra.mxu1 %vm3138_vm15, %v5175_v25  ;;  %4458 = vmatprep.subr.bf16.mxu1 %v4870_v23 }
0x160c   :  { %4460 = vmatprep.mubr.msk.bf16.mxu1 %vm4875_vm9, %v4870_v23  ;;  %4459 = vmatpush3.bf16.msra.mxu1 %v4591_v34 }
0x160d   :  { %4469 = vmatprep.subr.mxu1 %v4870_v23 }
0x1659   :  { %v3207_v14 = vpop.f32.mrf.mxu1 }
0x165a   :  { %v3213_v11 = vsel %vm5647_vm6, %v3207_v14, 0.0  ;;  %v4006_v14 = vld [vmem:[#allocation19] ss:$0 sm:$0xff] }
0x165b   :  { %v4444_v15 = vpop.f32.mrf.mxu1  ;;  %v3218_v56 = vadd.f32 %v3216_v52, %v3213_v11 }
0x16cb   :  { %v3290_v18 = vpop.f32.mrf.mxu1 }
0x16cc   :  { %v3296_v61 = vsel %vm5658_vm8, %v3290_v18, 0.0 }
0x16cd   :  { %v3297_v27 = vadd.f32 %v3296_v61, %v3218_v56  ;;  %v4449_v29 = vpop.f32.mrf.mxu1 }
0x16cf   :  { %3299 = vrot.lane.b32.xlu0 %v3297_v27, %s4873_s29 }
0x1741   :  { %v3300_v0 = vpop.permute.xlu0 %3299 }
0x1742   :  { %3302 = vst.msk [vmem:[#allocation4] sm:$0xff] %vm1516_vm1, %v3300_v0  ;;  %vm3779_vm1 = vcmask 33792  }
0x1749   :  { %v3312_v9 = vld [vmem:[#allocation4] sm:$0xff] }
0x174a   :  { %v3319_v45 = vmul.f32 %v3992_v30, %v3312_v9 }
0x174c   :  { %v3326_v32 = vadd.f32 %v3993_v31, %v3319_v45 }
0x174e   :  { %v3327_v21 = vmax.f32 %v3326_v32, 0.0 }
0x1750   :  { %v3328_v33 = vpack.c.bf16 %v3327_v21, %v3327_v21 }
0x1752   :  { %4455 = vmatmul.mubr.msk.bf16.vlgmr.msra.gmra.mxu0 %vm1569_vm2, %v3328_v33 }
0x1753   :  { %4466 = vmatprep.mubr.msk.f32.mxu0 %vm4875_vm9, %v4870_v23 }
0x1812   :  { %v3378_v39 = vpop.f32.mrf.mxu0 }
0x1813   :  { %v3390_v28 = vmul.f32 %v3997_v35, %v3378_v39 }
0x1814   :  { %v4456_v5 = vpop.f32.mrf.mxu0 }
0x1815   :  { %v3397_v36 = vadd.f32 %v3998_v37, %v3390_v28 }
0x1816   :  { %v3381_v38 = vpop.f32.mrf.mxu0 }
0x1817   :  { %v3398_v40 = vmax.f32 %v3397_v36, 0.0 }
0x1818   :  { %v4457_v41 = vpop.f32.mrf.mxu0 }
0x1819   :  { %v3399_v42 = vpack.c.bf16 %v3398_v40, %v3398_v40 }
0x181b   :  { %4461 = vmatmul.mubr.msk.bf16.vlgmr.msra.gmra.mxu1 %vm1042_vm13, %v3399_v42  ;;  %vm3626_vm13 = vcmp.lt.s32.totalorder %v5162_v20, %v3625_v63 }
0x181c   :  { %4471 = vmatprep.mubr.msk.f32.mxu1 %vm4875_vm9, %v4870_v23  ;;  %vm3627_vm14 = vmand %vm3624_vm10, %vm3626_vm13 }
0x181d   :  { %v3628_v7 = vsel %vm3627_vm14, 0.25, %v4870_v23 }
0x18db   :  { %v3443_v44 = vpop.f32.mrf.mxu1 }
0x18dc   :  { %3521 = vrot.lane.b32.xlu0 %v3443_v44, %s4872_s21  ;;  %3525 = vrot.lane.b32.xlu1 %v3443_v44, %s4871_s17 }
0x18dd   :  { %4465 = vmatpush3.msra.mxu0 %v3443_v44  ;;  %v4462_v13 = vpop.f32.mrf.mxu1 }
0x18de   :  { %4467 = vmatmul.mubr.msk.f32.vlgmr.msra.gmra.mxu0 %vm3138_vm15, %v5172_v24  ;;  %4474 = vmatprep.subr.mxu0 %v4870_v23 }
0x18df   :  { %v3446_v26 = vpop.f32.mrf.mxu1  ;;  %4476 = vmatprep.mubr.msk.f32.mxu0 %vm4875_vm9, %v4870_v23 }
0x18e1   :  { %v4463_v46 = vpop.f32.mrf.mxu1 }
0x194e   :  { %v3526_v48 = vpop.permute.xlu1 %3525  ;;  %v3522_v12 = vpop.permute.xlu0 %3521 }
0x194f   :  { %4470 = vmatpush3.msra.mxu1 %v3526_v48 }
0x1950   :  { %4472 = vmatmul.mubr.msk.f32.vlgmr.msra.gmra.mxu1 %vm3138_vm15, %v5175_v25  ;;  %4479 = vmatprep.subr.bf16.mxu1 %v4870_v23  ;;  %v4592_v25 = vld [vmem:[%s5125_s3 + $0x8] sm:$0xff]   ;;  %s4876_s3 = smov [#allocation20]  }
0x1951   :  { %4483 = vmatprep.mubr.msk.bf16.mxu1 %vm4875_vm9, %v4870_v23  ;;  %4480 = vmatpush3.bf16.msra.mxu1 %v4592_v25  ;;  %s3787_s17 = sshll.u32 %s4876_s3, 4  ;;  %s3788_s17 = int_to_ptr.vmem [resolvable:$true] %s3787_s17 }
0x1952   :  { %4481 = vmatprep.subr.bf16.mxu1 %v4870_v23  ;;  %s4778_s21 = scalar_lea.vmem %s3788_s17, 32  ;;  %p4783_p4 = scmp.lt.s32.totalorder %s3788_s17, %s3788_s17 }
0x1953   :  { %p4779_p3 = scmp.ne.s32.totalorder %s3788_s17, %s4778_s21  ;;  %p4784_p5 = scmp.lt.s32.totalorder %s4778_s21, %s4778_s21 }
0x1955   :  { %4482 = vmatpush3.bf16.msra.mxu1 %v4593_v8  ;;  %p4785_p6 = por %p4784_p5, %p4783_p4 }
0x1957   :  { %p4786_p7 = pnand %p4785_p6, %p4779_p3 }
0x199e   :  { %v3515_v50 = vpop.f32.mrf.mxu0 }
0x199f   :  { %v3519_v51 = vsel %vm5647_vm6, %v3515_v50, 0.0 }
0x19a0   :  { %v4468_v24 = vpop.f32.mrf.mxu0  ;;  %v3524_v53 = vadd.f32 %v3522_v12, %v3519_v51 }
0x1a10   :  { %v3594_v54 = vpop.f32.mrf.mxu1 }
0x1a11   :  { %v3598_v55 = vsel %vm5658_vm8, %v3594_v54, 0.0 }
0x1a12   :  { %v3599_v57 = vadd.f32 %v3598_v55, %v3524_v53  ;;  %v4473_v58 = vpop.f32.mrf.mxu1 }
0x1a14   :  { %3601 = vrot.lane.b32.xlu1 %v3599_v57, %s4874_s26 }
0x1a86   :  { %v3602_v62 = vpop.permute.xlu1 %3601 }
0x1a87   :  { %3604 = vst.msk [vmem:[#allocation4] sm:$0xff] %vm1946_vm3, %v3602_v62 }
0x1a8e   :  { %v3605_v2 = vld [vmem:[#allocation4] sm:$0xff] }
0x1a8f   :  { %v3614_v59 = vmul.f32 %v4003_v1, %v3605_v2 }
0x1a91   :  { %v3621_v4 = vadd.f32 %v4004_v3, %v3614_v59 }
0x1a93   :  { %v3622_v6 = vmax.f32 %v3621_v4, 0.0 }
0x1a95   :  { %4475 = vmatpush3.msra.mxu0 %v3622_v6 }
0x1a96   :  { %4477 = vmatmul.mubr.msk.f32.vlgmr.msra.gmra.mxu0 %vm3138_vm15, %v3628_v7 }
0x1b56   :  { %v3698_v19 = vpop.f32.mrf.mxu0 }
0x1b57   :  { %v3707_v22 = vpack.c.bf16 %v3698_v19, %v3698_v19 }
0x1b58   :  { %v4478_v10 = vpop.f32.mrf.mxu0 }
0x1b59   :  { %4484 = vmatmul.mubr.msk.bf16.vlgmr.msra.gmra.mxu1 %vm1253_vm5, %v3707_v22 }
0x1c19   :  { %v3763_v20 = vpop.f32.mrf.mxu1 }
0x1c1a   :  { %v3764_v15 = vadd.f32 %v4006_v14, %v3763_v20 }
0x1c1b   :  { %v4485_v17 = vpop.f32.mrf.mxu1 }
0x1c1c   :  { %v3769_v16 = vand.u32 2147483647, %v3764_v15  ;;  %vm3773_vm2 = vcmp.ge.f32.partialorder %v3764_v15, 0.0 }
0x1c1d   :  { %v3766_v43 = vpop.f32.mrf.mxu1 }
0x1c1e   :  { %v3770_v60 = vsub.f32 0.0, %v3769_v16 }
0x1c1f   :  { %v4486_v11 = vpop.f32.mrf.mxu1 }
0x1c20   :  { %v3771_v47 = vmul.f32 1.442695, %v3770_v60 }
0x1c22   :  { %4594 = vpow2.f32 %v3771_v47 }
0x1c2f   :  { %v4595_v23 = vpop.eup %4594 }
0x1c30   :  { %v3774_v52 = vadd.f32 1.0, %v4595_v23 }
0x1c32   :  { %4596 = vrcp.f32 %v3774_v52 }
0x1c3f   :  { %v4597_v56 = vpop.eup %4596 }
0x1c40   :  { %v3777_v18 = vmul.f32 %v4597_v56, %v4595_v23 }
0x1c42   :  { %v3778_v61 = vsel %vm3773_vm2, %v4597_v56, %v3777_v18 }
0x1c43   :  { %3780 = vst.msk [vmem:[#allocation20] sm:$0x3] %vm3779_vm1, %v3778_v61 }
0x1c44   :  { %4789 = shalt.err (!%p4786_p7)
}
0x1c45   :  { %3790 = dma.vmem_to_hbm [thread:$0]  %s3788_s17, 32, %s5135_s14, [#allocation7]  }
0x1c46   :  { %4808 = dma.done.wait [#allocation7], 32  }
0x1c47   :  { %4809 = vsyncadd [#allocation7], 4294967264 }
0x1c48   :  { %3794 = vsyncpa [#allocation6], 1 }
0x1c49   :  { %3795 = vsyncpa [#allocation9], 1 }
0x1c4a   :  { %3796 = vsyncpa [#allocation12], 1 }
0x1c4b   :  { %3797 = vsyncpa [#allocation15], 1 }
0x1c4c   :  { %3798 = vsyncpa [#allocation18], 1 }
0x1c4d   :  { %3799 = vsyncpa [#allocation7], 1 }

</bundles_post_ra>
